<compile_context>
chip_gen: v5e
topology: v5e:2x2
jax: 0.10.0
libtpu: 0.0.40
codegen_flags: <defaults>
</compile_context>

<pallas_src>
import functools

import jax
import jax.numpy as jnp
from jax import lax
from jax.experimental import pallas as pl
from jax.experimental.pallas import tpu as pltpu


# ----------------------------- Pallas kernel ------------------------------ #
def basic_block_kernel(xph_ref, w1_ref, w2_ref, b1_ref, b2_ref, sc_ref,
                       out_ref, y1pad_ref, *, stride):
    """One image per grid step (grid over batch, 'parallel').

    xph_ref : (s*s, 1, Hp, Wp, Cin) f32  phase-split, zero-padded input tile
    w1_ref  : (9*Cin, C)            bf16 conv1 weight, bn1 scale folded in
    w2_ref  : (9*C,  C)             bf16 conv2 weight, bn2 scale folded in
    b1_ref  : (1, C) f32            folded bn1 bias
    b2_ref  : (1, C) f32            folded bn2 bias
    sc_ref  : (1, Ho, Wo, C) f32    shortcut branch (identity / option 'A')
    out_ref : (1, Ho, Wo, C) f32
    y1pad_ref (scratch): (Ho+2, Wo+2, C) f32 zero-halo intermediate for conv2
    """
    _, Ho, Wo, C = out_ref.shape
    Cin = xph_ref.shape[-1]
    M = Ho * Wo
    s = stride

    # ---- conv1: in-VMEM im2col (9 contiguous phase-plane taps) + one fat-K
    #      bf16 matmul on the MXU, f32 accumulation. bn1 scale is folded into
    #      w1; only bias + relu remain here.
    taps1 = []
    for dy in range(3):
        for dx in range(3):
            ph = (dy % s) * s + (dx % s)
            oy, ox = dy // s, dx // s
            taps1.append(
                xph_ref[ph, 0, oy:oy + Ho, ox:ox + Wo, :].reshape(M, Cin))
    p1 = jnp.concatenate(taps1, axis=-1).astype(jnp.bfloat16)   # (M, 9*Cin)
    y1 = jnp.dot(p1, w1_ref[...], preferred_element_type=jnp.float32)
    y1 = jnp.maximum(y1 + b1_ref[...], 0.0)

    # ---- stash relu(bn1(conv1)) into the padded scratch. Only the 1-px halo
    #      is zeroed (the interior is fully overwritten every grid step).
    zrow = jnp.zeros((1, Wo + 2, C), jnp.float32)
    zcol = jnp.zeros((Ho + 2, 1, C), jnp.float32)
    y1pad_ref[0:1, :, :] = zrow
    y1pad_ref[Ho + 1:Ho + 2, :, :] = zrow
    y1pad_ref[:, 0:1, :] = zcol
    y1pad_ref[:, Wo + 1:Wo + 2, :] = zcol
    y1pad_ref[1:Ho + 1, 1:Wo + 1, :] = y1.reshape(Ho, Wo, C)

    # ---- conv2 (stride 1): in-VMEM im2col over the padded scratch + a single
    #      K=9C bf16 matmul, then bias + residual + relu epilogue.
    taps2 = [y1pad_ref[dy:dy + Ho, dx:dx + Wo, :].reshape(M, C)
             for dy in range(3) for dx in range(3)]
    p2 = jnp.concatenate(taps2, axis=-1).astype(jnp.bfloat16)   # (M, 9*C)
    y2 = jnp.dot(p2, w2_ref[...], preferred_element_type=jnp.float32)
    y2 = y2 + b2_ref[...] + sc_ref[...].reshape(M, C)
    out_ref[...] = jnp.maximum(y2, 0.0).reshape(1, Ho, Wo, C).astype(out_ref.dtype)


# ------------------------------ wrapper (glue) ----------------------------- #
def basic_block_forward(x_nchw, p, stride):
    eps = 1e-5
    x = jnp.transpose(x_nchw, (0, 2, 3, 1)).astype(jnp.float32)  # NCHW -> NHWC
    N, H, W, Cin = x.shape
    C = p['w1'].shape[0]                          # planes
    Ho = (H + 2 - 3) // stride + 1
    Wo = (W + 2 - 3) // stride + 1
    s = stride

    # Spatial zero-pad + phase decomposition: for stride s, tap (dy, dx) of the
    # strided 3x3 conv becomes a *contiguous* slice of phase plane
    # (dy % s, dx % s) at offset (dy // s, dx // s). Total bytes ~= padded
    # input (no 9x im2col inflation), and no strided slicing inside the kernel.
    xpad = jnp.pad(x, ((0, 0), (1, 1), (1, 1), (0, 0)))
    Hp = Ho + 2 // s
    Wp = Wo + 2 // s
    phases = []
    for py in range(s):
        for px in range(s):
            ph = xpad[:, py::s, px::s, :][:, :Hp, :Wp, :]
            ph = jnp.pad(ph, ((0, 0), (0, Hp - ph.shape[1]),
                              (0, Wp - ph.shape[2]), (0, 0)))
            phases.append(ph)
    xph = jnp.stack(phases, axis=0)               # (s*s, N, Hp, Wp, Cin) f32

    # Fold BN (eval mode) scale into the conv weights (per output column);
    # keep the folded bias as a tiny (1, C) vector. Weights shipped as bf16.
    inv1 = p['g1'] / jnp.sqrt(p['v1'] + eps)
    inv2 = p['g2'] / jnp.sqrt(p['v2'] + eps)
    w1m = (jnp.transpose(p['w1'], (2, 3, 1, 0)).reshape(9 * Cin, C)
           * inv1[None, :]).astype(jnp.bfloat16)
    w2m = (jnp.transpose(p['w2'], (2, 3, 1, 0)).reshape(9 * C, C)
           * inv2[None, :]).astype(jnp.bfloat16)
    b1 = (p['b1'] - p['m1'] * inv1).reshape(1, C).astype(jnp.float32)
    b2 = (p['b2'] - p['m2'] * inv2).reshape(1, C).astype(jnp.float32)

    # Shortcut branch (identity or CIFAR option 'A') -- slicing/padding glue.
    if stride != 1 or Cin != C:
        sc = x[:, ::2, ::2, :]
        pad = C // 4
        sc = jnp.pad(sc, ((0, 0), (0, 0), (0, 0), (pad, pad)))
    else:
        sc = x
    sc = sc.astype(jnp.float32)

    kernel = functools.partial(basic_block_kernel, stride=s)

    out_nhwc = pl.pallas_call(
        kernel,
        out_shape=jax.ShapeDtypeStruct((N, Ho, Wo, C), jnp.float32),
        grid=(N,),
        in_specs=[
            # per-image input tile (all phases), auto double-buffered
            pl.BlockSpec((s * s, 1, Hp, Wp, Cin), lambda b: (0, b, 0, 0, 0)),
            # weights / biases: full blocks, resident across the grid
            pl.BlockSpec((9 * Cin, C), lambda b: (0, 0)),
            pl.BlockSpec((9 * C, C), lambda b: (0, 0)),
            pl.BlockSpec((1, C), lambda b: (0, 0)),
            pl.BlockSpec((1, C), lambda b: (0, 0)),
            # per-image shortcut tile
            pl.BlockSpec((1, Ho, Wo, C), lambda b: (b, 0, 0, 0)),
        ],
        out_specs=pl.BlockSpec((1, Ho, Wo, C), lambda b: (b, 0, 0, 0)),
        scratch_shapes=[pltpu.VMEM((Ho + 2, Wo + 2, C), jnp.float32)],
        compiler_params=pltpu.CompilerParams(
            dimension_semantics=("parallel",)),
    )(xph, w1m, w2m, b1, b2, sc)

    return jnp.transpose(out_nhwc, (0, 3, 1, 2))  # NHWC -> NCHW


# -------------------------- pure-JAX reference ----------------------------- #
def basic_block_ref(x_nchw, p, stride, eps=1e-5):
    x = jnp.transpose(x_nchw, (0, 2, 3, 1))

    def conv(inp, w, s):
        wt = jnp.transpose(w, (2, 3, 1, 0))  # HWIO
        return lax.conv_general_dilated(
            inp, wt, (s, s), ((1, 1), (1, 1)),
            dimension_numbers=('NHWC', 'HWIO', 'NHWC'),
            precision=lax.Precision.HIGHEST)

    def bn(inp, g, b, m, v):
        return (inp - m) / jnp.sqrt(v + eps) * g + b

    out = jax.nn.relu(bn(conv(x, p['w1'], stride),
                         p['g1'], p['b1'], p['m1'], p['v1']))
    out = bn(conv(out, p['w2'], 1), p['g2'], p['b2'], p['m2'], p['v2'])

    C, Cin = p['w1'].shape[0], x.shape[-1]
    if stride != 1 or Cin != C:
        sc = x[:, ::2, ::2, :]
        pad = C // 4
        sc = jnp.pad(sc, ((0, 0), (0, 0), (0, 0), (pad, pad)))
    else:
        sc = x
    return jnp.transpose(jax.nn.relu(out + sc), (0, 3, 1, 2))


# ------------------------- deterministic parameters ------------------------ #
def init_basic_block(key, in_planes, planes):
    ks = jax.random.split(key, 12)
    p = {
        'w1': jax.random.normal(ks[0], (planes, in_planes, 3, 3), jnp.float32) * 0.1,
        'w2': jax.random.normal(ks[1], (planes, planes, 3, 3), jnp.float32) * 0.1,
        'g1': jax.random.uniform(ks[2], (planes,), jnp.float32, 0.5, 1.5),
        'b1': jax.random.normal(ks[3], (planes,), jnp.float32) * 0.1,
        'm1': jax.random.normal(ks[4], (planes,), jnp.float32) * 0.1,
        'v1': jax.random.uniform(ks[5], (planes,), jnp.float32, 0.5, 1.5),
        'g2': jax.random.uniform(ks[6], (planes,), jnp.float32, 0.5, 1.5),
        'b2': jax.random.normal(ks[7], (planes,), jnp.float32) * 0.1,
        'm2': jax.random.normal(ks[8], (planes,), jnp.float32) * 0.1,
        'v2': jax.random.uniform(ks[9], (planes,), jnp.float32, 0.5, 1.5),
    }
    return p


if __name__ == "__main__":
    key = jax.random.PRNGKey(0)
    kx, k1, k2 = jax.random.split(key, 3)
    x = jax.random.normal(kx, (2, 8, 16, 16), jnp.float32)  # NCHW like PyTorch

    # Block A: stride=1, in_planes == planes -> identity shortcut
    p_a = init_basic_block(k1, 8, 8)
    y_a = basic_block_forward(x, p_a, stride=1)
    jax.block_until_ready(y_a)

    # Block B: stride=2, in_planes != planes -> option 'A' shortcut
    p_b = init_basic_block(k2, 8, 16)
    y_b = basic_block_forward(x, p_b, stride=2)
    jax.block_until_ready(y_b)

    r_a = basic_block_ref(x, p_a, 1)
    r_b = basic_block_ref(x, p_b, 2)

    assert y_a.shape == (2, 8, 16, 16) and y_b.shape == (2, 16, 8, 8)
    # bf16 MXU operands (deliberate numerics change) -> bf16-level tolerance.
    assert jnp.allclose(y_a, r_a, atol=5e-2, rtol=5e-2), \
        float(jnp.max(jnp.abs(y_a - r_a)))
    assert jnp.allclose(y_b, r_b, atol=5e-2, rtol=5e-2), \
        float(jnp.max(jnp.abs(y_b - r_b)))

    print("KERNEL_OK")
</pallas_src>

<mosaic_0001>
module attributes {stable_mosaic.version = 11 : i64} {
  func.func @basic_block_kernel(%arg0: i32, %arg1: memref<1x1x18x18x8xf32, #tpu.memory_space<vmem>>, %arg2: memref<72x8xbf16, #tpu.memory_space<vmem>>, %arg3: memref<72x8xbf16, #tpu.memory_space<vmem>>, %arg4: memref<1x8xf32, #tpu.memory_space<vmem>>, %arg5: memref<1x8xf32, #tpu.memory_space<vmem>>, %arg6: memref<1x16x16x8xf32, #tpu.memory_space<vmem>>, %arg7: memref<1x16x16x8xf32, #tpu.memory_space<vmem>>, %arg8: memref<18x18x8xf32, #tpu.memory_space<vmem>>) attributes {dimension_semantics = [#tpu.dimension_semantics<parallel>], iteration_bounds = array<i64: 2>, scalar_prefetch = 0 : i64, scratch_operands = 1 : i64, tpu.core_type = #tpu.core_type<tc>, window_params = [{transform_indices = @transform_0, window_bounds = array<i64: 1, 1, 18, 18, 8>}, {pipeline_mode = #tpu.pipeline_mode<synchronous>, transform_indices = @transform_1, window_bounds = array<i64: 72, 8>}, {pipeline_mode = #tpu.pipeline_mode<synchronous>, transform_indices = @transform_2, window_bounds = array<i64: 72, 8>}, {pipeline_mode = #tpu.pipeline_mode<synchronous>, transform_indices = @transform_3, window_bounds = array<i64: 1, 8>}, {pipeline_mode = #tpu.pipeline_mode<synchronous>, transform_indices = @transform_4, window_bounds = array<i64: 1, 8>}, {transform_indices = @transform_5, window_bounds = array<i64: 1, 16, 16, 8>}, {transform_indices = @transform_6, window_bounds = array<i64: 1, 16, 16, 8>}]} {
    %c0 = arith.constant 0 : index
    %c0_0 = arith.constant 0 : index
    %c0_1 = arith.constant 0 : index
    %c0_2 = arith.constant 0 : index
    %c0_3 = arith.constant 0 : index
    %0 = vector.load %arg1[%c0, %c0_0, %c0_1, %c0_2, %c0_3] : memref<1x1x18x18x8xf32, #tpu.memory_space<vmem>>, vector<1x1x16x16x8xf32>
    %1 = vector.shape_cast %0 : vector<1x1x16x16x8xf32> to vector<16x16x8xf32>
    %2 = vector.shape_cast %1 : vector<16x16x8xf32> to vector<256x8xf32>
    %c0_4 = arith.constant 0 : index
    %c0_5 = arith.constant 0 : index
    %c0_6 = arith.constant 0 : index
    %c1 = arith.constant 1 : index
    %c0_7 = arith.constant 0 : index
    %3 = vector.load %arg1[%c0_4, %c0_5, %c0_6, %c1, %c0_7] : memref<1x1x18x18x8xf32, #tpu.memory_space<vmem>>, vector<1x1x16x16x8xf32>
    %4 = vector.shape_cast %3 : vector<1x1x16x16x8xf32> to vector<16x16x8xf32>
    %5 = vector.shape_cast %4 : vector<16x16x8xf32> to vector<256x8xf32>
    %c0_8 = arith.constant 0 : index
    %c0_9 = arith.constant 0 : index
    %c0_10 = arith.constant 0 : index
    %c2 = arith.constant 2 : index
    %c0_11 = arith.constant 0 : index
    %6 = vector.load %arg1[%c0_8, %c0_9, %c0_10, %c2, %c0_11] : memref<1x1x18x18x8xf32, #tpu.memory_space<vmem>>, vector<1x1x16x16x8xf32>
    %7 = vector.shape_cast %6 : vector<1x1x16x16x8xf32> to vector<16x16x8xf32>
    %8 = vector.shape_cast %7 : vector<16x16x8xf32> to vector<256x8xf32>
    %c0_12 = arith.constant 0 : index
    %c0_13 = arith.constant 0 : index
    %c1_14 = arith.constant 1 : index
    %c0_15 = arith.constant 0 : index
    %c0_16 = arith.constant 0 : index
    %9 = vector.load %arg1[%c0_12, %c0_13, %c1_14, %c0_15, %c0_16] : memref<1x1x18x18x8xf32, #tpu.memory_space<vmem>>, vector<1x1x16x16x8xf32>
    %10 = vector.shape_cast %9 : vector<1x1x16x16x8xf32> to vector<16x16x8xf32>
    %11 = vector.shape_cast %10 : vector<16x16x8xf32> to vector<256x8xf32>
    %c0_17 = arith.constant 0 : index
    %c0_18 = arith.constant 0 : index
    %c1_19 = arith.constant 1 : index
    %c1_20 = arith.constant 1 : index
    %c0_21 = arith.constant 0 : index
    %12 = vector.load %arg1[%c0_17, %c0_18, %c1_19, %c1_20, %c0_21] : memref<1x1x18x18x8xf32, #tpu.memory_space<vmem>>, vector<1x1x16x16x8xf32>
    %13 = vector.shape_cast %12 : vector<1x1x16x16x8xf32> to vector<16x16x8xf32>
    %14 = vector.shape_cast %13 : vector<16x16x8xf32> to vector<256x8xf32>
    %c0_22 = arith.constant 0 : index
    %c0_23 = arith.constant 0 : index
    %c1_24 = arith.constant 1 : index
    %c2_25 = arith.constant 2 : index
    %c0_26 = arith.constant 0 : index
    %15 = vector.load %arg1[%c0_22, %c0_23, %c1_24, %c2_25, %c0_26] : memref<1x1x18x18x8xf32, #tpu.memory_space<vmem>>, vector<1x1x16x16x8xf32>
    %16 = vector.shape_cast %15 : vector<1x1x16x16x8xf32> to vector<16x16x8xf32>
    %17 = vector.shape_cast %16 : vector<16x16x8xf32> to vector<256x8xf32>
    %c0_27 = arith.constant 0 : index
    %c0_28 = arith.constant 0 : index
    %c2_29 = arith.constant 2 : index
    %c0_30 = arith.constant 0 : index
    %c0_31 = arith.constant 0 : index
    %18 = vector.load %arg1[%c0_27, %c0_28, %c2_29, %c0_30, %c0_31] : memref<1x1x18x18x8xf32, #tpu.memory_space<vmem>>, vector<1x1x16x16x8xf32>
    %19 = vector.shape_cast %18 : vector<1x1x16x16x8xf32> to vector<16x16x8xf32>
    %20 = vector.shape_cast %19 : vector<16x16x8xf32> to vector<256x8xf32>
    %c0_32 = arith.constant 0 : index
    %c0_33 = arith.constant 0 : index
    %c2_34 = arith.constant 2 : index
    %c1_35 = arith.constant 1 : index
    %c0_36 = arith.constant 0 : index
    %21 = vector.load %arg1[%c0_32, %c0_33, %c2_34, %c1_35, %c0_36] : memref<1x1x18x18x8xf32, #tpu.memory_space<vmem>>, vector<1x1x16x16x8xf32>
    %22 = vector.shape_cast %21 : vector<1x1x16x16x8xf32> to vector<16x16x8xf32>
    %23 = vector.shape_cast %22 : vector<16x16x8xf32> to vector<256x8xf32>
    %c0_37 = arith.constant 0 : index
    %c0_38 = arith.constant 0 : index
    %c2_39 = arith.constant 2 : index
    %c2_40 = arith.constant 2 : index
    %c0_41 = arith.constant 0 : index
    %24 = vector.load %arg1[%c0_37, %c0_38, %c2_39, %c2_40, %c0_41] : memref<1x1x18x18x8xf32, #tpu.memory_space<vmem>>, vector<1x1x16x16x8xf32>
    %25 = vector.shape_cast %24 : vector<1x1x16x16x8xf32> to vector<16x16x8xf32>
    %26 = vector.shape_cast %25 : vector<16x16x8xf32> to vector<256x8xf32>
    %27 = tpu.concatenate %2, %5, %8, %11, %14, %17, %20, %23, %26 in 1 : vector<256x8xf32>, vector<256x8xf32>, vector<256x8xf32>, vector<256x8xf32>, vector<256x8xf32>, vector<256x8xf32>, vector<256x8xf32>, vector<256x8xf32>, vector<256x8xf32> -> vector<256x72xf32>
    %28 = arith.truncf %27 : vector<256x72xf32> to vector<256x72xbf16>
    %c0_42 = arith.constant 0 : index
    %c0_43 = arith.constant 0 : index
    %29 = vector.load %arg2[%c0_42, %c0_43] : memref<72x8xbf16, #tpu.memory_space<vmem>>, vector<72x8xbf16>
    %cst = arith.constant dense<0.000000e+00> : vector<256x8xf32>
    %30 = tpu.matmul %28, %29, %cst {dimension_numbers = #tpu.dot_dimension_numbers<[1], [0], [0], [1], [0, 0, 1, 1], [], []>} : vector<256x72xbf16>, vector<72x8xbf16>, vector<256x8xf32> -> vector<256x8xf32>
    %c0_44 = arith.constant 0 : index
    %c0_45 = arith.constant 0 : index
    %31 = vector.load %arg4[%c0_44, %c0_45] : memref<1x8xf32, #tpu.memory_space<vmem>>, vector<1x8xf32>
    %32 = vector.broadcast %31 : vector<1x8xf32> to vector<256x8xf32>
    %33 = arith.addf %30, %32 : vector<256x8xf32>
    %cst_46 = arith.constant 0.000000e+00 : f32
    %34 = vector.broadcast %cst_46 : f32 to vector<256x8xf32>
    %35 = arith.maximumf %33, %34 : vector<256x8xf32>
    %cst_47 = arith.constant 0.000000e+00 : f32
    %36 = vector.broadcast %cst_47 : f32 to vector<1x18x8xf32>
    %cst_48 = arith.constant 0.000000e+00 : f32
    %37 = vector.broadcast %cst_48 : f32 to vector<18x1x8xf32>
    %c0_49 = arith.constant 0 : index
    %c0_50 = arith.constant 0 : index
    %c0_51 = arith.constant 0 : index
    %38 = vector.load %arg8[%c0_49, %c0_50, %c0_51] : memref<18x18x8xf32, #tpu.memory_space<vmem>>, vector<1x18x8xf32>
    tpu.vector_store %arg8[%c0_49, %c0_50, %c0_51], %36 {strides = array<i32>} : memref<18x18x8xf32, #tpu.memory_space<vmem>>, vector<1x18x8xf32>,
    %c17 = arith.constant 17 : index
    %c0_52 = arith.constant 0 : index
    %c0_53 = arith.constant 0 : index
    %39 = vector.load %arg8[%c17, %c0_52, %c0_53] : memref<18x18x8xf32, #tpu.memory_space<vmem>>, vector<1x18x8xf32>
    tpu.vector_store %arg8[%c17, %c0_52, %c0_53], %36 {strides = array<i32>} : memref<18x18x8xf32, #tpu.memory_space<vmem>>, vector<1x18x8xf32>,
    %c0_54 = arith.constant 0 : index
    %c0_55 = arith.constant 0 : index
    %c0_56 = arith.constant 0 : index
    %40 = vector.load %arg8[%c0_54, %c0_55, %c0_56] : memref<18x18x8xf32, #tpu.memory_space<vmem>>, vector<18x1x8xf32>
    tpu.vector_store %arg8[%c0_54, %c0_55, %c0_56], %37 {strides = array<i32>} : memref<18x18x8xf32, #tpu.memory_space<vmem>>, vector<18x1x8xf32>,
    %c0_57 = arith.constant 0 : index
    %c17_58 = arith.constant 17 : index
    %c0_59 = arith.constant 0 : index
    %41 = vector.load %arg8[%c0_57, %c17_58, %c0_59] : memref<18x18x8xf32, #tpu.memory_space<vmem>>, vector<18x1x8xf32>
    tpu.vector_store %arg8[%c0_57, %c17_58, %c0_59], %37 {strides = array<i32>} : memref<18x18x8xf32, #tpu.memory_space<vmem>>, vector<18x1x8xf32>,
    %42 = vector.shape_cast %35 : vector<256x8xf32> to vector<16x16x8xf32>
    %c1_60 = arith.constant 1 : index
    %c1_61 = arith.constant 1 : index
    %c0_62 = arith.constant 0 : index
    %43 = vector.load %arg8[%c1_60, %c1_61, %c0_62] : memref<18x18x8xf32, #tpu.memory_space<vmem>>, vector<16x16x8xf32>
    tpu.vector_store %arg8[%c1_60, %c1_61, %c0_62], %42 {strides = array<i32>} : memref<18x18x8xf32, #tpu.memory_space<vmem>>, vector<16x16x8xf32>,
    %c0_63 = arith.constant 0 : index
    %c0_64 = arith.constant 0 : index
    %c0_65 = arith.constant 0 : index
    %44 = vector.load %arg8[%c0_63, %c0_64, %c0_65] : memref<18x18x8xf32, #tpu.memory_space<vmem>>, vector<16x16x8xf32>
    %45 = vector.shape_cast %44 : vector<16x16x8xf32> to vector<256x8xf32>
    %c0_66 = arith.constant 0 : index
    %c1_67 = arith.constant 1 : index
    %c0_68 = arith.constant 0 : index
    %46 = vector.load %arg8[%c0_66, %c1_67, %c0_68] : memref<18x18x8xf32, #tpu.memory_space<vmem>>, vector<16x16x8xf32>
    %47 = vector.shape_cast %46 : vector<16x16x8xf32> to vector<256x8xf32>
    %c0_69 = arith.constant 0 : index
    %c2_70 = arith.constant 2 : index
    %c0_71 = arith.constant 0 : index
    %48 = vector.load %arg8[%c0_69, %c2_70, %c0_71] : memref<18x18x8xf32, #tpu.memory_space<vmem>>, vector<16x16x8xf32>
    %49 = vector.shape_cast %48 : vector<16x16x8xf32> to vector<256x8xf32>
    %c1_72 = arith.constant 1 : index
    %c0_73 = arith.constant 0 : index
    %c0_74 = arith.constant 0 : index
    %50 = vector.load %arg8[%c1_72, %c0_73, %c0_74] : memref<18x18x8xf32, #tpu.memory_space<vmem>>, vector<16x16x8xf32>
    %51 = vector.shape_cast %50 : vector<16x16x8xf32> to vector<256x8xf32>
    %c1_75 = arith.constant 1 : index
    %c1_76 = arith.constant 1 : index
    %c0_77 = arith.constant 0 : index
    %52 = vector.load %arg8[%c1_75, %c1_76, %c0_77] : memref<18x18x8xf32, #tpu.memory_space<vmem>>, vector<16x16x8xf32>
    %53 = vector.shape_cast %52 : vector<16x16x8xf32> to vector<256x8xf32>
    %c1_78 = arith.constant 1 : index
    %c2_79 = arith.constant 2 : index
    %c0_80 = arith.constant 0 : index
    %54 = vector.load %arg8[%c1_78, %c2_79, %c0_80] : memref<18x18x8xf32, #tpu.memory_space<vmem>>, vector<16x16x8xf32>
    %55 = vector.shape_cast %54 : vector<16x16x8xf32> to vector<256x8xf32>
    %c2_81 = arith.constant 2 : index
    %c0_82 = arith.constant 0 : index
    %c0_83 = arith.constant 0 : index
    %56 = vector.load %arg8[%c2_81, %c0_82, %c0_83] : memref<18x18x8xf32, #tpu.memory_space<vmem>>, vector<16x16x8xf32>
    %57 = vector.shape_cast %56 : vector<16x16x8xf32> to vector<256x8xf32>
    %c2_84 = arith.constant 2 : index
    %c1_85 = arith.constant 1 : index
    %c0_86 = arith.constant 0 : index
    %58 = vector.load %arg8[%c2_84, %c1_85, %c0_86] : memref<18x18x8xf32, #tpu.memory_space<vmem>>, vector<16x16x8xf32>
    %59 = vector.shape_cast %58 : vector<16x16x8xf32> to vector<256x8xf32>
    %c2_87 = arith.constant 2 : index
    %c2_88 = arith.constant 2 : index
    %c0_89 = arith.constant 0 : index
    %60 = vector.load %arg8[%c2_87, %c2_88, %c0_89] : memref<18x18x8xf32, #tpu.memory_space<vmem>>, vector<16x16x8xf32>
    %61 = vector.shape_cast %60 : vector<16x16x8xf32> to vector<256x8xf32>
    %62 = tpu.concatenate %45, %47, %49, %51, %53, %55, %57, %59, %61 in 1 : vector<256x8xf32>, vector<256x8xf32>, vector<256x8xf32>, vector<256x8xf32>, vector<256x8xf32>, vector<256x8xf32>, vector<256x8xf32>, vector<256x8xf32>, vector<256x8xf32> -> vector<256x72xf32>
    %63 = arith.truncf %62 : vector<256x72xf32> to vector<256x72xbf16>
    %c0_90 = arith.constant 0 : index
    %c0_91 = arith.constant 0 : index
    %64 = vector.load %arg3[%c0_90, %c0_91] : memref<72x8xbf16, #tpu.memory_space<vmem>>, vector<72x8xbf16>
    %cst_92 = arith.constant dense<0.000000e+00> : vector<256x8xf32>
    %65 = tpu.matmul %63, %64, %cst_92 {dimension_numbers = #tpu.dot_dimension_numbers<[1], [0], [0], [1], [0, 0, 1, 1], [], []>} : vector<256x72xbf16>, vector<72x8xbf16>, vector<256x8xf32> -> vector<256x8xf32>
    %c0_93 = arith.constant 0 : index
    %c0_94 = arith.constant 0 : index
    %66 = vector.load %arg5[%c0_93, %c0_94] : memref<1x8xf32, #tpu.memory_space<vmem>>, vector<1x8xf32>
    %67 = vector.broadcast %66 : vector<1x8xf32> to vector<256x8xf32>
    %68 = arith.addf %65, %67 : vector<256x8xf32>
    %c0_95 = arith.constant 0 : index
    %c0_96 = arith.constant 0 : index
    %c0_97 = arith.constant 0 : index
    %c0_98 = arith.constant 0 : index
    %69 = vector.load %arg6[%c0_95, %c0_96, %c0_97, %c0_98] : memref<1x16x16x8xf32, #tpu.memory_space<vmem>>, vector<1x16x16x8xf32>
    %70 = vector.shape_cast %69 : vector<1x16x16x8xf32> to vector<256x8xf32>
    %71 = arith.addf %68, %70 : vector<256x8xf32>
    %cst_99 = arith.constant 0.000000e+00 : f32
    %72 = vector.broadcast %cst_99 : f32 to vector<256x8xf32>
    %73 = arith.maximumf %71, %72 : vector<256x8xf32>
    %74 = vector.shape_cast %73 : vector<256x8xf32> to vector<1x16x16x8xf32>
    %c0_100 = arith.constant 0 : index
    %c0_101 = arith.constant 0 : index
    %c0_102 = arith.constant 0 : index
    %c0_103 = arith.constant 0 : index
    %75 = vector.load %arg7[%c0_100, %c0_101, %c0_102, %c0_103] : memref<1x16x16x8xf32, #tpu.memory_space<vmem>>, vector<1x16x16x8xf32>
    tpu.vector_store %arg7[%c0_100, %c0_101, %c0_102, %c0_103], %74 {strides = array<i32>} : memref<1x16x16x8xf32, #tpu.memory_space<vmem>>, vector<1x16x16x8xf32>,
    return
  }
  func.func @transform_0(%arg0: i32) -> (i32, i32, i32, i32, i32) {
    %c0_i32 = arith.constant 0 : i32
    %c0_i32_0 = arith.constant 0 : i32
    %c0_i32_1 = arith.constant 0 : i32
    %c0_i32_2 = arith.constant 0 : i32
    %c0_i32_3 = arith.constant 0 : i32
    return %c0_i32, %arg0, %c0_i32_0, %c0_i32_1, %c0_i32_2 : i32, i32, i32, i32, i32
  }
  func.func @transform_1(%arg0: i32) -> (i32, i32) {
    %c0_i32 = arith.constant 0 : i32
    %c0_i32_0 = arith.constant 0 : i32
    %c0_i32_1 = arith.constant 0 : i32
    return %c0_i32, %c0_i32_0 : i32, i32
  }
  func.func @transform_2(%arg0: i32) -> (i32, i32) {
    %c0_i32 = arith.constant 0 : i32
    %c0_i32_0 = arith.constant 0 : i32
    %c0_i32_1 = arith.constant 0 : i32
    return %c0_i32, %c0_i32_0 : i32, i32
  }
  func.func @transform_3(%arg0: i32) -> (i32, i32) {
    %c0_i32 = arith.constant 0 : i32
    %c0_i32_0 = arith.constant 0 : i32
    %c0_i32_1 = arith.constant 0 : i32
    return %c0_i32, %c0_i32_0 : i32, i32
  }
  func.func @transform_4(%arg0: i32) -> (i32, i32) {
    %c0_i32 = arith.constant 0 : i32
    %c0_i32_0 = arith.constant 0 : i32
    %c0_i32_1 = arith.constant 0 : i32
    return %c0_i32, %c0_i32_0 : i32, i32
  }
  func.func @transform_5(%arg0: i32) -> (i32, i32, i32, i32) {
    %c0_i32 = arith.constant 0 : i32
    %c0_i32_0 = arith.constant 0 : i32
    %c0_i32_1 = arith.constant 0 : i32
    %c0_i32_2 = arith.constant 0 : i32
    return %arg0, %c0_i32, %c0_i32_0, %c0_i32_1 : i32, i32, i32, i32
  }
  func.func @transform_6(%arg0: i32) -> (i32, i32, i32, i32) {
    %c0_i32 = arith.constant 0 : i32
    %c0_i32_0 = arith.constant 0 : i32
    %c0_i32_1 = arith.constant 0 : i32
    %c0_i32_2 = arith.constant 0 : i32
    return %arg0, %c0_i32, %c0_i32_0, %c0_i32_1 : i32, i32, i32, i32
  }
}

</mosaic_0001>

<bundles_post_ra>
// kernel: tpu_custom_call.1
= control target key start
LH: loop header
LB: loop body
LE: loop exit
PB: predicated region body
PF: predicated region fallthrough
CT: control target
= control target key end

     0   :  { %s5771_s21 = smov 0   ;;  %s8619_s0 = inlined_call_operand.vmem [shape: f32[1,2,18,18,8], index: 0, kind: input, shape index: {}]   ;;  %s8620_s1 = inlined_call_operand.vmem [shape: bf16[72,8], index: 1, kind: input, shape index: {}]   ;;  %s8621_s2 = inlined_call_operand.vmem [shape: bf16[72,8], index: 2, kind: input, shape index: {}]   ;;  %s8622_s3 = inlined_call_operand.vmem [shape: f32[1,8], index: 3, kind: input, shape index: {}]   ;;  %s8623_s4 = inlined_call_operand.vmem [shape: f32[1,8], index: 4, kind: input, shape index: {}]   ;;  %s8624_s5 = inlined_call_operand.vmem [shape: f32[2,16,16,8], index: 5, kind: input, shape index: {}]   ;;  %s8625_s6 = inlined_call_operand.vmem [shape: f32[2,16,16,8], index: 6, kind: output, shape index: {}]  }
   0x1 LB: > { %s4119_s22 = sadd.s32 4294967295, %s5725_s21   ;;  %p4123_p0 = scmp.ge.s32.totalorder %s5725_s21, 1  ;;  %s5725_s21 = sphi %s5771_s21, %s16_s21  }
   0x2   : > { %p222_p1 = scmp.lt.s32.totalorder %s5725_s21, 3 }
   0x4   : > { %p223_p2 = pnand %p4123_p0, %p222_p1 }
   0x6   : > { %226 = sbr.rel (%p223_p2) target bundleno = 1262 (0x4ee), region = 44 }
   0xb   : > { %p257_p3 = scmp.lt.s32.totalorder %s4119_s22, 1  ;;  %s5727_s27 = smov 8   ;;  %vm1956_vm0 = vcmask 1043456   ;;  %vm1587_vm1 = vcmask 64512   ;;  %vm1620_vm2 = vcmask 130048   ;;  %vm1653_vm3 = vcmask 195584  }
   0xc   : > { %s5728_s28 = smov 16   ;;  %s5729_s29 = smov 24   ;;  %vm1686_vm4 = vcmask 261120   ;;  %vm1719_vm5 = vcmask 326656   ;;  %vm1752_vm6 = vcmask 392192   ;;  %vm1785_vm7 = vcmask 457728  }
   0xd   : > { %s8923_s22 = smov (!%p257_p3, %s4119_s22), 1  ;;  %s5730_s30 = smov 32   ;;  %vm1818_vm8 = vcmask 523264   ;;  %vm1907_vm9 = vcmask 588800   ;;  %vm2089_vm10 = vcmask 57344   ;;  %vm2083_vm11 = vcmask 58368  }
   0xe   : > { %s4407_s23 = smul.u32 432, %s8923_s22  ;;  %s5731_s7 = smov 40  }
   0xf   : > { %s5732_s8 = smov 48   ;;  %s5733_s9 = smov 56  }
  0x10   : > { %s5785_s26 = scalar_lea.vmem %s8619_s0, %s4407_s23  ;;  %s5734_s10 = smov 64  }
  0x11   : > { %v313_v0 = vld [vmem:[%s5785_s26 + $0x61] sm:$0xff]  ;;  %v314_v1 = vld [vmem:[%s5785_s26 + $0x69] sm:$0xff]  ;;  %v309_v2 = vld [vmem:[%s5785_s26 + $0x31] sm:$0xff] }
  0x12   : > { %v5790_v3 = vpack.i.bf16 %v314_v1, %v313_v0  ;;  %v310_v4 = vld [vmem:[%s5785_s26 + $0x39] sm:$0xff]  ;;  %v305_v5 = vld [vmem:[%s5785_s26 + $0x1] sm:$0xff]  ;;  %v306_v6 = vld [vmem:[%s5785_s26 + $0x9] sm:$0xff] }
  0x13   : > { %v5795_v7 = vpack.i.bf16 %v310_v4, %v309_v2  ;;  %v4425_v8 = vpack.i.bf16 %v306_v6, %v305_v5  ;;  %v315_v9 = vld [vmem:[%s5785_s26 + $0x79] sm:$0xff]  ;;  %v316_v10 = vld [vmem:[%s5785_s26 + $0x81] sm:$0xff]  ;;  %v311_v11 = vld [vmem:[%s5785_s26 + $0x49] sm:$0xff] }
  0x14   : > { %4446 = vrot.lane.b32.xlu2 %v5790_v3, %s5727_s27  ;;  %v312_v12 = vld [vmem:[%s5785_s26 + $0x51] sm:$0xff]  ;;  %v307_v13 = vld [vmem:[%s5785_s26 + $0x19] sm:$0xff]  ;;  %v308_v14 = vld [vmem:[%s5785_s26 + $0x21] sm:$0xff]  ;;  %v5808_v15 = vpack.i.bf16 %v316_v10, %v315_v9 }
  0x15   : > { %4436 = vrot.lane.b32.xlu1 %v5795_v7, %s5727_s27  ;;  %4426 = vrot.lane.b32.xlu0 %v4425_v8, %s5727_s27  ;;  %v5810_v16 = vpack.i.bf16 %v312_v12, %v311_v11  ;;  %v5812_v17 = vpack.i.bf16 %v308_v14, %v307_v13  ;;  %v321_v18 = vld [vmem:[%s5785_s26 + $0xc1] sm:$0xff]  ;;  %v322_v19 = vld [vmem:[%s5785_s26 + $0xc9] sm:$0xff] }
  0x16   : > { %v319_v20 = vld [vmem:[%s5785_s26 + $0xa9] sm:$0xff]  ;;  %v320_v21 = vld [vmem:[%s5785_s26 + $0xb1] sm:$0xff]  ;;  %v318_v23 = vld [vmem:[%s5785_s26 + $0x99] sm:$0xff]  ;;  %v5826_v24 = vpack.i.bf16 %v322_v19, %v321_v18 }
  0x17   : > { %v317_v22 = vld [vmem:[%s5785_s26 + $0x91] sm:$0xff]  ;;  %v5828_v25 = vpack.i.bf16 %v320_v21, %v319_v20  ;;  %v327_v27 = vld [vmem:[%s5785_s26 + $0x109] sm:$0xff]  ;;  %v326_v30 = vld [vmem:[%s5785_s26 + $0xf9] sm:$0xff] }
  0x18   : > { %v5830_v26 = vpack.i.bf16 %v318_v23, %v317_v22  ;;  %v328_v28 = vld [vmem:[%s5785_s26 + $0x111] sm:$0xff]  ;;  %v323_v31 = vld [vmem:[%s5785_s26 + $0xd9] sm:$0xff]  ;;  %v324_v32 = vld [vmem:[%s5785_s26 + $0xe1] sm:$0xff] }
  0x19   : > { %v325_v29 = vld [vmem:[%s5785_s26 + $0xf1] sm:$0xff]  ;;  %v5844_v33 = vpack.i.bf16 %v328_v28, %v327_v27  ;;  %v5848_v35 = vpack.i.bf16 %v324_v32, %v323_v31  ;;  %v334_v37 = vld [vmem:[%s5785_s26 + $0x159] sm:$0xff]  ;;  %v332_v39 = vld [vmem:[%s5785_s26 + $0x141] sm:$0xff] }
  0x1a   : > { %v5846_v34 = vpack.i.bf16 %v326_v30, %v325_v29  ;;  %v333_v36 = vld [vmem:[%s5785_s26 + $0x151] sm:$0xff]  ;;  %v331_v38 = vld [vmem:[%s5785_s26 + $0x139] sm:$0xff]  ;;  %v329_v40 = vld [vmem:[%s5785_s26 + $0x121] sm:$0xff] }
  0x1b   : > { %v330_v41 = vld [vmem:[%s5785_s26 + $0x129] sm:$0xff]  ;;  %v5862_v42 = vpack.i.bf16 %v334_v37, %v333_v36  ;;  %v5864_v43 = vpack.i.bf16 %v332_v39, %v331_v38  ;;  %v339_v45 = vld [vmem:[%s5785_s26 + $0x1a] sm:$0xff]  ;;  %v336_v50 = vld [vmem:[%s5785_s26 + $0x171] sm:$0xff] }
  0x1c   : > { %4451 = vrot.lane.b32.xlu2 %v5808_v15, %s5727_s27  ;;  %v5866_v44 = vpack.i.bf16 %v330_v41, %v329_v40  ;;  %v340_v46 = vld [vmem:[%s5785_s26 + $0x22] sm:$0xff]  ;;  %v338_v48 = vld [vmem:[%s5785_s26 + $0xa] sm:$0xff]  ;;  %v344_v57 = vld [vmem:[%s5785_s26 + $0x52] sm:$0xff] }
  0x1d   : > { %4441 = vrot.lane.b32.xlu1 %v5810_v16, %s5727_s27  ;;  %4431 = vrot.lane.b32.xlu0 %v5812_v17, %s5727_s27  ;;  %v337_v47 = vld [vmem:[%s5785_s26 + $0x2] sm:$0xff]  ;;  %v5880_v51 = vpack.i.bf16 %v340_v46, %v339_v45  ;;  %v346_v55 = vld [vmem:[%s5785_s26 + $0x6a] sm:$0xff] }
  0x1e   : > { %v335_v49 = vld [vmem:[%s5785_s26 + $0x169] sm:$0xff]  ;;  %v4505_v52 = vpack.i.bf16 %v338_v48, %v337_v47  ;;  %v341_v58 = vld [vmem:[%s5785_s26 + $0x32] sm:$0xff]  ;;  %v342_v59 = vld [vmem:[%s5785_s26 + $0x3a] sm:$0xff] }
  0x1f   : > { %v5882_v53 = vpack.i.bf16 %v336_v50, %v335_v49  ;;  %v345_v54 = vld [vmem:[%s5785_s26 + $0x62] sm:$0xff]  ;;  %v343_v56 = vld [vmem:[%s5785_s26 + $0x4a] sm:$0xff]  ;;  %v5899_v62 = vpack.i.bf16 %v342_v59, %v341_v58  ;;  %v352_v0 = vld [vmem:[%s5785_s26 + $0xb2] sm:$0xff] }
  0x20   : > { %v5895_v60 = vpack.i.bf16 %v346_v55, %v345_v54  ;;  %v5897_v61 = vpack.i.bf16 %v344_v57, %v343_v56  ;;  %v351_v63 = vld [vmem:[%s5785_s26 + $0xaa] sm:$0xff]  ;;  %v349_v1 = vld [vmem:[%s5785_s26 + $0x92] sm:$0xff]  ;;  %v350_v2 = vld [vmem:[%s5785_s26 + $0x9a] sm:$0xff] }
  0x21   : > { %v347_v4 = vld [vmem:[%s5785_s26 + $0x7a] sm:$0xff]  ;;  %v348_v5 = vld [vmem:[%s5785_s26 + $0x82] sm:$0xff]  ;;  %v5913_v6 = vpack.i.bf16 %v352_v0, %v351_v63  ;;  %v5915_v8 = vpack.i.bf16 %v350_v2, %v349_v1  ;;  %v357_v10 = vld [vmem:[%s5785_s26 + $0xf2] sm:$0xff] }
  0x22   : > { %v5917_v9 = vpack.i.bf16 %v348_v5, %v347_v4  ;;  %v358_v11 = vld [vmem:[%s5785_s26 + $0xfa] sm:$0xff]  ;;  %v356_v13 = vld [vmem:[%s5785_s26 + $0xe2] sm:$0xff]  ;;  %v354_v18 = vld [vmem:[%s5785_s26 + $0xca] sm:$0xff] }
  0x23   : > { %v355_v12 = vld [vmem:[%s5785_s26 + $0xda] sm:$0xff]  ;;  %v353_v14 = vld [vmem:[%s5785_s26 + $0xc2] sm:$0xff]  ;;  %v5931_v19 = vpack.i.bf16 %v358_v11, %v357_v10  ;;  %v362_v28 = vld [vmem:[%s5785_s26 + $0x12a] sm:$0xff] }
  0x24   : > { %4466 = vrot.lane.b32.xlu2 %v5826_v24, %s5727_s27  ;;  %v5933_v20 = vpack.i.bf16 %v356_v13, %v355_v12  ;;  %v5935_v21 = vpack.i.bf16 %v354_v18, %v353_v14  ;;  %v363_v22 = vld [vmem:[%s5785_s26 + $0x13a] sm:$0xff]  ;;  %v364_v23 = vld [vmem:[%s5785_s26 + $0x142] sm:$0xff]  ;;  %v359_v29 = vld [vmem:[%s5785_s26 + $0x10a] sm:$0xff] }
  0x25   : > { %4461 = vrot.lane.b32.xlu1 %v5828_v25, %s5727_s27  ;;  %4456 = vrot.lane.b32.xlu0 %v5830_v26, %s5727_s27  ;;  %v361_v27 = vld [vmem:[%s5785_s26 + $0x122] sm:$0xff]  ;;  %v360_v30 = vld [vmem:[%s5785_s26 + $0x112] sm:$0xff]  ;;  %v5949_v31 = vpack.i.bf16 %v364_v23, %v363_v22 }
  0x26   : > { %v5951_v32 = vpack.i.bf16 %v362_v28, %v361_v27  ;;  %v5953_v36 = vpack.i.bf16 %v360_v30, %v359_v29  ;;  %v5958_v37 = vld [vmem:[%s5785_s26 + $0x18] sm:$0xff]  ;;  %v5965_v38 = vld [vmem:[%s5785_s26 + $0x20] sm:$0xff]  ;;  %v367_v39 = vld [vmem:[%s5785_s26 + $0x16a] sm:$0xff] }
  0x27   : > { %8725 = vst [vmem:[#allocation3_spill] sm:$0xff] %v5958_v37  ;;  %v368_v40 = vld [vmem:[%s5785_s26 + $0x172] sm:$0xff]  ;;  %v366_v45 = vld [vmem:[%s5785_s26 + $0x15a] sm:$0xff]  ;;  %v4585_v46 = vpack.i.bf16 %v5965_v38, %v5958_v37  ;;  %v5986_v50 = vld [vmem:[%s5785_s26 + $0x68] sm:$0xff] }
  0x28   : > { %8726 = vst [vmem:[#allocation4_spill] sm:$0xff] %v5965_v38  ;;  %v365_v41 = vld [vmem:[%s5785_s26 + $0x152] sm:$0xff]  ;;  %v5973_v47 = vpack.i.bf16 %v368_v40, %v367_v39  ;;  %v5979_v49 = vld [vmem:[%s5785_s26 + $0x60] sm:$0xff]  ;;  %v4141_v63 = vld [vmem:[%s5785_s26 + $0xa8] sm:$0xff] }
  0x29   : > { %v5975_v48 = vpack.i.bf16 %v366_v45, %v365_v41  ;;  %v5992_v54 = vld [vmem:[%s5785_s26 + $0x50] sm:$0xff]  ;;  %v5998_v56 = vld [vmem:[%s5785_s26 + $0x38] sm:$0xff]  ;;  %v6002_v57 = vpack.i.bf16 %v5986_v50, %v5979_v49  ;;  %v6028_v10 = vld [vmem:[%s5785_s26 + $0x80] sm:$0xff] }
  0x2a   : > { %8728 = vst [vmem:[#allocation6_spill] sm:$0xff] %v5992_v54  ;;  %v5995_v55 = vld [vmem:[%s5785_s26 + $0x30] sm:$0xff]  ;;  %v4140_v4 = vld [vmem:[%s5785_s26 + $0x98] sm:$0xff]  ;;  %v6052_v27 = vld [vmem:[%s5785_s26 + $0xe0] sm:$0xff] }
  0x2b   : > { %8729 = vst [vmem:[#allocation7_spill] sm:$0xff] %v5995_v55  ;;  %v6010_v59 = vpack.i.bf16 %v5998_v56, %v5995_v55  ;;  %v4142_v0 = vld [vmem:[%s5785_s26 + $0xb0] sm:$0xff]  ;;  %v6025_v5 = vld [vmem:[%s5785_s26 + $0x78] sm:$0xff]  ;;  %v6055_v28 = vld [vmem:[%s5785_s26 + $0xc0] sm:$0xff] }
  0x2c   : > { %4481 = vrot.lane.b32.xlu2 %v5844_v33, %s5727_s27  ;;  %8730 = vst [vmem:[#allocation8_spill] sm:$0xff] %v5998_v56  ;;  %v4139_v1 = vld [vmem:[%s5785_s26 + $0x90] sm:$0xff]  ;;  %v6030_v11 = vpack.i.bf16 %v4142_v0, %v4141_v63  ;;  %v6036_v13 = vpack.i.bf16 %v6028_v10, %v6025_v5  ;;  %v4148_v18 = vld [vmem:[%s5785_s26 + $0xf8] sm:$0xff]  ;;  %v6058_v29 = vld [vmem:[%s5785_s26 + $0xc8] sm:$0xff] }
  0x2d   : > { %4476 = vrot.lane.b32.xlu1 %v5846_v34, %s5727_s27  ;;  %4471 = vrot.lane.b32.xlu0 %v5848_v35, %s5727_s27  ;;  %v6032_v12 = vpack.i.bf16 %v4140_v4, %v4139_v1  ;;  %v4147_v14 = vld [vmem:[%s5785_s26 + $0xf0] sm:$0xff]  ;;  %v6047_v22 = vld [vmem:[%s5785_s26 + $0xd8] sm:$0xff]  ;;  %8732 = vst [vmem:[#allocation10_spill] sm:$0xff] %v6052_v27  ;;  %v6068_v40 = vpack.i.bf16 %v6058_v29, %v6055_v28 }
  0x2e   : > { %8731 = vst [vmem:[#allocation9_spill] sm:$0xff] %v6047_v22  ;;  %v6060_v30 = vpack.i.bf16 %v4148_v18, %v4147_v14  ;;  %v6064_v39 = vpack.i.bf16 %v6052_v27, %v6047_v22  ;;  %v4153_v41 = vld [vmem:[%s5785_s26 + $0x138] sm:$0xff]  ;;  %v4154_v45 = vld [vmem:[%s5785_s26 + $0x140] sm:$0xff]  ;;  %v4152_v0 = vld [vmem:[%s5785_s26 + $0x128] sm:$0xff] }
  0x2f   : > { %8733 = vst [vmem:[#allocation11_spill] sm:$0xff] %v6058_v29  ;;  %v6083_v1 = vld [vmem:[%s5785_s26 + $0x108] sm:$0xff]  ;;  %v6086_v4 = vld [vmem:[%s5785_s26 + $0x110] sm:$0xff]  ;;  %v6088_v14 = vpack.i.bf16 %v4154_v45, %v4153_v41  ;;  %v4159_v22 = vld [vmem:[%s5785_s26 + $0x180] sm:$0xff] }
  0x30   : > { %8734 = vst [vmem:[#allocation12_spill] sm:$0xff] %v6083_v1  ;;  %v6094_v27 = vpack.i.bf16 %v6086_v4, %v6083_v1  ;;  %v4160_v38 = vld [vmem:[%s5785_s26 + $0x188] sm:$0xff]  ;;  %v4158_v45 = vld [vmem:[%s5785_s26 + $0x170] sm:$0xff] }
  0x31   : > { %8735 = vst [vmem:[#allocation13_spill] sm:$0xff] %v6086_v4  ;;  %v4157_v37 = vld [vmem:[%s5785_s26 + $0x168] sm:$0xff]  ;;  %v6118_v56 = vpack.i.bf16 %v4160_v38, %v4159_v22 }
  0x32   : > { %v6120_v55 = vpack.i.bf16 %v4158_v45, %v4157_v37 }
  0x34   : > { %4496 = vrot.lane.b32.xlu2 %v5862_v42, %s5727_s27 }
  0x35   : > { %4491 = vrot.lane.b32.xlu1 %v5864_v43, %s5727_s27  ;;  %4486 = vrot.lane.b32.xlu0 %v5866_v44, %s5727_s27 }
  0x3c   : > { %4511 = vrot.lane.b32.xlu2 %v5880_v51, %s5728_s28 }
  0x3d   : > { %4506 = vrot.lane.b32.xlu1 %v4505_v52, %s5728_s28  ;;  %4501 = vrot.lane.b32.xlu0 %v5882_v53, %s5727_s27  ;;  %v5989_v52 = vld [vmem:[%s5785_s26 + $0x48] sm:$0xff] }
  0x3e   : > { %8727 = vst [vmem:[#allocation5_spill] sm:$0xff] %v5989_v52  ;;  %v6006_v58 = vpack.i.bf16 %v5992_v54, %v5989_v52 }
  0x44   : > { %4526 = vrot.lane.b32.xlu2 %v5895_v60, %s5728_s28 }
  0x45   : > { %4521 = vrot.lane.b32.xlu1 %v5897_v61, %s5728_s28  ;;  %4516 = vrot.lane.b32.xlu0 %v5899_v62, %s5728_s28 }
  0x4c   : > { %4541 = vrot.lane.b32.xlu2 %v5913_v6, %s5728_s28 }
  0x4d   : > { %4536 = vrot.lane.b32.xlu1 %v5915_v8, %s5728_s28  ;;  %4531 = vrot.lane.b32.xlu0 %v5917_v9, %s5728_s28 }
  0x54   : > { %4556 = vrot.lane.b32.xlu2 %v5931_v19, %s5728_s28 }
  0x55   : > { %4551 = vrot.lane.b32.xlu1 %v5933_v20, %s5728_s28  ;;  %4546 = vrot.lane.b32.xlu0 %v5935_v21, %s5728_s28 }
  0x5c   : > { %4571 = vrot.lane.b32.xlu2 %v5949_v31, %s5728_s28 }
  0x5d   : > { %4566 = vrot.lane.b32.xlu1 %v5951_v32, %s5728_s28  ;;  %4561 = vrot.lane.b32.xlu0 %v5953_v36, %s5728_s28 }
  0x64   : > { %4586 = vrot.lane.b32.xlu2 %v4585_v46, %s5729_s29  ;;  %v4151_v46 = vld [vmem:[%s5785_s26 + $0x120] sm:$0xff] }
  0x65   : > { %4581 = vrot.lane.b32.xlu1 %v5973_v47, %s5728_s28  ;;  %4576 = vrot.lane.b32.xlu0 %v5975_v48, %s5728_s28  ;;  %v6090_v18 = vpack.i.bf16 %v4152_v0, %v4151_v46  ;;  %v6109_v46 = vld [vmem:[%s5785_s26 + $0x150] sm:$0xff]  ;;  %v6112_v0 = vld [vmem:[%s5785_s26 + $0x158] sm:$0xff] }
  0x66   : > { %v6124_v4 = vpack.i.bf16 %v6112_v0, %v6109_v46 }
  0x6c   : > { %4601 = vrot.lane.b32.xlu2 %v6002_v57, %s5729_s29 }
  0x6d   : > { %4596 = vrot.lane.b32.xlu1 %v6006_v58, %s5729_s29  ;;  %4591 = vrot.lane.b32.xlu0 %v6010_v59, %s5729_s29 }
  0x6e   : > { %v6021_v2 = vpop.permute.xlu2 %4446 }
  0x74   : > { %4616 = vrot.lane.b32.xlu2 %v6030_v11, %s5729_s29 }
  0x75   : > { %4611 = vrot.lane.b32.xlu1 %v6032_v12, %s5729_s29  ;;  %4606 = vrot.lane.b32.xlu0 %v6036_v13, %s5729_s29 }
  0x76   : > { %v6049_v23 = vpop.permute.xlu2 %4451 }
  0x7c   : > { %4631 = vrot.lane.b32.xlu2 %v6060_v30, %s5729_s29 }
  0x7d   : > { %4626 = vrot.lane.b32.xlu1 %v6064_v39, %s5729_s29  ;;  %4621 = vrot.lane.b32.xlu0 %v6068_v40, %s5729_s29 }
  0x7e   : > { %v6079_v63 = vpop.permute.xlu2 %4466 }
  0x84   : > { %4646 = vrot.lane.b32.xlu2 %v6088_v14, %s5729_s29 }
  0x85   : > { %4641 = vrot.lane.b32.xlu1 %v6090_v18, %s5729_s29  ;;  %4636 = vrot.lane.b32.xlu0 %v6094_v27, %s5729_s29 }
  0x86   : > { %v6105_v41 = vpop.permute.xlu2 %4481 }
  0x87   : > { %v6114_v54 = vpop.permute.xlu1 %4436  ;;  %v6116_v52 = vpop.permute.xlu0 %4426 }
  0x8c   : > { %4661 = vrot.lane.b32.xlu2 %v6118_v56, %s5729_s29 }
  0x8d   : > { %4656 = vrot.lane.b32.xlu1 %v6120_v55, %s5729_s29  ;;  %4651 = vrot.lane.b32.xlu0 %v6124_v4, %s5729_s29 }
  0x8e   : > { %v6132_v1 = vpop.permute.xlu2 %4496 }
  0x8f   : > { %v6134_v29 = vpop.permute.xlu1 %4441  ;;  %v6136_v38 = vpop.permute.xlu0 %4431 }
  0x94   : > { %4676 = vrot.lane.b32.xlu2 %v5810_v16, %s5730_s30 }
  0x95   : > { %4671 = vrot.lane.b32.xlu1 %v5795_v7, %s5730_s30  ;;  %4666 = vrot.lane.b32.xlu0 %v5812_v17, %s5730_s30 }
  0x96   : > { %v6144_v37 = vpop.permute.xlu2 %4511 }
  0x97   : > { %v6146_v22 = vpop.permute.xlu1 %4461  ;;  %v6148_v45 = vpop.permute.xlu0 %4456 }
  0x98   : > { %8736 = vst [vmem:[#allocation14_spill] sm:$0xff] %v6146_v22 }
  0x99   : > { %8737 = vst [vmem:[#allocation15_spill] sm:$0xff] %v6148_v45 }
  0x9c   : > { %4691 = vrot.lane.b32.xlu2 %v5830_v26, %s5730_s30 }
  0x9d   : > { %4686 = vrot.lane.b32.xlu1 %v5808_v15, %s5730_s30  ;;  %4681 = vrot.lane.b32.xlu0 %v5790_v3, %s5730_s30 }
  0x9e   : > { %v6156_v16 = vpop.permute.xlu2 %4526 }
  0x9f   : > { %v6158_v7 = vpop.permute.xlu1 %4476  ;;  %v6160_v17 = vpop.permute.xlu0 %4471 }
  0xa4   : > { %4706 = vrot.lane.b32.xlu2 %v5848_v35, %s5730_s30 }
  0xa5   : > { %4701 = vrot.lane.b32.xlu1 %v5826_v24, %s5730_s30  ;;  %4696 = vrot.lane.b32.xlu0 %v5828_v25, %s5730_s30 }
  0xa6   : > { %v6168_v15 = vpop.permute.xlu2 %4541 }
  0xa7   : > { %8738 = vst [vmem:[#allocation16_spill] sm:$0xff] %v6168_v15  ;;  %v6170_v3 = vpop.permute.xlu1 %4491  ;;  %v6172_v26 = vpop.permute.xlu0 %4486  ;;  %v4192_v15 = vld [vmem:[%s5785_s26 + $0x189] sm:$0xff] }
  0xa8   : > { %8739 = vst [vmem:[#allocation17_spill] sm:$0xff] %v6170_v3 }
  0xa9   : > { %8740 = vst [vmem:[#allocation18_spill] sm:$0xff] %v6172_v26  ;;  %v4265_v26 = vld [vmem:[%s5785_s26 + $0x91] sm:$0xff] }
  0xac   : > { %4721 = vrot.lane.b32.xlu2 %v5866_v44, %s5730_s30 }
  0xad   : > { %4716 = vrot.lane.b32.xlu1 %v5844_v33, %s5730_s30  ;;  %4711 = vrot.lane.b32.xlu0 %v5846_v34, %s5730_s30  ;;  %v4191_v33 = vld [vmem:[%s5785_s26 + $0x181] sm:$0xff] }
  0xae   : > { %v6180_v24 = vpop.permute.xlu2 %4556  ;;  %v6200_v45 = vpack.i.bf16 %v4192_v15, %v4191_v33  ;;  %v4224_v33 = vld [vmem:[%s5785_s26 + $0x18a] sm:$0xff] }
  0xaf   : > { %8741 = vst [vmem:[#allocation19_spill] sm:$0xff] %v6180_v24  ;;  %v6182_v35 = vpop.permute.xlu1 %4506  ;;  %v6184_v25 = vpop.permute.xlu0 %4501  ;;  %v4271_v24 = vld [vmem:[%s5785_s26 + $0xd9] sm:$0xff] }
  0xb0   : > { %8742 = vst [vmem:[#allocation20_spill] sm:$0xff] %v6184_v25 }
  0xb4   : > { %4736 = vrot.lane.b32.xlu2 %v5882_v53, %s5730_s30 }
  0xb5   : > { %4731 = vrot.lane.b32.xlu1 %v5862_v42, %s5730_s30  ;;  %4726 = vrot.lane.b32.xlu0 %v5864_v43, %s5730_s30 }
  0xb6   : > { %v6192_v44 = vpop.permute.xlu2 %4571 }
  0xb7   : > { %8743 = vst [vmem:[#allocation21_spill] sm:$0xff] %v6192_v44  ;;  %v6196_v34 = vpop.permute.xlu1 %4521  ;;  %v6198_v3 = vpop.permute.xlu0 %4516  ;;  %v4260_v44 = vld [vmem:[%s5785_s26 + $0x51] sm:$0xff] }
  0xbc   : > { %4751 = vrot.lane.b32.xlu2 %v5899_v62, %s5731_s7 }
  0xbd   : > { %4746 = vrot.lane.b32.xlu1 %v5880_v51, %s5731_s7  ;;  %4741 = vrot.lane.b32.xlu0 %v6200_v45, %s5730_s30 }
  0xbe   : > { %v6208_v42 = vpop.permute.xlu2 %4586 }
  0xbf   : > { %v6210_v43 = vpop.permute.xlu1 %4536  ;;  %v6212_v53 = vpop.permute.xlu0 %4531 }
  0xc0   : > { %8744 = vst [vmem:[#allocation22_spill] sm:$0xff] %v6210_v43 }
  0xc4   : > { %4766 = vrot.lane.b32.xlu2 %v5917_v9, %s5731_s7 }
  0xc5   : > { %4761 = vrot.lane.b32.xlu1 %v5895_v60, %s5731_s7  ;;  %4756 = vrot.lane.b32.xlu0 %v5897_v61, %s5731_s7 }
  0xc6   : > { %v6220_v62 = vpop.permute.xlu2 %4601 }
  0xc7   : > { %8745 = vst [vmem:[#allocation23_spill] sm:$0xff] %v6220_v62  ;;  %v6222_v51 = vpop.permute.xlu1 %4551  ;;  %v6224_v15 = vpop.permute.xlu0 %4546 }
  0xcc   : > { %4781 = vrot.lane.b32.xlu2 %v5935_v21, %s5731_s7 }
  0xcd   : > { %4776 = vrot.lane.b32.xlu1 %v5913_v6, %s5731_s7  ;;  %4771 = vrot.lane.b32.xlu0 %v5915_v8, %s5731_s7 }
  0xce   : > { %v6232_v60 = vpop.permute.xlu2 %4616 }
  0xcf   : > { %8746 = vst [vmem:[#allocation24_spill] sm:$0xff] %v6232_v60  ;;  %v6234_v61 = vpop.permute.xlu1 %4566  ;;  %v6236_v9 = vpop.permute.xlu0 %4561  ;;  %v4257_v60 = vld [vmem:[%s5785_s26 + $0x31] sm:$0xff] }
  0xd0   : > { %8747 = vst [vmem:[#allocation25_spill] sm:$0xff] %v6234_v61  ;;  %v4268_v61 = vld [vmem:[%s5785_s26 + $0xb1] sm:$0xff] }
  0xd1   : > { %8748 = vst [vmem:[#allocation26_spill] sm:$0xff] %v6236_v9 }
  0xd4   : > { %4796 = vrot.lane.b32.xlu2 %v5953_v36, %s5731_s7 }
  0xd5   : > { %4791 = vrot.lane.b32.xlu1 %v5931_v19, %s5731_s7  ;;  %4786 = vrot.lane.b32.xlu0 %v5933_v20, %s5731_s7  ;;  %v4223_v19 = vld [vmem:[%s5785_s26 + $0x182] sm:$0xff] }
  0xd6   : > { %v6244_v6 = vpop.permute.xlu2 %4631 }
  0xd7   : > { %8749 = vst [vmem:[#allocation27_spill] sm:$0xff] %v6244_v6  ;;  %v6246_v21 = vpop.permute.xlu1 %4581  ;;  %v6248_v8 = vpop.permute.xlu0 %4576 }
  0xd8   : > { %8750 = vst [vmem:[#allocation28_spill] sm:$0xff] %v6246_v21  ;;  %v6264_v21 = vpack.i.bf16 %v4224_v33, %v4223_v19 }
  0xdc   : > { %4811 = vrot.lane.b32.xlu2 %v5975_v48, %s5731_s7 }
  0xdd   : > { %4806 = vrot.lane.b32.xlu1 %v5949_v31, %s5731_s7  ;;  %4801 = vrot.lane.b32.xlu0 %v5951_v32, %s5731_s7 }
  0xde   : > { %v6256_v36 = vpop.permute.xlu2 %4646 }
  0xdf   : > { %8751 = vst [vmem:[#allocation29_spill] sm:$0xff] %v6256_v36  ;;  %v6260_v20 = vpop.permute.xlu1 %4596  ;;  %v6262_v25 = vpop.permute.xlu0 %4591 }
  0xe4   : > { %4826 = vrot.lane.b32.xlu2 %v6010_v59, %s5732_s8 }
  0xe5   : > { %4821 = vrot.lane.b32.xlu1 %v6264_v21, %s5731_s7  ;;  %4816 = vrot.lane.b32.xlu0 %v5973_v47, %s5731_s7 }
  0xe6   : > { %v6272_v31 = vpop.permute.xlu2 %4661 }
  0xe7   : > { %8752 = vst [vmem:[#allocation30_spill] sm:$0xff] %v6272_v31  ;;  %v6274_v32 = vpop.permute.xlu1 %4611  ;;  %v6276_v48 = vpop.permute.xlu0 %4606 }
  0xec   : > { %4841 = vrot.lane.b32.xlu2 %v6036_v13, %s5732_s8 }
  0xed   : > { %4836 = vrot.lane.b32.xlu1 %v6002_v57, %s5732_s8  ;;  %4831 = vrot.lane.b32.xlu0 %v6006_v58, %s5732_s8 }
  0xee   : > { %v6284_v59 = vpop.permute.xlu2 %4676 }
  0xef   : > { %v6286_v19 = vpop.permute.xlu1 %4626  ;;  %v6288_v47 = vpop.permute.xlu0 %4621 }
  0xf0   : > { %8753 = vst [vmem:[#allocation31_spill] sm:$0xff] %v6286_v19 }
  0xf1   : > { %8754 = vst [vmem:[#allocation32_spill] sm:$0xff] %v6288_v47 }
  0xf4   : > { %4856 = vrot.lane.b32.xlu2 %v6068_v40, %s5732_s8 }
  0xf5   : > { %4851 = vrot.lane.b32.xlu1 %v6030_v11, %s5732_s8  ;;  %4846 = vrot.lane.b32.xlu0 %v6032_v12, %s5732_s8 }
  0xf6   : > { %v6296_v57 = vpop.permute.xlu2 %4691 }
  0xf7   : > { %v6298_v58 = vpop.permute.xlu1 %4641  ;;  %v6300_v13 = vpop.permute.xlu0 %4636 }
  0xf8   : > { %8755 = vst [vmem:[#allocation33_spill] sm:$0xff] %v6298_v58 }
  0xf9   : > { %8756 = vst [vmem:[#allocation34_spill] sm:$0xff] %v6300_v13  ;;  %v4266_v13 = vld [vmem:[%s5785_s26 + $0x99] sm:$0xff] }
  0xfc   : > { %4871 = vrot.lane.b32.xlu2 %v6094_v27, %s5732_s8  ;;  %v4255_v27 = vld [vmem:[%s5785_s26 + $0x198] sm:$0xff] }
  0xfd   : > { %4866 = vrot.lane.b32.xlu1 %v6060_v30, %s5732_s8  ;;  %4861 = vrot.lane.b32.xlu0 %v6064_v39, %s5732_s8  ;;  %v4256_v30 = vld [vmem:[%s5785_s26 + $0x1a0] sm:$0xff] }
  0xfe   : > { %v6308_v11 = vpop.permute.xlu2 %4706  ;;  %v4900_v47 = vpack.i.bf16 %v4256_v30, %v4255_v27  ;;  %v4258_v27 = vld [vmem:[%s5785_s26 + $0x39] sm:$0xff] }
  0xff   : > { %8757 = vst [vmem:[#allocation35_spill] sm:$0xff] %v6308_v11  ;;  %v6310_v12 = vpop.permute.xlu1 %4656  ;;  %v6312_v40 = vpop.permute.xlu0 %4651  ;;  %v4905_v36 = vpack.i.bf16 %v4258_v27, %v4257_v60  ;;  %v4264_v60 = vld [vmem:[%s5785_s26 + $0x81] sm:$0xff] }
 0x100   : > { %8758 = vst [vmem:[#allocation36_spill] sm:$0xff] %v6312_v40  ;;  %v4312_v11 = vld [vmem:[%s5785_s26 + $0x142] sm:$0xff] }
 0x104   : > { %4886 = vrot.lane.b32.xlu2 %v6124_v4, %s5732_s8  ;;  %v4261_v4 = vld [vmem:[%s5785_s26 + $0x61] sm:$0xff] }
 0x105   : > { %4881 = vrot.lane.b32.xlu1 %v6088_v14, %s5732_s8  ;;  %4876 = vrot.lane.b32.xlu0 %v6090_v18, %s5732_s8  ;;  %v4262_v14 = vld [vmem:[%s5785_s26 + $0x69] sm:$0xff] }
 0x106   : > { %v6322_v39 = vpop.permute.xlu2 %4721  ;;  %v4259_v18 = vld [vmem:[%s5785_s26 + $0x49] sm:$0xff] }
 0x107   : > { %8759 = vst [vmem:[#allocation37_spill] sm:$0xff] %v6322_v39  ;;  %v6324_v33 = vpop.permute.xlu1 %4671  ;;  %v6326_v31 = vpop.permute.xlu0 %4666  ;;  %v4910_v43 = vpack.i.bf16 %v4260_v44, %v4259_v18  ;;  %v4263_v44 = vld [vmem:[%s5785_s26 + $0x79] sm:$0xff]  ;;  %v4301_v39 = vld [vmem:[%s5785_s26 + $0xc2] sm:$0xff] }
 0x108   : > { %v4920_v27 = vpack.i.bf16 %v4264_v60, %v4263_v44 }
 0x10c   : > { %4901 = vrot.lane.b32.xlu2 %v4900_v47, %s5732_s8 }
 0x10d   : > { %4896 = vrot.lane.b32.xlu1 %v6118_v56, %s5732_s8  ;;  %4891 = vrot.lane.b32.xlu0 %v6120_v55, %s5732_s8  ;;  %v4915_v56 = vpack.i.bf16 %v4262_v14, %v4261_v4  ;;  %v4267_v55 = vld [vmem:[%s5785_s26 + $0xa9] sm:$0xff] }
 0x10e   : > { %v6336_v40 = vpop.permute.xlu2 %4736  ;;  %v4930_v18 = vpack.i.bf16 %v4268_v61, %v4267_v55  ;;  %v4269_v61 = vld [vmem:[%s5785_s26 + $0xc1] sm:$0xff] }
 0x10f   : > { %v6341_v47 = vpop.permute.xlu1 %4686  ;;  %v6343_v30 = vpop.permute.xlu0 %4681  ;;  %v4739_v19 = vunpack.i.h.bf16 %v6336_v40 }
 0x110   : > { %8760 = vst [vmem:[#allocation38_spill] sm:$0xff] %v6343_v30 }
 0x114   : > { %4916 = vrot.lane.b32.xlu2 %v4915_v56, %s5733_s9  ;;  %v4274_v56 = vld [vmem:[%s5785_s26 + $0xf9] sm:$0xff] }
 0x115   : > { %4911 = vrot.lane.b32.xlu1 %v4910_v43, %s5733_s9  ;;  %4906 = vrot.lane.b32.xlu0 %v4905_v36, %s5733_s9  ;;  %v4925_v43 = vpack.i.bf16 %v4266_v13, %v4265_v26  ;;  %v4273_v36 = vld [vmem:[%s5785_s26 + $0xf1] sm:$0xff]  ;;  %v4270_v26 = vld [vmem:[%s5785_s26 + $0xc9] sm:$0xff] }
 0x116   : > { %v6351_v22 = vpop.permute.xlu2 %4751  ;;  %v4945_v44 = vpack.i.bf16 %v4274_v56, %v4273_v36  ;;  %v4276_v36 = vld [vmem:[%s5785_s26 + $0x111] sm:$0xff] }
 0x117   : > { %v6356_v4 = vpop.permute.xlu1 %4701  ;;  %v6358_v14 = vpop.permute.xlu0 %4696 }
 0x118   : > { %8761 = vst [vmem:[#allocation39_spill] sm:$0xff] %v6356_v4  ;;  %v4272_v4 = vld [vmem:[%s5785_s26 + $0xe1] sm:$0xff] }
 0x119   : > { %8762 = vst [vmem:[#allocation40_spill] sm:$0xff] %v6358_v14  ;;  %v4940_v60 = vpack.i.bf16 %v4272_v4, %v4271_v24  ;;  %v4277_v14 = vld [vmem:[%s5785_s26 + $0x121] sm:$0xff] }
 0x11c   : > { %4931 = vrot.lane.b32.xlu2 %v4930_v18, %s5733_s9  ;;  %v4935_v18 = vpack.i.bf16 %v4270_v26, %v4269_v61 }
 0x11d   : > { %4926 = vrot.lane.b32.xlu1 %v4925_v43, %s5733_s9  ;;  %4921 = vrot.lane.b32.xlu0 %v4920_v27, %s5733_s9  ;;  %v4279_v43 = vld [vmem:[%s5785_s26 + $0x139] sm:$0xff]  ;;  %v4280_v27 = vld [vmem:[%s5785_s26 + $0x141] sm:$0xff] }
 0x11e   : > { %v6366_v30 = vpop.permute.xlu2 %4766  ;;  %v4960_v56 = vpack.i.bf16 %v4280_v27, %v4279_v43  ;;  %v4282_v43 = vld [vmem:[%s5785_s26 + $0x159] sm:$0xff] }
 0x11f   : > { %v6371_v13 = vpop.permute.xlu1 %4716  ;;  %v6373_v55 = vpop.permute.xlu0 %4711 }
 0x120   : > { %8763 = vst [vmem:[#allocation41_spill] sm:$0xff] %v6371_v13  ;;  %v4278_v13 = vld [vmem:[%s5785_s26 + $0x129] sm:$0xff] }
 0x121   : > { %8764 = vst [vmem:[#allocation42_spill] sm:$0xff] %v6373_v55  ;;  %v4275_v55 = vld [vmem:[%s5785_s26 + $0x109] sm:$0xff]  ;;  %v4955_v61 = vpack.i.bf16 %v4278_v13, %v4277_v14 }
 0x122   : > { %v4950_v26 = vpack.i.bf16 %v4276_v36, %v4275_v55  ;;  %v4291_v36 = vld [vmem:[%s5785_s26 + $0x4a] sm:$0xff] }
 0x124   : > { %4946 = vrot.lane.b32.xlu2 %v4945_v44, %s5733_s9  ;;  %v4283_v44 = vld [vmem:[%s5785_s26 + $0x169] sm:$0xff] }
 0x125   : > { %4941 = vrot.lane.b32.xlu1 %v4940_v60, %s5733_s9  ;;  %4936 = vrot.lane.b32.xlu0 %v4935_v18, %s5733_s9  ;;  %v4284_v18 = vld [vmem:[%s5785_s26 + $0x171] sm:$0xff] }
 0x126   : > { %v6381_v62 = vpop.permute.xlu2 %4781  ;;  %v4970_v13 = vpack.i.bf16 %v4284_v18, %v4283_v44 }
 0x127   : > { %8765 = vst [vmem:[#allocation43_spill] sm:$0xff] %v6381_v62  ;;  %v6386_v24 = vpop.permute.xlu1 %4731  ;;  %v6388_v4 = vpop.permute.xlu0 %4726  ;;  %v4281_v62 = vld [vmem:[%s5785_s26 + $0x151] sm:$0xff] }
 0x128   : > { %8766 = vst [vmem:[#allocation44_spill] sm:$0xff] %v6386_v24  ;;  %v4965_v55 = vpack.i.bf16 %v4282_v43, %v4281_v62  ;;  %v4290_v24 = vld [vmem:[%s5785_s26 + $0x3a] sm:$0xff] }
 0x129   : > { %8767 = vst [vmem:[#allocation45_spill] sm:$0xff] %v6388_v4  ;;  %v4288_v62 = vld [vmem:[%s5785_s26 + $0x1a1] sm:$0xff] }
 0x12a   : > { %v4295_v4 = vld [vmem:[%s5785_s26 + $0x7a] sm:$0xff] }
 0x12c   : > { %4961 = vrot.lane.b32.xlu2 %v4960_v56, %s5733_s9  ;;  %v4292_v56 = vld [vmem:[%s5785_s26 + $0x52] sm:$0xff] }
 0x12d   : > { %4956 = vrot.lane.b32.xlu1 %v4955_v61, %s5733_s9  ;;  %4951 = vrot.lane.b32.xlu0 %v4950_v26, %s5733_s9  ;;  %v4289_v61 = vld [vmem:[%s5785_s26 + $0x32] sm:$0xff]  ;;  %v4990_v18 = vpack.i.bf16 %v4292_v56, %v4291_v36 }
 0x12e   : > { %v6394_v60 = vpop.permute.xlu2 %4796  ;;  %v4985_v43 = vpack.i.bf16 %v4290_v24, %v4289_v61  ;;  %v4293_v24 = vld [vmem:[%s5785_s26 + $0x62] sm:$0xff] }
 0x12f   : > { %8768 = vst [vmem:[#allocation46_spill] sm:$0xff] %v6394_v60  ;;  %v6399_v27 = vpop.permute.xlu1 %4746  ;;  %v6401_v14 = vpop.permute.xlu0 %4741 }
 0x130   : > { %8769 = vst [vmem:[#allocation47_spill] sm:$0xff] %v6401_v14  ;;  %v4287_v14 = vld [vmem:[%s5785_s26 + $0x199] sm:$0xff] }
 0x134   : > { %4976 = vrot.lane.b32.xlu2 %v6200_v45, %s5733_s9 }
 0x135   : > { %4971 = vrot.lane.b32.xlu1 %v4970_v13, %s5733_s9  ;;  %4966 = vrot.lane.b32.xlu0 %v4965_v55, %s5733_s9  ;;  %v4980_v13 = vpack.i.bf16 %v4288_v62, %v4287_v14  ;;  %v4297_v55 = vld [vmem:[%s5785_s26 + $0x92] sm:$0xff]  ;;  %v4294_v14 = vld [vmem:[%s5785_s26 + $0x6a] sm:$0xff] }
 0x136   : > { %v6410_v26 = vpop.permute.xlu2 %4811 }
 0x137   : > { %8770 = vst [vmem:[#allocation48_spill] sm:$0xff] %v6410_v26  ;;  %v6415_v44 = vpop.permute.xlu1 %4761  ;;  %v6417_v45 = vpop.permute.xlu0 %4756  ;;  %v4298_v26 = vld [vmem:[%s5785_s26 + $0x9a] sm:$0xff] }
 0x138   : > { %8771 = vst [vmem:[#allocation49_spill] sm:$0xff] %v6415_v44  ;;  %v4296_v44 = vld [vmem:[%s5785_s26 + $0x82] sm:$0xff]  ;;  %v5005_v61 = vpack.i.bf16 %v4298_v26, %v4297_v55  ;;  %v4299_v26 = vld [vmem:[%s5785_s26 + $0xaa] sm:$0xff] }
 0x139   : > { %v5000_v62 = vpack.i.bf16 %v4296_v44, %v4295_v4  ;;  %v4300_v4 = vld [vmem:[%s5785_s26 + $0xb2] sm:$0xff] }
 0x13c   : > { %4991 = vrot.lane.b32.xlu2 %v4990_v18, %s5734_s10  ;;  %v4995_v18 = vpack.i.bf16 %v4294_v14, %v4293_v24 }
 0x13d   : > { %4986 = vrot.lane.b32.xlu1 %v4985_v43, %s5734_s10  ;;  %4981 = vrot.lane.b32.xlu0 %v4980_v13, %s5733_s9  ;;  %v4303_v43 = vld [vmem:[%s5785_s26 + $0xda] sm:$0xff]  ;;  %v4304_v13 = vld [vmem:[%s5785_s26 + $0xe2] sm:$0xff] }
 0x13e   : > { %v6425_v60 = vpop.permute.xlu2 %4826  ;;  %v5020_v24 = vpack.i.bf16 %v4304_v13, %v4303_v43  ;;  %v4305_v43 = vld [vmem:[%s5785_s26 + $0xf2] sm:$0xff] }
 0x13f   : > { %v6430_v36 = vpop.permute.xlu1 %4776  ;;  %v6432_v56 = vpop.permute.xlu0 %4771 }
 0x140   : > { %8772 = vst [vmem:[#allocation50_spill] sm:$0xff] %v6430_v36  ;;  %v4302_v36 = vld [vmem:[%s5785_s26 + $0xca] sm:$0xff] }
 0x141   : > { %8773 = vst [vmem:[#allocation51_spill] sm:$0xff] %v6432_v56  ;;  %v5015_v14 = vpack.i.bf16 %v4302_v36, %v4301_v39  ;;  %v4306_v39 = vld [vmem:[%s5785_s26 + $0xfa] sm:$0xff] }
 0x144   : > { %5006 = vrot.lane.b32.xlu2 %v5005_v61, %s5734_s10  ;;  %v5010_v61 = vpack.i.bf16 %v4300_v4, %v4299_v26 }
 0x145   : > { %5001 = vrot.lane.b32.xlu1 %v5000_v62, %s5734_s10  ;;  %4996 = vrot.lane.b32.xlu0 %v4995_v18, %s5734_s10  ;;  %v4309_v62 = vld [vmem:[%s5785_s26 + $0x122] sm:$0xff]  ;;  %v4310_v18 = vld [vmem:[%s5785_s26 + $0x12a] sm:$0xff] }
 0x146   : > { %v6440_v58 = vpop.permute.xlu2 %4841  ;;  %v5035_v26 = vpack.i.bf16 %v4310_v18, %v4309_v62 }
 0x147   : > { %8774 = vst [vmem:[#allocation52_spill] sm:$0xff] %v6440_v58  ;;  %v6445_v44 = vpop.permute.xlu1 %4791  ;;  %v6447_v55 = vpop.permute.xlu0 %4786  ;;  %v4307_v58 = vld [vmem:[%s5785_s26 + $0x10a] sm:$0xff] }
 0x148   : > { %8775 = vst [vmem:[#allocation53_spill] sm:$0xff] %v6445_v44  ;;  %v4308_v44 = vld [vmem:[%s5785_s26 + $0x112] sm:$0xff] }
 0x149   : > { %8776 = vst [vmem:[#allocation54_spill] sm:$0xff] %v6447_v55  ;;  %v5030_v4 = vpack.i.bf16 %v4308_v44, %v4307_v58  ;;  %v4314_v55 = vld [vmem:[%s5785_s26 + $0x15a] sm:$0xff] }
 0x14c   : > { %5021 = vrot.lane.b32.xlu2 %v5020_v24, %s5734_s10  ;;  %v5025_v24 = vpack.i.bf16 %v4306_v39, %v4305_v43  ;;  %v4319_v39 = vld [vmem:[%s5785_s26 + $0x19a] sm:$0xff] }
 0x14d   : > { %5016 = vrot.lane.b32.xlu1 %v5015_v14, %s5734_s10  ;;  %5011 = vrot.lane.b32.xlu0 %v5010_v61, %s5734_s10  ;;  %v4315_v14 = vld [vmem:[%s5785_s26 + $0x16a] sm:$0xff]  ;;  %v4316_v61 = vld [vmem:[%s5785_s26 + $0x172] sm:$0xff] }
 0x14e   : > { %v6455_v6 = vpop.permute.xlu2 %4856  ;;  %v5050_v44 = vpack.i.bf16 %v4316_v61, %v4315_v14 }
 0x14f   : > { %8777 = vst [vmem:[#allocation55_spill] sm:$0xff] %v6455_v6  ;;  %v6460_v36 = vpop.permute.xlu1 %4806  ;;  %v6462_v13 = vpop.permute.xlu0 %4801  ;;  %v4313_v6 = vld [vmem:[%s5785_s26 + $0x152] sm:$0xff] }
 0x150   : > { %8778 = vst [vmem:[#allocation56_spill] sm:$0xff] %v6460_v36  ;;  %v4311_v36 = vld [vmem:[%s5785_s26 + $0x13a] sm:$0xff]  ;;  %v5045_v62 = vpack.i.bf16 %v4314_v55, %v4313_v6 }
 0x151   : > { %8779 = vst [vmem:[#allocation57_spill] sm:$0xff] %v6462_v13  ;;  %v5040_v18 = vpack.i.bf16 %v4312_v11, %v4311_v36 }
 0x154   : > { %5036 = vrot.lane.b32.xlu2 %v5035_v26, %s5734_s10  ;;  %v4320_v26 = vld [vmem:[%s5785_s26 + $0x1a2] sm:$0xff] }
 0x155   : > { %5031 = vrot.lane.b32.xlu1 %v5030_v4, %s5734_s10  ;;  %5026 = vrot.lane.b32.xlu0 %v5025_v24, %s5734_s10 }
 0x156   : > { %v6470_v9 = vpop.permute.xlu2 %4871 }
 0x157   : > { %8780 = vst [vmem:[#allocation58_spill] sm:$0xff] %v6470_v9  ;;  %v6475_v13 = vpop.permute.xlu1 %4821  ;;  %v6477_v58 = vpop.permute.xlu0 %4816  ;;  %v4392_v9 = vld [vmem:[%s8620_s1 + $0x18] sm:$0xff] }
 0x158   : > { %8781 = vst [vmem:[#allocation59_spill] sm:$0xff] %v6475_v13  ;;  %v5060_v13 = vpack.i.bf16 %v4320_v26, %v4319_v39 }
 0x15c   : > { %5051 = vrot.lane.b32.xlu2 %v5050_v44, %s5734_s10 }
 0x15d   : > { %5046 = vrot.lane.b32.xlu1 %v5045_v62, %s5734_s10  ;;  %5041 = vrot.lane.b32.xlu0 %v5040_v18, %s5734_s10 }
 0x15e   : > { %v6482_v43 = vpop.permute.xlu2 %4886 }
 0x15f   : > { %8782 = vst [vmem:[#allocation60_spill] sm:$0xff] %v6482_v43  ;;  %v6486_v4 = vpop.permute.xlu1 %4836  ;;  %v6488_v24 = vpop.permute.xlu0 %4831 }
 0x160   : > { %8783 = vst [vmem:[#allocation61_spill] sm:$0xff] %v6488_v24 }
 0x165   : > { %5061 = vrot.lane.b32.xlu1 %v5060_v13, %s5734_s10  ;;  %5056 = vrot.lane.b32.xlu0 %v6264_v21, %s5734_s10  ;;  %v1875_v21 = vld [vmem:[%s8620_s1 + $0x20] sm:$0xf] }
 0x166   : > { %v6493_v6 = vpop.permute.xlu2 %4901  ;;  %v1897_v18 = vunpack.c.l.b16 %v1875_v21  ;;  %v4499_v21 = vunpack.i.h.bf16 %v6132_v1 }
 0x167   : > { %8784 = vst [vmem:[#allocation62_spill] sm:$0xff] %v6493_v6  ;;  %v6495_v11 = vpop.permute.xlu1 %4851  ;;  %v6497_v55 = vpop.permute.xlu0 %4846 }
 0x168   : > { %8785 = vst [vmem:[#allocation63_spill] sm:$0xff] %v6495_v11  ;;  %v1902_v43 = vpack.c.b16 %v1897_v18, %v1897_v18  ;;  %v4579_v18 = vunpack.i.h.bf16 %v6248_v8 }
 0x16e   : > { %v6499_v36 = vpop.permute.xlu2 %4916 }
 0x16f   : > { %v6501_v14 = vpop.permute.xlu1 %4866  ;;  %v6503_v61 = vpop.permute.xlu0 %4861 }
 0x170   : > { %8786 = vst [vmem:[#allocation64_spill] sm:$0xff] %v6501_v14 }
 0x171   : > { %8787 = vst [vmem:[#allocation65_spill] sm:$0xff] %v6503_v61  ;;  %v1958_v61 = vsel %vm1956_vm0, %v1902_v43, 0  ;;  %v4578_v43 = vunpack.i.l.bf16 %v6248_v8  ;;  %v1617_v8 = vsel %vm1587_vm1, %v6112_v0, %v4499_v21 }
 0x172   : > { %1963 = vmatpush.bf16.msra.mxu0 %v1958_v61  ;;  %4397 = vmatpush.bf16.msra.mxu2 %v1958_v61  ;;  %v4659_v61 = vunpack.i.h.bf16 %v6310_v12 }
 0x176   : > { %v6505_v44 = vpop.permute.xlu2 %4931  ;;  %1964 = vmatpush.bf16.msra.mxu0 %v4392_v9  ;;  %4398 = vmatpush.bf16.msra.mxu2 %v4392_v9  ;;  %v4818_v9 = vunpack.i.l.bf16 %v6477_v58 }
 0x177   : > { %8788 = vst [vmem:[#allocation66_spill] sm:$0xff] %v6505_v44  ;;  %v6507_v62 = vpop.permute.xlu1 %4881  ;;  %v6509_v13 = vpop.permute.xlu0 %4876  ;;  %v4738_v44 = vunpack.i.l.bf16 %v6336_v40 }
 0x178   : > { %8789 = vst [vmem:[#allocation67_spill] sm:$0xff] %v6507_v62 }
 0x179   : > { %8790 = vst [vmem:[#allocation68_spill] sm:$0xff] %v6509_v13  ;;  %v4498_v13 = vunpack.i.l.bf16 %v6132_v1 }
 0x17b   : > { %v1616_v1 = vsel %vm1587_vm1, %v6109_v46, %v4498_v13  ;;  %v4390_v46 = vld [vmem:[%s8620_s1 + $0x8] sm:$0xff] }
 0x17c   : > { %v1649_v11 = vsel %vm1620_vm2, %v1616_v1, %v4578_v43 }
 0x17e   : > { %v6514_v39 = vpop.permute.xlu2 %4946 }
 0x17f   : > { %8791 = vst [vmem:[#allocation69_spill] sm:$0xff] %v6514_v39  ;;  %v4897_v26 = vpop.permute.xlu1 %4896  ;;  %v6516_v6 = vpop.permute.xlu0 %4891 }
 0x180   : > { %8792 = vst [vmem:[#allocation70_spill] sm:$0xff] %v6516_v6  ;;  %v4391_v6 = vld [vmem:[%s8620_s1 + $0x10] sm:$0xff]  ;;  %v4899_v24 = vunpack.i.h.bf16 %v4897_v26  ;;  %v4898_v56 = vunpack.i.l.bf16 %v4897_v26 }
 0x181   : > { %1965 = vmatpush.bf16.msra.mxu0 %v4391_v6  ;;  %4399 = vmatpush.bf16.msra.mxu2 %v4391_v6 }
 0x185   : > { %1966 = vmatpush.bf16.msra.mxu0 %v4390_v46  ;;  %4400 = vmatpush.bf16.msra.mxu2 %v4390_v46  ;;  %v4484_v46 = vunpack.i.h.bf16 %v6105_v41 }
 0x186   : > { %v6523_v62 = vpop.permute.xlu2 %4961 }
 0x187   : > { %8793 = vst [vmem:[#allocation71_spill] sm:$0xff] %v6523_v62  ;;  %v6526_v39 = vpop.permute.xlu1 %4911  ;;  %v6528_v14 = vpop.permute.xlu0 %4906  ;;  %v4658_v62 = vunpack.i.l.bf16 %v6310_v12  ;;  %v1650_v12 = vsel %vm1620_vm2, %v1617_v8, %v4579_v18 }
 0x188   : > { %8794 = vst [vmem:[#allocation72_spill] sm:$0xff] %v6526_v39  ;;  %v4819_v39 = vunpack.i.h.bf16 %v6477_v58  ;;  %v1683_v40 = vsel %vm1653_vm3, %v1650_v12, %v4659_v61  ;;  %v4468_v12 = vunpack.i.l.bf16 %v6079_v63 }
 0x189   : > { %v1682_v0 = vsel %vm1653_vm3, %v1649_v11, %v4658_v62  ;;  %v1716_v58 = vsel %vm1686_vm4, %v1683_v40, %v4739_v19  ;;  %v4389_v19 = vld [vmem:[%s8620_s1] sm:$0xff]  ;;  %v4483_v40 = vunpack.i.l.bf16 %v6105_v41 }
 0x18a   : > { %v1715_v13 = vsel %vm1686_vm4, %v1682_v0, %v4738_v44  ;;  %v1749_v18 = vsel %vm1719_vm5, %v1716_v58, %v4819_v39  ;;  %v4449_v44 = vunpack.i.h.bf16 %v6021_v2  ;;  %v4448_v39 = vunpack.i.l.bf16 %v6021_v2  ;;  %1967 = vmatpush.bf16.msra.mxu0 %v4389_v19  ;;  %4401 = vmatpush.bf16.msra.mxu2 %v4389_v19  ;;  %v8799_v19 = vld [vmem:[#allocation13_spill] sm:$0xff] }
 0x18b   : > { %v1748_v26 = vsel %vm1719_vm5, %v1715_v13, %v4818_v9  ;;  %v1782_v62 = vsel %vm1752_vm6, %v1749_v18, %v4899_v24  ;;  %v4453_v24 = vunpack.i.l.bf16 %v6049_v23  ;;  %v4469_v0 = vunpack.i.h.bf16 %v6079_v63  ;;  %v273_v18 = vld [vmem:[%s5785_s26] sm:$0xff] }
 0x18c   : > { %v1781_v11 = vsel %vm1752_vm6, %v1748_v26, %v4898_v56  ;;  %v4454_v56 = vunpack.i.h.bf16 %v6049_v23  ;;  %v1596_v2 = vsel %vm1587_vm1, %v5979_v49, %v4448_v39  ;;  %v1597_v13 = vsel %vm1587_vm1, %v5986_v50, %v4449_v44  ;;  %v8795_v50 = vld [vmem:[#allocation11_spill] sm:$0xff] }
 0x18d   : > { %v4439_v58 = vunpack.i.h.bf16 %v6114_v54  ;;  %v4438_v23 = vunpack.i.l.bf16 %v6114_v54  ;;  %v6587_v63 = vsel %vm1587_vm1, %v6025_v5, %v4453_v24  ;;  %v6595_v41 = vsel %vm1587_vm1, %v6055_v28, %v4468_v12 }
 0x18e   : > { %v4977_v21 = vpop.permute.xlu2 %4976  ;;  %v4428_v49 = vunpack.i.l.bf16 %v6116_v52  ;;  %v6602_v54 = vsel %vm1587_vm1, %v8795_v50, %v4469_v0  ;;  %v4429_v5 = vunpack.i.h.bf16 %v6116_v52  ;;  %v6618_v44 = vsel %vm1587_vm1, %v8799_v19, %v4484_v46  ;;  %v274_v50 = vld [vmem:[%s5785_s26 + $0x8] sm:$0xff] }
 0x18f   : > { %v4979_v43 = vunpack.i.h.bf16 %v4977_v21  ;;  %v4978_v1 = vunpack.i.l.bf16 %v4977_v21  ;;  %v6556_v8 = vpop.permute.xlu1 %4926  ;;  %v6558_v6 = vpop.permute.xlu0 %4921  ;;  %v6591_v21 = vsel %vm1587_vm1, %v6028_v10, %v4454_v56  ;;  %v4528_v10 = vunpack.i.l.bf16 %v6156_v16  ;;  %v8800_v56 = vld [vmem:[#allocation7_spill] sm:$0xff] }
 0x190   : > { %v4609_v39 = vunpack.i.h.bf16 %v6276_v48  ;;  %v4608_v52 = vunpack.i.l.bf16 %v6276_v48  ;;  %v6624_v24 = vsel %vm1587_vm1, %v8800_v56, %v4438_v23  ;;  %v4689_v0 = vunpack.i.h.bf16 %v6341_v47 }
 0x191   : > { %v6568_v61 = vsel %vm1785_vm7, %v1781_v11, %v4978_v1  ;;  %v6571_v9 = vsel %vm1785_vm7, %v1782_v62, %v4979_v43  ;;  %v4529_v43 = vunpack.i.h.bf16 %v6156_v16  ;;  %v8798_v11 = vld [vmem:[#allocation12_spill] sm:$0xff]  ;;  %v1588_v46 = vsel %vm1587_vm1, %v273_v18, %v4428_v49 }
 0x192   : > { %v6614_v62 = vsel %vm1587_vm1, %v8798_v11, %v4483_v40  ;;  %v8801_v16 = vld [vmem:[#allocation8_spill] sm:$0xff]  ;;  %v4688_v40 = vunpack.i.l.bf16 %v6341_v47  ;;  %v4443_v11 = vunpack.i.l.bf16 %v6134_v29  ;;  %v4769_v19 = vunpack.i.h.bf16 %v6366_v30 }
 0x193   : > { %v6628_v12 = vsel %vm1587_vm1, %v8801_v16, %v4439_v58  ;;  %v4768_v48 = vunpack.i.l.bf16 %v6366_v30  ;;  %v1629_v23 = vsel %vm1620_vm2, %v1596_v2, %v4528_v10  ;;  %v1630_v56 = vsel %vm1620_vm2, %v1597_v13, %v4529_v43 }
 0x194   : > { %v4849_v58 = vunpack.i.h.bf16 %v6497_v55  ;;  %v4848_v16 = vunpack.i.l.bf16 %v6497_v55  ;;  %v1663_v47 = vsel %vm1653_vm3, %v1630_v56, %v4609_v39  ;;  %v4929_v49 = vunpack.i.h.bf16 %v6556_v8 }
 0x195   : > { %v4928_v18 = vunpack.i.l.bf16 %v6556_v8  ;;  %v4444_v30 = vunpack.i.h.bf16 %v6134_v29  ;;  %v1696_v13 = vsel %vm1686_vm4, %v1663_v47, %v4689_v0  ;;  %v4434_v43 = vunpack.i.h.bf16 %v6136_v38  ;;  %v8802_v0 = vld [vmem:[#allocation5_spill] sm:$0xff]  ;;  %v8803_v47 = vld [vmem:[#allocation6_spill] sm:$0xff] }
 0x196   : > { %v6598_v26 = vpop.permute.xlu2 %4991  ;;  %v4433_v55 = vunpack.i.l.bf16 %v6136_v38  ;;  %v1729_v39 = vsel %vm1719_vm5, %v1696_v13, %v4769_v19  ;;  %v4513_v56 = vunpack.i.l.bf16 %v6144_v37  ;;  %v8804_v13 = vld [vmem:[#allocation3_spill] sm:$0xff] }
 0x197   : > { %v6608_v1 = vpop.permute.xlu1 %4941  ;;  %v6610_v28 = vpop.permute.xlu0 %4936  ;;  %v1762_v8 = vsel %vm1752_vm6, %v1729_v39, %v4849_v58  ;;  %v4518_v39 = vunpack.i.l.bf16 %v6198_v3 }
 0x198   : > { %8796 = vst [vmem:[#allocation11_spill] sm:$0xff] %v6608_v1  ;;  %v1662_v1 = vsel %vm1653_vm3, %v1629_v23, %v4608_v52  ;;  %v1795_v19 = vsel %vm1785_vm7, %v1762_v8, %v4929_v49  ;;  %v4508_v49 = vunpack.i.l.bf16 %v6182_v35  ;;  %v4519_v8 = vunpack.i.h.bf16 %v6198_v3 }
 0x199   : > { %8797 = vst [vmem:[#allocation73_spill] sm:$0xff] %v6610_v28  ;;  %v1589_v28 = vsel %vm1587_vm1, %v274_v50, %v4429_v5  ;;  %v1695_v2 = vsel %vm1686_vm4, %v1662_v1, %v4688_v40  ;;  %v6661_v40 = vsel %vm1587_vm1, %v8802_v0, %v4443_v11  ;;  %v4474_v11 = vunpack.i.h.bf16 %v6160_v17 }
 0x19a   : > { %v1728_v10 = vsel %vm1719_vm5, %v1695_v2, %v4768_v48  ;;  %v4514_v48 = vunpack.i.h.bf16 %v6144_v37  ;;  %v6675_v2 = vsel %vm1587_vm1, %v8803_v47, %v4444_v30  ;;  %v4509_v37 = vunpack.i.h.bf16 %v6182_v35 }
 0x19b   : > { %v1761_v23 = vsel %vm1752_vm6, %v1728_v10, %v4848_v16  ;;  %v1590_v10 = vsel %vm1587_vm1, %v8804_v13, %v4433_v55  ;;  %v4534_v35 = vunpack.i.h.bf16 %v6212_v53  ;;  %v4533_v0 = vunpack.i.l.bf16 %v6212_v53 }
 0x19c   : > { %v1794_v38 = vsel %vm1785_vm7, %v1761_v23, %v4928_v18  ;;  %v4473_v18 = vunpack.i.l.bf16 %v6160_v17  ;;  %v8805_v23 = vld [vmem:[#allocation4_spill] sm:$0xff]  ;;  %v4588_v17 = vunpack.i.l.bf16 %v6208_v42  ;;  %v4523_v13 = vunpack.i.l.bf16 %v6196_v34 }
 0x19d   : > { %v1591_v30 = vsel %vm1587_vm1, %v8805_v23, %v4434_v43  ;;  %v8807_v43 = vld [vmem:[#allocation10_spill] sm:$0xff]  ;;  %v1625_v53 = vsel %vm1620_vm2, %v6624_v24, %v4518_v39  ;;  %v4599_v24 = vunpack.i.h.bf16 %v6260_v20  ;;  %v4593_v39 = vunpack.i.l.bf16 %v6262_v25 }
 0x19e   : > { %v5007_v52 = vpop.permute.xlu2 %5006  ;;  %v1624_v55 = vsel %vm1620_vm2, %v1591_v30, %v4514_v48  ;;  %v6702_v3 = vsel %vm1587_vm1, %v8807_v43, %v4474_v11  ;;  %v4554_v30 = vunpack.i.h.bf16 %v6222_v51 }
 0x19f   : > { %v5009_v5 = vunpack.i.h.bf16 %v5007_v52  ;;  %v5008_v50 = vunpack.i.l.bf16 %v5007_v52  ;;  %v6655_v29 = vpop.permute.xlu1 %4956  ;;  %v6657_v1 = vpop.permute.xlu0 %4951 }
 0x1a1   : > { %v6668_v58 = vsel %vm1818_vm8, %v1794_v38, %v5008_v50  ;;  %v6671_v16 = vsel %vm1818_vm8, %v1795_v19, %v5009_v5  ;;  %v4589_v5 = vunpack.i.h.bf16 %v6208_v42  ;;  %v1623_v50 = vsel %vm1620_vm2, %v1590_v10, %v4513_v56  ;;  %v8806_v19 = vld [vmem:[#allocation9_spill] sm:$0xff] }
 0x1a2   : > { %v6698_v47 = vsel %vm1587_vm1, %v8806_v19, %v4473_v18  ;;  %v1621_v42 = vsel %vm1620_vm2, %v1588_v46, %v4508_v49  ;;  %v1622_v56 = vsel %vm1620_vm2, %v1589_v28, %v4509_v37  ;;  %v1626_v18 = vsel %vm1620_vm2, %v6628_v12, %v4519_v8 }
 0x1a3   : > { %v1654_v11 = vsel %vm1653_vm3, %v1621_v42, %v4588_v17  ;;  %v1655_v46 = vsel %vm1653_vm3, %v1622_v56, %v4589_v5  ;;  %v4598_v28 = vunpack.i.l.bf16 %v6260_v20  ;;  %v1631_v49 = vsel %vm1620_vm2, %v6587_v63, %v4533_v0 }
 0x1a4   : > { %v1632_v37 = vsel %vm1620_vm2, %v6591_v21, %v4534_v35  ;;  %v4594_v12 = vunpack.i.h.bf16 %v6262_v25  ;;  %v4669_v8 = vunpack.i.h.bf16 %v6326_v31  ;;  %v4668_v5 = vunpack.i.l.bf16 %v6326_v31 }
 0x1a5   : > { %v4553_v17 = vunpack.i.l.bf16 %v6222_v51  ;;  %v4549_v19 = vunpack.i.h.bf16 %v6224_v15  ;;  %v4749_v63 = vunpack.i.h.bf16 %v6399_v27  ;;  %v4748_v21 = vunpack.i.l.bf16 %v6399_v27 }
 0x1a6   : > { %v4548_v20 = vunpack.i.l.bf16 %v6224_v15  ;;  %v1658_v35 = vsel %vm1653_vm3, %v1625_v53, %v4598_v28  ;;  %v4829_v0 = vunpack.i.h.bf16 %v6425_v60  ;;  %v4828_v25 = vunpack.i.l.bf16 %v6425_v60 }
 0x1a7   : > { %v6710_v10 = vpop.permute.xlu1 %4971  ;;  %v6712_v23 = vpop.permute.xlu0 %4966  ;;  %v1659_v43 = vsel %vm1653_vm3, %v1626_v18, %v4599_v24  ;;  %v6739_v31 = vsel %vm1653_vm3, %v1623_v50, %v4593_v39  ;;  %v4909_v42 = vunpack.i.h.bf16 %v6528_v14  ;;  %v4908_v56 = vunpack.i.l.bf16 %v6528_v14 }
 0x1a8   : > { %v1657_v52 = vsel %vm1653_vm3, %v1624_v55, %v4594_v12  ;;  %v4614_v27 = vunpack.i.h.bf16 %v6274_v32  ;;  %v1687_v38 = vsel %vm1686_vm4, %v1654_v11, %v4668_v5  ;;  %v1688_v53 = vsel %vm1686_vm4, %v1655_v46, %v4669_v8 }
 0x1a9   : > { %v4613_v28 = vunpack.i.l.bf16 %v6274_v32  ;;  %v4678_v60 = vunpack.i.l.bf16 %v6284_v59  ;;  %v1720_v18 = vsel %vm1719_vm5, %v1687_v38, %v4748_v21  ;;  %v1721_v50 = vsel %vm1719_vm5, %v1688_v53, %v4749_v63 }
 0x1aa   : > { %v1753_v14 = vsel %vm1752_vm6, %v1720_v18, %v4828_v25  ;;  %v1754_v55 = vsel %vm1752_vm6, %v1721_v50, %v4829_v0  ;;  %v4679_v11 = vunpack.i.h.bf16 %v6284_v59  ;;  %v4693_v46 = vunpack.i.l.bf16 %v6296_v57 }
 0x1ab   : > { %v1786_v32 = vsel %vm1785_vm7, %v1753_v14, %v4908_v56  ;;  %v1787_v8 = vsel %vm1785_vm7, %v1754_v55, %v4909_v42  ;;  %v4694_v38 = vunpack.i.h.bf16 %v6296_v57  ;;  %v1664_v21 = vsel %vm1653_vm3, %v1631_v49, %v4613_v28 }
 0x1ac   : > { %v4759_v0 = vunpack.i.h.bf16 %v6417_v45  ;;  %v4758_v25 = vunpack.i.l.bf16 %v6417_v45  ;;  %v1665_v53 = vsel %vm1653_vm3, %v1632_v37, %v4614_v27  ;;  %v1691_v56 = vsel %vm1686_vm4, %v1658_v35, %v4678_v60  ;;  %v8808_v60 = vld [vmem:[#allocation51_spill] sm:$0xff] }
 0x1ad   : > { %v4839_v42 = vunpack.i.h.bf16 %v6486_v4  ;;  %v4838_v57 = vunpack.i.l.bf16 %v6486_v4  ;;  %v1697_v18 = vsel %vm1686_vm4, %v1664_v21, %v4693_v46  ;;  %v4919_v50 = vunpack.i.h.bf16 %v6499_v36 }
 0x1ae   : > { %v4918_v49 = vunpack.i.l.bf16 %v6499_v36  ;;  %v1698_v45 = vsel %vm1686_vm4, %v1665_v53, %v4694_v38  ;;  %v4674_v37 = vunpack.i.h.bf16 %v6324_v33  ;;  %v4673_v35 = vunpack.i.l.bf16 %v6324_v33  ;;  %v8809_v33 = vld [vmem:[#allocation61_spill] sm:$0xff] }
 0x1af   : > { %v4987_v24 = vpop.permute.xlu1 %4986  ;;  %v6751_v39 = vpop.permute.xlu0 %4981  ;;  %v4754_v27 = vunpack.i.h.bf16 %v6351_v22  ;;  %v4753_v4 = vunpack.i.l.bf16 %v6351_v22  ;;  %v4773_v46 = vunpack.i.l.bf16 %v8808_v60  ;;  %v4833_v38 = vunpack.i.l.bf16 %v8809_v33 }
 0x1b0   : > { %v4989_v12 = vunpack.i.h.bf16 %v4987_v24  ;;  %v4988_v48 = vunpack.i.l.bf16 %v4987_v24  ;;  %v4774_v24 = vunpack.i.h.bf16 %v8808_v60  ;;  %v8812_v60 = vld [vmem:[#allocation66_spill] sm:$0xff]  ;;  %v1639_v15 = vsel %vm1620_vm2, %v6698_v47, %v4553_v17 }
 0x1b2   : > { %v1819_v5 = vsel %vm1818_vm8, %v1786_v32, %v4988_v48  ;;  %v1820_v63 = vsel %vm1818_vm8, %v1787_v8, %v4989_v12  ;;  %v1692_v48 = vsel %vm1686_vm4, %v1659_v43, %v4679_v11  ;;  %v1724_v43 = vsel %vm1719_vm5, %v1691_v56, %v4758_v25 }
 0x1b3   : > { %v1851_v59 = vpack.c.bf16 %v1820_v63, %v1819_v5  ;;  %v1725_v28 = vsel %vm1719_vm5, %v1692_v48, %v4759_v0  ;;  %v1757_v36 = vsel %vm1752_vm6, %v1724_v43, %v4838_v57  ;;  %v4834_v32 = vunpack.i.h.bf16 %v8809_v33  ;;  %v8810_v5 = vld [vmem:[#allocation63_spill] sm:$0xff] }
 0x1b4   : > { %v1758_v55 = vsel %vm1752_vm6, %v1725_v28, %v4839_v42  ;;  %v1790_v8 = vsel %vm1785_vm7, %v1757_v36, %v4918_v49  ;;  %v4854_v63 = vunpack.i.h.bf16 %v8810_v5  ;;  %v4853_v25 = vunpack.i.l.bf16 %v8810_v5  ;;  %v8814_v5 = vld [vmem:[#allocation35_spill] sm:$0xff] }
 0x1b5   : > { %4337 = vmatmul.msk.bf16.vlgmr.msra.gmra.mxu0 %vm1907_vm9, %v1851_v59  ;;  %v1791_v22 = vsel %vm1785_vm7, %v1758_v55, %v4919_v50  ;;  %v8811_v59 = vld [vmem:[#allocation72_spill] sm:$0xff]  ;;  %v1689_v57 = vsel %vm1686_vm4, %v6739_v31, %v4673_v35  ;;  %v1690_v48 = vsel %vm1686_vm4, %v1657_v52, %v4674_v37  ;;  %v4994_v50 = vunpack.i.h.bf16 %v6598_v26 }
 0x1b6   : > { %v4914_v53 = vunpack.i.h.bf16 %v8811_v59  ;;  %v4913_v56 = vunpack.i.l.bf16 %v8811_v59  ;;  %v4993_v49 = vunpack.i.l.bf16 %v6598_v26  ;;  %v1722_v43 = vsel %vm1719_vm5, %v1689_v57, %v4753_v4 }
 0x1b7   : > { %v4997_v14 = vpop.permute.xlu0 %4996  ;;  %v1723_v28 = vsel %vm1719_vm5, %v1690_v48, %v4754_v27  ;;  %v4933_v36 = vunpack.i.l.bf16 %v8812_v60  ;;  %v6810_v55 = vpop.permute.xlu1 %5001  ;;  %v1731_v31 = vsel %vm1719_vm5, %v1698_v45, %v4774_v24  ;;  %v1755_v52 = vsel %vm1752_vm6, %v1722_v43, %v4833_v38  ;;  %v8813_v45 = vld [vmem:[#allocation31_spill] sm:$0xff] }
 0x1b8   : > { %v4999_v12 = vunpack.i.h.bf16 %v4997_v14  ;;  %v4998_v11 = vunpack.i.l.bf16 %v4997_v14  ;;  %v4934_v14 = vunpack.i.h.bf16 %v8812_v60  ;;  %v1756_v37 = vsel %vm1752_vm6, %v1723_v28, %v4834_v32  ;;  %v8816_v60 = vld [vmem:[#allocation64_spill] sm:$0xff] }
 0x1b9   : > { %v1764_v35 = vsel %vm1752_vm6, %v1731_v31, %v4854_v63  ;;  %v1788_v27 = vsel %vm1785_vm7, %v1755_v52, %v4913_v56  ;;  %v4629_v24 = vunpack.i.h.bf16 %v8813_v45  ;;  %v4709_v63 = vunpack.i.h.bf16 %v8814_v5  ;;  %v8815_v56 = vld [vmem:[#allocation54_spill] sm:$0xff]  ;;  %v8817_v52 = vld [vmem:[#allocation69_spill] sm:$0xff] }
 0x1ba   : > { %v6791_v21 = vsel %vm1818_vm8, %v1790_v8, %v4998_v11  ;;  %v6794_v0 = vsel %vm1818_vm8, %v1791_v22, %v4999_v12  ;;  %v1730_v12 = vsel %vm1719_vm5, %v1697_v18, %v4773_v46  ;;  %v1789_v11 = vsel %vm1785_vm7, %v1756_v37, %v4914_v53 }
 0x1bb   : > { %v1853_v42 = vpack.c.bf16 %v6794_v0, %v6791_v21  ;;  %v1763_v26 = vsel %vm1752_vm6, %v1730_v12, %v4853_v25  ;;  %v1821_v22 = vsel %vm1818_vm8, %v1788_v27, %v4993_v49  ;;  %v1822_v18 = vsel %vm1818_vm8, %v1789_v11, %v4994_v50  ;;  %v6942_v0 = vpop.permute.xlu2 %5021 }
 0x1bc   : > { %v4628_v46 = vunpack.i.l.bf16 %v8813_v45  ;;  %v1796_v32 = vsel %vm1785_vm7, %v1763_v26, %v4933_v36  ;;  %v1797_v38 = vsel %vm1785_vm7, %v1764_v35, %v4934_v14  ;;  %v4708_v25 = vunpack.i.l.bf16 %v8814_v5 }
 0x1bd   : > { %v4789_v57 = vunpack.i.h.bf16 %v8815_v56  ;;  %v4788_v48 = vunpack.i.l.bf16 %v8815_v56  ;;  %v1852_v50 = vpack.c.bf16 %v1822_v18, %v1821_v22  ;;  %v1637_v43 = vsel %vm1620_vm2, %v6595_v41, %v4548_v20  ;;  %v8818_v41 = vld [vmem:[#allocation26_spill] sm:$0xff] }
 0x1be   : > { %v1638_v28 = vsel %vm1620_vm2, %v6602_v54, %v4549_v19  ;;  %v4869_v14 = vunpack.i.h.bf16 %v8816_v60  ;;  %v4868_v36 = vunpack.i.l.bf16 %v8816_v60  ;;  %v1670_v12 = vsel %vm1653_vm3, %v1637_v43, %v4628_v46  ;;  %v8822_v43 = vld [vmem:[#allocation57_spill] sm:$0xff] }
 0x1bf   : > { %v5012_v4 = vpop.permute.xlu0 %5011  ;;  %v1671_v31 = vsel %vm1653_vm3, %v1638_v28, %v4629_v24  ;;  %v4949_v37 = vunpack.i.h.bf16 %v8817_v52  ;;  %v4948_v26 = vunpack.i.l.bf16 %v8817_v52  ;;  %v4564_v54 = vunpack.i.h.bf16 %v8818_v41  ;;  %v8820_v24 = vld [vmem:[#allocation33_spill] sm:$0xff] }
 0x1c0   : > { %v5014_v33 = vunpack.i.h.bf16 %v5012_v4  ;;  %v5013_v8 = vunpack.i.l.bf16 %v5012_v4  ;;  %v1703_v19 = vsel %vm1686_vm4, %v1670_v12, %v4708_v25  ;;  %v1704_v20 = vsel %vm1686_vm4, %v1671_v31, %v4709_v63  ;;  %v8819_v4 = vld [vmem:[#allocation27_spill] sm:$0xff]  ;;  %v8821_v63 = vld [vmem:[#allocation37_spill] sm:$0xff] }
 0x1c1   : > { %v4563_v35 = vunpack.i.l.bf16 %v8818_v41  ;;  %v4633_v27 = vunpack.i.l.bf16 %v8819_v4  ;;  %v1736_v11 = vsel %vm1719_vm5, %v1703_v19, %v4788_v48  ;;  %v4644_v46 = vunpack.i.h.bf16 %v8820_v24  ;;  %v8823_v31 = vld [vmem:[#allocation67_spill] sm:$0xff] }
 0x1c2   : > { %v6829_v59 = vsel %vm1818_vm8, %v1796_v32, %v5013_v8  ;;  %v6832_v53 = vsel %vm1818_vm8, %v1797_v38, %v5014_v33  ;;  %v1737_v33 = vsel %vm1719_vm5, %v1704_v20, %v4789_v57  ;;  %v6864_v8 = vpop.permute.xlu1 %5016  ;;  %v1769_v18 = vsel %vm1752_vm6, %v1736_v11, %v4868_v36  ;;  %v8825_v20 = vld [vmem:[#allocation42_spill] sm:$0xff] }
 0x1c3   : > { %v1856_v49 = vpack.c.bf16 %v6832_v53, %v6829_v59  ;;  %v1770_v47 = vsel %vm1752_vm6, %v1737_v33, %v4869_v14  ;;  %v4643_v32 = vunpack.i.l.bf16 %v8820_v24  ;;  %v1802_v38 = vsel %vm1785_vm7, %v1769_v18, %v4948_v26  ;;  %v8850_v59 = vld [vmem:[#allocation40_spill] sm:$0xff] }
 0x1c4   : > { %v1803_v5 = vsel %vm1785_vm7, %v1770_v47, %v4949_v37  ;;  %v4724_v25 = vunpack.i.h.bf16 %v8821_v63  ;;  %v4723_v56 = vunpack.i.l.bf16 %v8821_v63  ;;  %v4804_v28 = vunpack.i.h.bf16 %v8822_v43 }
 0x1c5   : > { %4338 = vmatmul.msk.bf16.gmra.mxu0 %vm1907_vm9, %v1852_v50  ;;  %v1640_v50 = vsel %vm1620_vm2, %v6702_v3, %v4554_v30  ;;  %v4803_v60 = vunpack.i.l.bf16 %v8822_v43  ;;  %v1643_v36 = vsel %vm1620_vm2, %v6614_v62, %v4563_v35  ;;  %v1644_v12 = vsel %vm1620_vm2, %v6618_v44, %v4564_v54  ;;  %v8824_v3 = vld [vmem:[#allocation71_spill] sm:$0xff] }
 0x1c6   : > { %v4884_v52 = vunpack.i.h.bf16 %v8823_v31  ;;  %v4883_v37 = vunpack.i.l.bf16 %v8823_v31  ;;  %v1676_v51 = vsel %vm1653_vm3, %v1643_v36, %v4643_v32  ;;  %v1677_v26 = vsel %vm1653_vm3, %v1644_v12, %v4644_v46 }
 0x1c7   : > { %v5027_v22 = vpop.permute.xlu0 %5026  ;;  %v4964_v30 = vunpack.i.h.bf16 %v8824_v3  ;;  %v4963_v41 = vunpack.i.l.bf16 %v8824_v3  ;;  %v4634_v19 = vunpack.i.h.bf16 %v8819_v4  ;;  %v1672_v62 = vsel %vm1653_vm3, %v1639_v15, %v4633_v27  ;;  %v8826_v15 = vld [vmem:[#allocation53_spill] sm:$0xff] }
 0x1c8   : > { %v5029_v17 = vunpack.i.h.bf16 %v5027_v22  ;;  %v5028_v45 = vunpack.i.l.bf16 %v5027_v22  ;;  %v1709_v44 = vsel %vm1686_vm4, %v1676_v51, %v4723_v56  ;;  %v1710_v54 = vsel %vm1686_vm4, %v1677_v26, %v4724_v25 }
 0x1c9   : > { %v4714_v35 = vunpack.i.h.bf16 %v8825_v20  ;;  %v4713_v11 = vunpack.i.l.bf16 %v8825_v20  ;;  %v1742_v33 = vsel %vm1719_vm5, %v1709_v44, %v4803_v60  ;;  %v1743_v22 = vsel %vm1719_vm5, %v1710_v54, %v4804_v28 }
 0x1ca   : > { %v1835_v57 = vsel %vm1818_vm8, %v1802_v38, %v5028_v45  ;;  %v1836_v48 = vsel %vm1818_vm8, %v1803_v5, %v5029_v17  ;;  %v1775_v47 = vsel %vm1752_vm6, %v1742_v33, %v4883_v37  ;;  %v1776_v17 = vsel %vm1752_vm6, %v1743_v22, %v4884_v52  ;;  %v5032_v46 = vpop.permute.xlu1 %5031  ;;  %v8827_v5 = vld [vmem:[#allocation58_spill] sm:$0xff]  ;;  %v8828_v52 = vld [vmem:[#allocation23_spill] sm:$0xff]  ;;  %v8831_v33 = vld [vmem:[#allocation49_spill] sm:$0xff] }
 0x1cb   : > { %v1859_v14 = vpack.c.bf16 %v1836_v48, %v1835_v57  ;;  %v4794_v27 = vunpack.i.h.bf16 %v8826_v15  ;;  %v4793_v24 = vunpack.i.l.bf16 %v8826_v15  ;;  %v1808_v32 = vsel %vm1785_vm7, %v1775_v47, %v4963_v41  ;;  %v8832_v47 = vld [vmem:[#allocation52_spill] sm:$0xff] }
 0x1cc   : > { %v1809_v38 = vsel %vm1785_vm7, %v1776_v17, %v4964_v30  ;;  %v4874_v63 = vunpack.i.h.bf16 %v8827_v5  ;;  %v4873_v25 = vunpack.i.l.bf16 %v8827_v5  ;;  %v1673_v48 = vsel %vm1653_vm3, %v1640_v50, %v4634_v19 }
 0x1cd   : > { %4345 = vmatmul.msk.bf16.vlgmr.msra.gmra.mxu2 %vm1907_vm9, %v1859_v14  ;;  %v4954_v43 = vunpack.i.h.bf16 %v6657_v1  ;;  %v4953_v28 = vunpack.i.l.bf16 %v6657_v1  ;;  %v1705_v14 = vsel %vm1686_vm4, %v1672_v62, %v4713_v11  ;;  %v1706_v36 = vsel %vm1686_vm4, %v1673_v48, %v4714_v35  ;;  %v8830_v62 = vld [vmem:[#allocation38_spill] sm:$0xff] }
 0x1ce   : > { %v5034_v12 = vunpack.i.h.bf16 %v5032_v46  ;;  %v5033_v31 = vunpack.i.l.bf16 %v5032_v46  ;;  %v4604_v37 = vunpack.i.h.bf16 %v8828_v52  ;;  %v4603_v51 = vunpack.i.l.bf16 %v8828_v52 }
 0x1cf   : > { %v5042_v18 = vpop.permute.xlu0 %5041  ;;  %v1738_v26 = vsel %vm1719_vm5, %v1705_v14, %v4793_v24  ;;  %v1739_v50 = vsel %vm1719_vm5, %v1706_v36, %v4794_v27  ;;  %v1627_v1 = vsel %vm1620_vm2, %v6661_v40, %v4523_v13  ;;  %v8829_v3 = vunpack.i.h.bf16 %v6196_v34  ;;  %v8834_v14 = vld [vmem:[#allocation34_spill] sm:$0xff] }
 0x1d0   : > { %v5044_v4 = vunpack.i.h.bf16 %v5042_v18  ;;  %v5043_v45 = vunpack.i.l.bf16 %v5042_v18  ;;  %v1771_v41 = vsel %vm1752_vm6, %v1738_v26, %v4873_v25  ;;  %v1772_v19 = vsel %vm1752_vm6, %v1739_v50, %v4874_v63  ;;  %v8833_v25 = vld [vmem:[#allocation19_spill] sm:$0xff] }
 0x1d1   : > { %v1628_v30 = vsel %vm1620_vm2, %v6675_v2, %v8829_v3  ;;  %v4684_v44 = vunpack.i.h.bf16 %v8830_v62  ;;  %v4683_v21 = vunpack.i.l.bf16 %v8830_v62  ;;  %v1804_v54 = vsel %vm1785_vm7, %v1771_v41, %v4953_v28  ;;  %v5708_v62 = vld [vmem:[%s5785_s26 + $0xf8] sm:$0xff] }
 0x1d2   : > { %v6910_v56 = vsel %vm1818_vm8, %v1808_v32, %v5043_v45  ;;  %v6913_v57 = vsel %vm1818_vm8, %v1809_v38, %v5044_v4  ;;  %v1805_v40 = vsel %vm1785_vm7, %v1772_v19, %v4954_v43  ;;  %v1837_v20 = vsel %vm1818_vm8, %v1804_v54, %v5033_v31 }
 0x1d3   : > { %v1862_v60 = vpack.c.bf16 %v6913_v57, %v6910_v56  ;;  %v1838_v2 = vsel %vm1818_vm8, %v1805_v40, %v5034_v12  ;;  %v1660_v35 = vsel %vm1653_vm3, %v1627_v1, %v4603_v51  ;;  %v1661_v11 = vsel %vm1653_vm3, %v1628_v30, %v4604_v37  ;;  %v8836_v1 = vld [vmem:[#allocation41_spill] sm:$0xff]  ;;  %v5037_v40 = vpop.permute.xlu2 %5036 }
 0x1d4   : > { %v4764_v22 = vunpack.i.h.bf16 %v8831_v33  ;;  %v4763_v18 = vunpack.i.l.bf16 %v8831_v33  ;;  %v4844_v17 = vunpack.i.h.bf16 %v8832_v47  ;;  %v4843_v4 = vunpack.i.l.bf16 %v8832_v47  ;;  %v8845_v57 = vld [vmem:[#allocation45_spill] sm:$0xff] }
 0x1d5   : > { %4339 = vmatmul.msk.bf16.gmra.mxu0 %vm1907_vm9, %v1853_v42  ;;  %v4924_v27 = vunpack.i.h.bf16 %v6558_v6  ;;  %v4923_v24 = vunpack.i.l.bf16 %v6558_v6  ;;  %v1860_v46 = vpack.c.bf16 %v1838_v2, %v1837_v20  ;;  %v1693_v38 = vsel %vm1686_vm4, %v1660_v35, %v4683_v21  ;;  %v8837_v21 = vld [vmem:[#allocation46_spill] sm:$0xff]  ;;  %v8838_v20 = vld [vmem:[#allocation68_spill] sm:$0xff] }
 0x1d6   : > { %v1694_v5 = vsel %vm1686_vm4, %v1661_v11, %v4684_v44  ;;  %v5003_v63 = vunpack.i.l.bf16 %v6810_v55  ;;  %v4558_v48 = vunpack.i.l.bf16 %v8833_v25  ;;  %v1726_v43 = vsel %vm1719_vm5, %v1693_v38, %v4763_v18 }
 0x1d7   : > { %v5057_v42 = vpop.permute.xlu0 %5056  ;;  %v1727_v6 = vsel %vm1719_vm5, %v1694_v5, %v4764_v22  ;;  %v4559_v28 = vunpack.i.h.bf16 %v8833_v25  ;;  %v4638_v36 = vunpack.i.l.bf16 %v8834_v14  ;;  %v1759_v12 = vsel %vm1752_vm6, %v1726_v43, %v4843_v4  ;;  %v8840_v43 = vld [vmem:[#allocation14_spill] sm:$0xff] }
 0x1d8   : > { %v5059_v13 = vunpack.i.h.bf16 %v5057_v42  ;;  %v5058_v34 = vunpack.i.l.bf16 %v5057_v42  ;;  %v1760_v31 = vsel %vm1752_vm6, %v1727_v6, %v4844_v17  ;;  %v8835_v52 = vunpack.i.l.bf16 %v6158_v7 }
 0x1d9   : > { %v4639_v51 = vunpack.i.h.bf16 %v8834_v14  ;;  %v1792_v26 = vsel %vm1785_vm7, %v1759_v12, %v4923_v24  ;;  %v1793_v50 = vsel %vm1785_vm7, %v1760_v31, %v4924_v27  ;;  %v4719_v3 = vunpack.i.h.bf16 %v8836_v1  ;;  %v8842_v12 = vld [vmem:[#allocation25_spill] sm:$0xff] }
 0x1da   : > { %v6956_v45 = vsel %vm1818_vm8, %v6568_v61, %v5058_v34  ;;  %v6960_v15 = vsel %vm1818_vm8, %v6571_v9, %v5059_v13  ;;  %v5004_v61 = vunpack.i.h.bf16 %v6810_v55  ;;  %v4479_v9 = vunpack.i.h.bf16 %v6158_v7  ;;  %v5707_v55 = vld [vmem:[%s5785_s26 + $0xf0] sm:$0xff] }
 0x1db   : > { %v1865_v32 = vpack.c.bf16 %v6960_v15, %v6956_v45  ;;  %v1608_v37 = vsel %vm1587_vm1, %v5707_v55, %v8835_v52  ;;  %v4718_v30 = vunpack.i.l.bf16 %v8836_v1  ;;  %v1825_v41 = vsel %vm1818_vm8, %v1792_v26, %v5003_v63  ;;  %v5717_v45 = vld [vmem:[%s5785_s26 + $0x168] sm:$0xff] }
 0x1dc   : > { %v1826_v19 = vsel %vm1818_vm8, %v1793_v50, %v5004_v61  ;;  %v1609_v44 = vsel %vm1587_vm1, %v5708_v62, %v4479_v9  ;;  %v1641_v7 = vsel %vm1620_vm2, %v1608_v37, %v4558_v48  ;;  %v4799_v42 = vunpack.i.h.bf16 %v8837_v21  ;;  %v8844_v37 = vld [vmem:[#allocation29_spill] sm:$0xff]  ;;  %v5709_v50 = vld [vmem:[%s5785_s26 + $0xa8] sm:$0xff] }
 0x1dd   : > { %4346 = vmatmul.msk.bf16.gmra.mxu2 %vm1907_vm9, %v1860_v46  ;;  %v4798_v54 = vunpack.i.l.bf16 %v8837_v21  ;;  %v1642_v13 = vsel %vm1620_vm2, %v1609_v44, %v4559_v28  ;;  %v1674_v34 = vsel %vm1653_vm3, %v1641_v7, %v4638_v36  ;;  %v4879_v2 = vunpack.i.h.bf16 %v8838_v20  ;;  %v8841_v28 = vld [vmem:[#allocation18_spill] sm:$0xff]  ;;  %v8846_v44 = vld [vmem:[#allocation56_spill] sm:$0xff] }
 0x1de   : > { %v4878_v35 = vunpack.i.l.bf16 %v8838_v20  ;;  %v1675_v11 = vsel %vm1653_vm3, %v1642_v13, %v4639_v51  ;;  %v4959_v33 = vunpack.i.h.bf16 %v6655_v29  ;;  %v4958_v22 = vunpack.i.l.bf16 %v6655_v29  ;;  %v8847_v13 = vld [vmem:[#allocation60_spill] sm:$0xff] }
 0x1df   : > { %v1854_v18 = vpack.c.bf16 %v1826_v19, %v1825_v41  ;;  %v1707_v47 = vsel %vm1686_vm4, %v1674_v34, %v4718_v30  ;;  %v1708_v17 = vsel %vm1686_vm4, %v1675_v11, %v4719_v3  ;;  %v5039_v4 = vunpack.i.h.bf16 %v5037_v40  ;;  %v5710_v30 = vld [vmem:[%s5785_s26 + $0x120] sm:$0xff]  ;;  %v5711_v19 = vld [vmem:[%s5785_s26 + $0x128] sm:$0xff] }
 0x1e0   : > { %v5038_v27 = vunpack.i.l.bf16 %v5037_v40  ;;  %v1740_v24 = vsel %vm1719_vm5, %v1707_v47, %v4798_v54  ;;  %v1741_v46 = vsel %vm1719_vm5, %v1708_v17, %v4799_v42  ;;  %v8839_v48 = vpack.c.bf16 %v6671_v16, %v6668_v58  ;;  %v8843_v16 = vld [vmem:[#allocation15_spill] sm:$0xff]  ;;  %v5047_v42 = vpop.permute.xlu1 %5046 }
 0x1e1   : > { %v1773_v38 = vsel %vm1752_vm6, %v1740_v24, %v4878_v35  ;;  %v1774_v5 = vsel %vm1752_vm6, %v1741_v46, %v4879_v2  ;;  %v4463_v6 = vunpack.i.l.bf16 %v8840_v43  ;;  %v4489_v14 = vunpack.i.h.bf16 %v8841_v28  ;;  %v8848_v24 = vld [vmem:[#allocation22_spill] sm:$0xff] }
 0x1e2   : > { %v1806_v61 = vsel %vm1785_vm7, %v1773_v38, %v4958_v22  ;;  %v1807_v29 = vsel %vm1785_vm7, %v1774_v5, %v4959_v33  ;;  %v4488_v36 = vunpack.i.l.bf16 %v8841_v28  ;;  %v4569_v31 = vunpack.i.h.bf16 %v8842_v12 }
 0x1e3   : > { %v1839_v63 = vsel %vm1818_vm8, %v1806_v61, %v5038_v27  ;;  %v1840_v9 = vsel %vm1818_vm8, %v1807_v29, %v5039_v4  ;;  %v4568_v55 = vunpack.i.l.bf16 %v8842_v12  ;;  %v4464_v58 = vunpack.i.h.bf16 %v8840_v43  ;;  %v5712_v4 = vld [vmem:[%s5785_s26 + $0x90] sm:$0xff]  ;;  %v8849_v61 = vld [vmem:[#allocation24_spill] sm:$0xff] }
 0x1e4   : > { %v1861_v25 = vpack.c.bf16 %v1840_v9, %v1839_v63  ;;  %v4459_v52 = vunpack.i.h.bf16 %v8843_v16  ;;  %v4649_v51 = vunpack.i.h.bf16 %v8844_v37  ;;  %v4648_v26 = vunpack.i.l.bf16 %v8844_v37  ;;  %v8852_v37 = vld [vmem:[#allocation50_spill] sm:$0xff] }
 0x1e5   : > { %4340 = vmatmul.msk.bf16.gmra.mxu0 %vm1907_vm9, %v1854_v18  ;;  %v7033_v1 = vsel %vm1587_vm1, %v5709_v50, %v4463_v6  ;;  %v4458_v56 = vunpack.i.l.bf16 %v8843_v16  ;;  %v4728_v3 = vunpack.i.l.bf16 %v8845_v57  ;;  %v1612_v41 = vsel %vm1587_vm1, %v5710_v30, %v4488_v36  ;;  %v8854_v30 = vld [vmem:[#allocation73_spill] sm:$0xff] }
 0x1e6   : > { %v1613_v62 = vsel %vm1587_vm1, %v5711_v19, %v4489_v14  ;;  %v4809_v7 = vunpack.i.h.bf16 %v8846_v44  ;;  %v4808_v21 = vunpack.i.l.bf16 %v8846_v44  ;;  %v1645_v54 = vsel %vm1620_vm2, %v1612_v41, %v4568_v55 }
 0x1e7   : > { %v1646_v40 = vsel %vm1620_vm2, %v1613_v62, %v4569_v31  ;;  %v4889_v34 = vunpack.i.h.bf16 %v8847_v13  ;;  %v4888_v20 = vunpack.i.l.bf16 %v8847_v13  ;;  %v1678_v2 = vsel %vm1653_vm3, %v1645_v54, %v4648_v26  ;;  %v8851_v31 = vld [vmem:[#allocation17_spill] sm:$0xff] }
 0x1e8   : > { %v1679_v35 = vsel %vm1653_vm3, %v1646_v40, %v4649_v51  ;;  %v4969_v11 = vunpack.i.h.bf16 %v6712_v23  ;;  %v4968_v33 = vunpack.i.l.bf16 %v6712_v23  ;;  %v1711_v22 = vsel %vm1686_vm4, %v1678_v2, %v4728_v3  ;;  %v8855_v40 = vld [vmem:[#allocation21_spill] sm:$0xff] }
 0x1e9   : > { %v5049_v47 = vunpack.i.h.bf16 %v5047_v42  ;;  %v5048_v17 = vunpack.i.l.bf16 %v5047_v42  ;;  %v1600_v27 = vsel %vm1587_vm1, %v5712_v4, %v4458_v56  ;;  %v4538_v46 = vunpack.i.l.bf16 %v8848_v24  ;;  %v8853_v56 = vld [vmem:[#allocation55_spill] sm:$0xff] }
 0x1ea   : > { %v1744_v38 = vsel %vm1719_vm5, %v1711_v22, %v4808_v21  ;;  %v4539_v23 = vunpack.i.h.bf16 %v8848_v24  ;;  %v4618_v29 = vunpack.i.l.bf16 %v8849_v61  ;;  %v4619_v6 = vunpack.i.h.bf16 %v8849_v61 }
 0x1eb   : > { %v1777_v63 = vsel %vm1752_vm6, %v1744_v38, %v4888_v20  ;;  %v4699_v53 = vunpack.i.h.bf16 %v8850_v59  ;;  %v4493_v55 = vunpack.i.l.bf16 %v8851_v31  ;;  %v1633_v16 = vsel %vm1620_vm2, %v1600_v27, %v4538_v46  ;;  %v8857_v27 = vld [vmem:[#allocation44_spill] sm:$0xff] }
 0x1ec   : > { %v1810_v28 = vsel %vm1785_vm7, %v1777_v63, %v4968_v33  ;;  %v4778_v51 = vunpack.i.l.bf16 %v8852_v37  ;;  %v1666_v50 = vsel %vm1653_vm3, %v1633_v16, %v4618_v29  ;;  %v4939_v41 = vunpack.i.h.bf16 %v8854_v30  ;;  %v8858_v63 = vld [vmem:[#allocation48_spill] sm:$0xff] }
 0x1ed   : > { %4347 = vmatmul.msk.bf16.gmra.mxu2 %vm1907_vm9, %v1861_v25  ;;  %v5713_v25 = vld [vmem:[%s5785_s26 + $0x98] sm:$0xff]  ;;  %v1843_v36 = vsel %vm1818_vm8, %v1810_v28, %v5048_v17  ;;  %v4938_v19 = vunpack.i.l.bf16 %v8854_v30  ;;  %v5019_v21 = vunpack.i.h.bf16 %v6864_v8  ;;  %v5018_v42 = vunpack.i.l.bf16 %v6864_v8 }
 0x1ee   : > { %v4494_v54 = vunpack.i.h.bf16 %v8851_v31  ;;  %v4573_v13 = vunpack.i.l.bf16 %v8855_v40  ;;  %v4574_v2 = vunpack.i.h.bf16 %v8855_v40  ;;  %v5714_v8 = vld [vmem:[%s5785_s26 + $0x138] sm:$0xff]  ;;  %v4734_v24 = vunpack.i.h.bf16 %v8857_v27 }
 0x1ef   : > { %v4733_v46 = vunpack.i.l.bf16 %v8857_v27  ;;  %v5735_v40 = vmov 0.0  }
 0x1f0   : > { %2081 = vst.msk [vmem:[#allocation2] sm:$0xff] %vm1587_vm1, %v5735_v40 }
 0x1f1   : > { %2082 = vst.msk [vmem:[#allocation2 + $0x8] sm:$0xff] %vm1587_vm1, %v5735_v40 }
 0x1f2   : > { %2086 = vst.msk [vmem:[#allocation2 + $0x198] sm:$0xff] %vm1587_vm1, %v5735_v40 }
 0x1f3   : > { %2087 = vst.msk [vmem:[#allocation2 + $0x1a0] sm:$0xff] %vm1587_vm1, %v5735_v40 }
 0x1f4   : > { %2090 = vst.msk [vmem:[#allocation2] sm:$0x1] %vm2089_vm10, %v5735_v40 }
 0x1f5   : > { %4341 = vmatmul.msk.bf16.gmra.mxu0 %vm1907_vm9, %v8839_v48  ;;  %v1601_v48 = vsel %vm1587_vm1, %v5713_v25, %v4459_v52  ;;  %v4779_v52 = vunpack.i.h.bf16 %v8852_v37  ;;  %v4813_v25 = vunpack.i.l.bf16 %v8858_v63  ;;  %2091 = vst.msk [vmem:[#allocation2 + $0x18] sm:$0x1] %vm2089_vm10, %v5735_v40 }
 0x1f6   : > { %v1634_v26 = vsel %vm1620_vm2, %v1601_v48, %v4539_v23  ;;  %v5715_v23 = vld [vmem:[%s5785_s26 + $0x140] sm:$0xff]  ;;  %v5052_v48 = vpop.permute.xlu2 %5051  ;;  %2092 = vst.msk [vmem:[#allocation2 + $0x30] sm:$0x1] %vm2089_vm10, %v5735_v40 }
 0x1f7   : > { %v1667_v3 = vsel %vm1653_vm3, %v1634_v26, %v4619_v6  ;;  %v1615_v61 = vsel %vm1587_vm1, %v5715_v23, %v4494_v54  ;;  %v5054_v37 = vunpack.i.h.bf16 %v5052_v48  ;;  %2093 = vst.msk [vmem:[#allocation2 + $0x48] sm:$0x1] %vm2089_vm10, %v5735_v40 }
 0x1f8   : > { %v1648_v6 = vsel %vm1620_vm2, %v1615_v61, %v4574_v2  ;;  %2094 = vst.msk [vmem:[#allocation2 + $0x60] sm:$0x1] %vm2089_vm10, %v5735_v40 }
 0x1f9   : > { %2095 = vst.msk [vmem:[#allocation2 + $0x78] sm:$0x1] %vm2089_vm10, %v5735_v40 }
 0x1fa   : > { %2096 = vst.msk [vmem:[#allocation2 + $0x90] sm:$0x1] %vm2089_vm10, %v5735_v40 }
 0x1fb   : > { %2097 = vst.msk [vmem:[#allocation2 + $0xa8] sm:$0x1] %vm2089_vm10, %v5735_v40 }
 0x1fc   : > { %2098 = vst.msk [vmem:[#allocation2 + $0xc0] sm:$0x1] %vm2089_vm10, %v5735_v40 }
 0x1fd   : > { %4348 = vmatmul.msk.bf16.gmra.mxu2 %vm1907_vm9, %v1862_v60  ;;  %v4729_v60 = vunpack.i.h.bf16 %v8845_v57  ;;  %v4859_v57 = vunpack.i.h.bf16 %v8853_v56  ;;  %2099 = vst.msk [vmem:[#allocation2 + $0xd8] sm:$0x1] %vm2089_vm10, %v5735_v40 }
 0x1fe   : > { %2100 = vst.msk [vmem:[#allocation2 + $0xf0] sm:$0x1] %vm2089_vm10, %v5735_v40 }
 0x1ff   : > { %v1712_v18 = vsel %vm1686_vm4, %v1679_v35, %v4729_v60  ;;  %v4858_v60 = vunpack.i.l.bf16 %v8853_v56  ;;  %v8856_v35 = vld [vmem:[#allocation36_spill] sm:$0xff]  ;;  %2101 = vst.msk [vmem:[#allocation2 + $0x108] sm:$0x1] %vm2089_vm10, %v5735_v40 }
 0x200   : > { %v1745_v5 = vsel %vm1719_vm5, %v1712_v18, %v4809_v7  ;;  %v1700_v7 = vsel %vm1686_vm4, %v1667_v3, %v4699_v53  ;;  %v1614_v18 = vsel %vm1587_vm1, %v5714_v8, %v4493_v55  ;;  %v8861_v3 = vld [vmem:[#allocation32_spill] sm:$0xff]  ;;  %2102 = vst.msk [vmem:[#allocation2 + $0x120] sm:$0x1] %vm2089_vm10, %v5735_v40 }
 0x201   : > { %v1778_v9 = vsel %vm1752_vm6, %v1745_v5, %v4889_v34  ;;  %v1733_v20 = vsel %vm1719_vm5, %v1700_v7, %v4779_v52  ;;  %v1647_v29 = vsel %vm1620_vm2, %v1614_v18, %v4573_v13  ;;  %v5053_v52 = vunpack.i.l.bf16 %v5052_v48  ;;  %v8865_v18 = vld [vmem:[#allocation11_spill] sm:$0xff]  ;;  %2103 = vst.msk [vmem:[#allocation2 + $0x138] sm:$0x1] %vm2089_vm10, %v5735_v40 }
 0x202   : > { %v1811_v14 = vsel %vm1785_vm7, %v1778_v9, %v4969_v11  ;;  %v4653_v11 = vunpack.i.l.bf16 %v8856_v35  ;;  %v1766_v22 = vsel %vm1752_vm6, %v1733_v20, %v4859_v57  ;;  %v4814_v9 = vunpack.i.h.bf16 %v8858_v63  ;;  %v8863_v20 = vld [vmem:[#allocation43_spill] sm:$0xff]  ;;  %2104 = vst.msk [vmem:[#allocation2 + $0x150] sm:$0x1] %vm2089_vm10, %v5735_v40 }
 0x203   : > { %v1844_v12 = vsel %vm1818_vm8, %v1811_v14, %v5049_v47  ;;  %v4654_v47 = vunpack.i.h.bf16 %v8856_v35  ;;  %v1799_v4 = vsel %vm1785_vm7, %v1766_v22, %v4939_v41  ;;  %v8859_v14 = vld [vmem:[#allocation70_spill] sm:$0xff]  ;;  %v4623_v30 = vunpack.i.l.bf16 %v8861_v3  ;;  %2105 = vst.msk [vmem:[#allocation2 + $0x168] sm:$0x1] %vm2089_vm10, %v5735_v40 }
 0x204   : > { %v1863_v62 = vpack.c.bf16 %v1844_v12, %v1843_v36  ;;  %v1832_v5 = vsel %vm1818_vm8, %v1799_v4, %v5019_v21  ;;  %v1680_v28 = vsel %vm1653_vm3, %v1647_v29, %v4653_v11  ;;  %v4893_v53 = vunpack.i.l.bf16 %v8859_v14  ;;  %v8862_v21 = vld [vmem:[#allocation39_spill] sm:$0xff]  ;;  %2106 = vst.msk [vmem:[#allocation2 + $0x180] sm:$0x1] %vm2089_vm10, %v5735_v40 }
 0x205   : > { %4342 = vmatmul.msk.bf16.gmra.mxu0 %vm1907_vm9, %v1856_v49  ;;  %v4698_v49 = vunpack.i.l.bf16 %v8850_v59  ;;  %v4894_v59 = vunpack.i.h.bf16 %v8859_v14  ;;  %v4974_v36 = vunpack.i.h.bf16 %v6710_v10  ;;  %v4973_v12 = vunpack.i.l.bf16 %v6710_v10  ;;  %2107 = vst.msk [vmem:[#allocation2 + $0x198] sm:$0x1] %vm2089_vm10, %v5735_v40 }
 0x206   : > { %v1713_v55 = vsel %vm1686_vm4, %v1680_v28, %v4733_v46  ;;  %v4703_v54 = vunpack.i.l.bf16 %v8862_v21  ;;  %v4784_v2 = vunpack.i.h.bf16 %v8863_v20  ;;  %v4783_v35 = vunpack.i.l.bf16 %v8863_v20  ;;  %2109 = vst.msk [vmem:[#allocation2 + $0x29] sm:$0x1] %vm2089_vm10, %v5735_v40 }
 0x207   : > { %v1699_v44 = vsel %vm1686_vm4, %v1666_v50, %v4698_v49  ;;  %v1681_v49 = vsel %vm1653_vm3, %v1648_v6, %v4654_v47  ;;  %v1746_v56 = vsel %vm1719_vm5, %v1713_v55, %v4813_v25  ;;  %v4944_v47 = vunpack.i.h.bf16 %v8865_v18  ;;  %v8866_v6 = vld [vmem:[#allocation20_spill] sm:$0xff]  ;;  %v7226_v55 = vld [vmem:[%s8622_s3] ss:$0 sm:$0xff]  ;;  %2110 = vst.msk [vmem:[#allocation2 + $0x41] sm:$0x1] %vm2089_vm10, %v5735_v40 }
 0x208   : > { %v1732_v34 = vsel %vm1719_vm5, %v1699_v44, %v4778_v51  ;;  %v1714_v16 = vsel %vm1686_vm4, %v1681_v49, %v4734_v24  ;;  %v8860_v51 = vld [vmem:[#allocation16_spill] sm:$0xff]  ;;  %v1779_v41 = vsel %vm1752_vm6, %v1746_v56, %v4893_v53  ;;  %v5024_v46 = vunpack.i.h.bf16 %v6942_v0  ;;  %2111 = vst.msk [vmem:[#allocation2 + $0x59] sm:$0x1] %vm2089_vm10, %v5735_v40 }
 0x209   : > { %v1765_v33 = vsel %vm1752_vm6, %v1732_v34, %v4858_v60  ;;  %v4544_v26 = vunpack.i.h.bf16 %v8860_v51  ;;  %v4543_v50 = vunpack.i.l.bf16 %v8860_v51  ;;  %v1747_v57 = vsel %vm1719_vm5, %v1714_v16, %v4814_v9  ;;  %v5716_v60 = vld [vmem:[%s5785_s26 + $0xb0] sm:$0xff]  ;;  %2112 = vst.msk [vmem:[#allocation2 + $0x71] sm:$0x1] %vm2089_vm10, %v5735_v40 }
 0x20a   : > { %v1798_v17 = vsel %vm1785_vm7, %v1765_v33, %v4938_v19  ;;  %v1603_v10 = vsel %vm1587_vm1, %v5716_v60, %v4464_v58  ;;  %v1780_v19 = vsel %vm1752_vm6, %v1747_v57, %v4894_v59  ;;  %v1812_v44 = vsel %vm1785_vm7, %v1779_v41, %v4973_v12  ;;  %v8864_v33 = vld [vmem:[#allocation65_spill] sm:$0xff]  ;;  %v8867_v59 = vld [vmem:[#allocation28_spill] sm:$0xff]  ;;  %v5062_v60 = vpop.permute.xlu1 %5061  ;;  %2113 = vst.msk [vmem:[#allocation2 + $0x89] sm:$0x1] %vm2089_vm10, %v5735_v40 }
 0x20b   : > { %v1831_v38 = vsel %vm1818_vm8, %v1798_v17, %v5018_v42  ;;  %v1813_v7 = vsel %vm1785_vm7, %v1780_v19, %v4974_v36  ;;  %v4704_v42 = vunpack.i.h.bf16 %v8862_v21  ;;  %v1845_v43 = vsel %vm1818_vm8, %v1812_v44, %v5053_v52  ;;  %v8868_v36 = vld [vmem:[#allocation30_spill] sm:$0xff]  ;;  %v5718_v52 = vld [vmem:[%s5785_s26 + $0x170] sm:$0xff]  ;;  %2114 = vst.msk [vmem:[#allocation2 + $0xa1] sm:$0x1] %vm2089_vm10, %v5735_v40 }
 0x20c   : > { %v1857_v31 = vpack.c.bf16 %v1832_v5, %v1831_v38  ;;  %v1846_v58 = vsel %vm1818_vm8, %v1813_v7, %v5054_v37  ;;  %v1635_v13 = vsel %vm1620_vm2, %v7033_v1, %v4543_v50  ;;  %v1636_v34 = vsel %vm1620_vm2, %v1603_v10, %v4544_v26  ;;  %v8870_v50 = vld [vmem:[#allocation59_spill] sm:$0xff]  ;;  %2115 = vst.msk [vmem:[#allocation2 + $0xb9] sm:$0x1] %vm2089_vm10, %v5735_v40 }
 0x20d   : > { %4349 = vmatmul.msk.bf16.gmra.mxu2 %vm1907_vm9, %v1863_v62  ;;  %v4624_v62 = vunpack.i.h.bf16 %v8861_v3  ;;  %v1668_v11 = vsel %vm1653_vm3, %v1635_v13, %v4623_v30  ;;  %v4864_v22 = vunpack.i.h.bf16 %v8864_v33  ;;  %v4863_v8 = vunpack.i.l.bf16 %v8864_v33  ;;  %v8871_v30 = vld [vmem:[#allocation62_spill] sm:$0xff]  ;;  %2116 = vst.msk [vmem:[#allocation2 + $0xd1] sm:$0x1] %vm2089_vm10, %v5735_v40 }
 0x20e   : > { %v4943_v17 = vunpack.i.l.bf16 %v8865_v18  ;;  %v1864_v4 = vpack.c.bf16 %v1846_v58, %v1845_v43  ;;  %v1701_v27 = vsel %vm1686_vm4, %v1668_v11, %v4703_v54  ;;  %v5023_v38 = vunpack.i.l.bf16 %v6942_v0  ;;  %2117 = vst.msk [vmem:[#allocation2 + $0xe9] sm:$0x1] %vm2089_vm10, %v5735_v40 }
 0x20f   : > { %v1669_v1 = vsel %vm1653_vm3, %v1636_v34, %v4624_v62  ;;  %v1734_v5 = vsel %vm1719_vm5, %v1701_v27, %v4783_v35  ;;  %v4503_v28 = vunpack.i.l.bf16 %v8866_v6  ;;  %v4504_v14 = vunpack.i.h.bf16 %v8866_v6  ;;  %2084 = vst.msk [vmem:[#allocation2 + $0x10] sm:$0x3] %vm2083_vm11, %v5735_v40 }
 0x210   : > { %v1702_v24 = vsel %vm1686_vm4, %v1669_v1, %v4704_v42  ;;  %v1767_v61 = vsel %vm1752_vm6, %v1734_v5, %v4863_v8  ;;  %v4583_v53 = vunpack.i.l.bf16 %v8867_v59  ;;  %v4584_v49 = vunpack.i.h.bf16 %v8867_v59  ;;  %2088 = vst.msk [vmem:[#allocation2 + $0x1a8] sm:$0x3] %vm2083_vm11, %v5735_v40 }
 0x211   : > { %v1735_v23 = vsel %vm1719_vm5, %v1702_v24, %v4784_v2  ;;  %v1800_v0 = vsel %vm1785_vm7, %v1767_v61, %v4943_v17  ;;  %v4663_v12 = vunpack.i.l.bf16 %v8868_v36  ;;  %v1618_v15 = vsel %vm1587_vm1, %v5717_v45, %v4503_v28  ;;  %2108 = vst.msk [vmem:[#allocation2 + $0x11] sm:$0x1] %vm2089_vm10, %v5735_v40 }
 0x212   : > { %v1768_v29 = vsel %vm1752_vm6, %v1735_v23, %v4864_v22  ;;  %v1833_v9 = vsel %vm1818_vm8, %v1800_v0, %v5023_v38  ;;  %v1619_v51 = vsel %vm1587_vm1, %v5718_v52, %v4504_v14  ;;  %v1651_v26 = vsel %vm1620_vm2, %v1618_v15, %v4583_v53  ;;  %2118 = vst.msk [vmem:[#allocation2 + $0x101] sm:$0x1] %vm2089_vm10, %v5735_v40 }
 0x213   : > { %v1801_v63 = vsel %vm1785_vm7, %v1768_v29, %v4944_v47  ;;  %v4824_v56 = vunpack.i.h.bf16 %v8870_v50  ;;  %v4823_v57 = vunpack.i.l.bf16 %v8870_v50  ;;  %v1652_v10 = vsel %vm1620_vm2, %v1619_v51, %v4584_v49  ;;  %2119 = vst.msk [vmem:[#allocation2 + $0x119] sm:$0x1] %vm2089_vm10, %v5735_v40 }
 0x214   : > { %v1834_v25 = vsel %vm1818_vm8, %v1801_v63, %v5024_v46  ;;  %v1684_v3 = vsel %vm1653_vm3, %v1651_v26, %v4663_v12  ;;  %v4904_v41 = vunpack.i.h.bf16 %v8871_v30  ;;  %v4903_v19 = vunpack.i.l.bf16 %v8871_v30  ;;  %2120 = vst.msk [vmem:[#allocation2 + $0x131] sm:$0x1] %vm2089_vm10, %v5735_v40 }
 0x215   : > { %4343 = vmatmul.msk.bf16.gmra.mxu0 %vm1907_vm9, %v1857_v31  ;;  %v1858_v48 = vpack.c.bf16 %v1834_v25, %v1833_v9  ;;  %v4664_v31 = vunpack.i.h.bf16 %v8868_v36  ;;  %v4984_v7 = vunpack.i.h.bf16 %v6751_v39  ;;  %v4983_v21 = vunpack.i.l.bf16 %v6751_v39  ;;  %2121 = vst.msk [vmem:[#allocation2 + $0x149] sm:$0x1] %vm2089_vm10, %v5735_v40 }
 0x216   : > { %v5064_v58 = vunpack.i.h.bf16 %v5062_v60  ;;  %v5063_v13 = vunpack.i.l.bf16 %v5062_v60  ;;  %v2192_v27 = vld [vmem:[#allocation2 + $0x9] sm:$0xff]  ;;  %2122 = vst.msk [vmem:[#allocation2 + $0x161] sm:$0x1] %vm2089_vm10, %v5735_v40 }
 0x217   : > { %v1685_v44 = vsel %vm1653_vm3, %v1652_v10, %v4664_v31  ;;  %2123 = vst.msk [vmem:[#allocation2 + $0x179] sm:$0x1] %vm2089_vm10, %v5735_v40 }
 0x218   : > { %2124 = vst.msk [vmem:[#allocation2 + $0x191] sm:$0x1] %vm2089_vm10, %v5735_v40 }
 0x219   : > { %2125 = vst.msk [vmem:[#allocation2 + $0x1a9] sm:$0x1] %vm2089_vm10, %v5735_v40 }
 0x21d   : > { %4350 = vmatmul.msk.bf16.gmra.mxu2 %vm1907_vm9, %v1864_v4  ;;  %v2191_v4 = vld [vmem:[#allocation2 + $0x1] sm:$0xff] }
 0x21e   : > { %v5065_v24 = vpack.i.bf16 %v2192_v27, %v2191_v4 }
 0x220   : > { %5066 = vrot.lane.b32.xlu2 %v5065_v24, %s5727_s27 }
 0x225   : > { %4344 = vmatmul.msk.bf16.gmra.mxu0 %vm1907_vm9, %v1858_v48 }
 0x22d   : > { %4351 = vmatmul.msk.bf16.gmra.mxu2 %vm1907_vm9, %v1865_v32  ;;  %v8869_v32 = vld [vmem:[#allocation47_spill] sm:$0xff] }
 0x22e   : > { %v4744_v16 = vunpack.i.h.bf16 %v8869_v32  ;;  %v4743_v37 = vunpack.i.l.bf16 %v8869_v32 }
 0x230   : > { %v1717_v54 = vsel %vm1686_vm4, %v1684_v3, %v4743_v37  ;;  %v1718_v43 = vsel %vm1686_vm4, %v1685_v44, %v4744_v16 }
 0x231   : > { %v1750_v34 = vsel %vm1719_vm5, %v1717_v54, %v4823_v57  ;;  %v1751_v20 = vsel %vm1719_vm5, %v1718_v43, %v4824_v56 }
 0x232   : > { %v1969_v62 = vpop.f32.mrf.mxu0  ;;  %v1783_v39 = vsel %vm1752_vm6, %v1750_v34, %v4903_v19  ;;  %v1784_v35 = vsel %vm1752_vm6, %v1751_v20, %v4904_v41 }
 0x233   : > { %v1970_v42 = vadd.f32 %v7226_v55, %v1969_v62  ;;  %v1816_v11 = vsel %vm1785_vm7, %v1783_v39, %v4983_v21  ;;  %v1817_v33 = vsel %vm1785_vm7, %v1784_v35, %v4984_v7 }
 0x234   : > { %v1849_v22 = vsel %vm1818_vm8, %v1816_v11, %v5063_v13  ;;  %v1850_v8 = vsel %vm1818_vm8, %v1817_v33, %v5064_v58 }
 0x235   : > { %v2049_v2 = vmax.f32 %v1970_v42, 0.0  ;;  %v1866_v47 = vpack.c.bf16 %v1850_v8, %v1849_v22 }
 0x237   : > { %2127 = vst.msk [vmem:[#allocation2 + $0x19] sm:$0xff] %vm1587_vm1, %v2049_v2 }
 0x23a   : > { %v1971_v1 = vpop.f32.mrf.mxu0 }
 0x23b   : > { %v1972_v18 = vadd.f32 %v7226_v55, %v1971_v1 }
 0x23d   : > { %v2050_v17 = vmax.f32 %v1972_v18, 0.0  ;;  %4352 = vmatmul.msk.bf16.gmra.mxu2 %vm1907_vm9, %v1866_v47 }
 0x23e   : > { %v2193_v23 = vld [vmem:[#allocation2 + $0x19] sm:$0xff] }
 0x23f   : > { %2128 = vst.msk [vmem:[#allocation2 + $0x21] sm:$0xff] %vm1587_vm1, %v2050_v17 }
 0x242   : > { %v1974_v46 = vpop.f32.mrf.mxu0 }
 0x243   : > { %v1975_v38 = vadd.f32 %v7226_v55, %v1974_v46 }
 0x245   : > { %v2051_v5 = vmax.f32 %v1975_v38, 0.0 }
 0x246   : > { %v2194_v61 = vld [vmem:[#allocation2 + $0x21] sm:$0xff] }
 0x247   : > { %2129 = vst.msk [vmem:[#allocation2 + $0x31] sm:$0xff] %vm1587_vm1, %v2051_v5  ;;  %v7298_v29 = vpack.i.bf16 %v2194_v61, %v2193_v23 }
 0x249   : > { %5071 = vrot.lane.b32.xlu0 %v7298_v29, %s5727_s27 }
 0x24a   : > { %v1976_v0 = vpop.f32.mrf.mxu0 }
 0x24b   : > { %v1977_v63 = vadd.f32 %v7226_v55, %v1976_v0 }
 0x24d   : > { %v2052_v9 = vmax.f32 %v1977_v63, 0.0 }
 0x24e   : > { %v2195_v59 = vld [vmem:[#allocation2 + $0x31] sm:$0xff] }
 0x24f   : > { %2130 = vst.msk [vmem:[#allocation2 + $0x39] sm:$0xff] %vm1587_vm1, %v2052_v9 }
 0x250   : > { %v2009_v25 = vpop.f32.mrf.mxu2 }
 0x251   : > { %v2010_v48 = vadd.f32 %v7226_v55, %v2009_v25 }
 0x252   : > { %v1979_v40 = vpop.f32.mrf.mxu0 }
 0x253   : > { %v2065_v6 = vmax.f32 %v2010_v48, 0.0  ;;  %v1980_v28 = vadd.f32 %v7226_v55, %v1979_v40 }
 0x255   : > { %2143 = vst.msk [vmem:[#allocation2 + $0xd9] sm:$0xff] %vm1587_vm1, %v2065_v6  ;;  %v2053_v14 = vmax.f32 %v1980_v28, 0.0 }
 0x256   : > { %v2196_v53 = vld [vmem:[#allocation2 + $0x39] sm:$0xff] }
 0x257   : > { %2131 = vst.msk [vmem:[#allocation2 + $0x49] sm:$0xff] %vm1587_vm1, %v2053_v14  ;;  %v7308_v49 = vpack.i.bf16 %v2196_v53, %v2195_v59 }
 0x258   : > { %v2011_v36 = vpop.f32.mrf.mxu2 }
 0x259   : > { %v2012_v12 = vadd.f32 %v7226_v55, %v2011_v36  ;;  %5076 = vrot.lane.b32.xlu1 %v7308_v49, %s5727_s27 }
 0x25a   : > { %v1981_v31 = vpop.f32.mrf.mxu0 }
 0x25b   : > { %v2066_v45 = vmax.f32 %v2012_v12, 0.0  ;;  %v1982_v15 = vadd.f32 %v7226_v55, %v1981_v31 }
 0x25d   : > { %2144 = vst.msk [vmem:[#allocation2 + $0xe1] sm:$0xff] %vm1587_vm1, %v2066_v45  ;;  %v2054_v32 = vmax.f32 %v1982_v15, 0.0 }
 0x25e   : > { %v2197_v56 = vld [vmem:[#allocation2 + $0x49] sm:$0xff] }
 0x25f   : > { %2132 = vst.msk [vmem:[#allocation2 + $0x51] sm:$0xff] %vm1587_vm1, %v2054_v32 }
 0x260   : > { %v2014_v16 = vpop.f32.mrf.mxu2 }
 0x261   : > { %v2015_v37 = vadd.f32 %v7226_v55, %v2014_v16 }
 0x262   : > { %v1984_v52 = vpop.f32.mrf.mxu0 }
 0x263   : > { %v2067_v51 = vmax.f32 %v2015_v37, 0.0  ;;  %v1985_v26 = vadd.f32 %v7226_v55, %v1984_v52 }
 0x265   : > { %2145 = vst.msk [vmem:[#allocation2 + $0xf1] sm:$0xff] %vm1587_vm1, %v2067_v51  ;;  %v2055_v50 = vmax.f32 %v1985_v26, 0.0  ;;  %v2210_v26 = vld [vmem:[#allocation2 + $0xe1] sm:$0xff] }
 0x266   : > { %v2198_v57 = vld [vmem:[#allocation2 + $0x51] sm:$0xff] }
 0x267   : > { %2133 = vst.msk [vmem:[#allocation2 + $0x61] sm:$0xff] %vm1587_vm1, %v2055_v50  ;;  %v7320_v60 = vpack.i.bf16 %v2198_v57, %v2197_v56  ;;  %v2209_v56 = vld [vmem:[#allocation2 + $0xd9] sm:$0xff] }
 0x268   : > { %v2016_v10 = vpop.f32.mrf.mxu2  ;;  %v7372_v57 = vpack.i.bf16 %v2210_v26, %v2209_v56  ;;  %v2227_v56 = vld [vmem:[#allocation2 + $0x32] sm:$0xff] }
 0x269   : > { %v2017_v3 = vadd.f32 %v7226_v55, %v2016_v10  ;;  %5081 = vrot.lane.b32.xlu2 %v7320_v60, %s5727_s27 }
 0x26a   : > { %v1986_v30 = vpop.f32.mrf.mxu0 }
 0x26b   : > { %v2068_v41 = vmax.f32 %v2017_v3, 0.0  ;;  %v1987_v19 = vadd.f32 %v7226_v55, %v1986_v30 }
 0x26c   : > { %v2211_v8 = vld [vmem:[#allocation2 + $0xf1] sm:$0xff] }
 0x26d   : > { %2146 = vst.msk [vmem:[#allocation2 + $0xf9] sm:$0xff] %vm1587_vm1, %v2068_v41  ;;  %v2056_v62 = vmax.f32 %v1987_v19, 0.0 }
 0x26e   : > { %v2199_v58 = vld [vmem:[#allocation2 + $0x61] sm:$0xff] }
 0x26f   : > { %2134 = vst.msk [vmem:[#allocation2 + $0x69] sm:$0xff] %vm1587_vm1, %v2056_v62 }
 0x270   : > { %v2019_v44 = vpop.f32.mrf.mxu2 }
 0x271   : > { %v2020_v7 = vadd.f32 %v7226_v55, %v2019_v44 }
 0x272   : > { %v1989_v21 = vpop.f32.mrf.mxu0 }
 0x273   : > { %v2069_v42 = vmax.f32 %v2020_v7, 0.0  ;;  %v1990_v54 = vadd.f32 %v7226_v55, %v1989_v21 }
 0x274   : > { %v2212_v33 = vld [vmem:[#allocation2 + $0xf9] sm:$0xff] }
 0x275   : > { %2147 = vst.msk [vmem:[#allocation2 + $0x109] sm:$0xff] %vm1587_vm1, %v2069_v42  ;;  %v2057_v43 = vmax.f32 %v1990_v54, 0.0  ;;  %v7340_v1 = vpack.i.bf16 %v2212_v33, %v2211_v8 }
 0x276   : > { %v2200_v13 = vld [vmem:[#allocation2 + $0x69] sm:$0xff] }
 0x277   : > { %2135 = vst.msk [vmem:[#allocation2 + $0x79] sm:$0xff] %vm1587_vm1, %v2057_v43  ;;  %v7332_v34 = vpack.i.bf16 %v2200_v13, %v2199_v58 }
 0x278   : > { %v2021_v20 = vpop.f32.mrf.mxu2 }
 0x279   : > { %v2022_v2 = vadd.f32 %v7226_v55, %v2021_v20  ;;  %5086 = vrot.lane.b32.xlu0 %v7332_v34, %s5727_s27 }
 0x27a   : > { %v1991_v39 = vpop.f32.mrf.mxu0 }
 0x27b   : > { %v2070_v35 = vmax.f32 %v2022_v2, 0.0  ;;  %v1992_v11 = vadd.f32 %v7226_v55, %v1991_v39 }
 0x27c   : > { %v2213_v40 = vld [vmem:[#allocation2 + $0x109] sm:$0xff] }
 0x27d   : > { %2148 = vst.msk [vmem:[#allocation2 + $0x111] sm:$0xff] %vm1587_vm1, %v2070_v35  ;;  %v2058_v22 = vmax.f32 %v1992_v11, 0.0 }
 0x27e   : > { %v2201_v46 = vld [vmem:[#allocation2 + $0x79] sm:$0xff] }
 0x27f   : > { %2136 = vst.msk [vmem:[#allocation2 + $0x81] sm:$0xff] %vm1587_vm1, %v2058_v22 }
 0x280   : > { %v2024_v18 = vpop.f32.mrf.mxu2 }
 0x281   : > { %v2025_v47 = vadd.f32 %v7226_v55, %v2024_v18  ;;  %5106 = vrot.lane.b32.xlu0 %v7340_v1, %s5727_s27 }
 0x282   : > { %v1994_v17 = vpop.f32.mrf.mxu0 }
 0x283   : > { %v2071_v4 = vmax.f32 %v2025_v47, 0.0  ;;  %v1995_v27 = vadd.f32 %v7226_v55, %v1994_v17  ;;  %v2223_v47 = vld [vmem:[#allocation2 + $0x2] sm:$0xff]  ;;  %v2224_v17 = vld [vmem:[#allocation2 + $0xa] sm:$0xff] }
 0x284   : > { %v2214_v25 = vld [vmem:[#allocation2 + $0x111] sm:$0xff] }
 0x285   : > { %2149 = vst.msk [vmem:[#allocation2 + $0x121] sm:$0xff] %vm1587_vm1, %v2071_v4  ;;  %v2059_v24 = vmax.f32 %v1995_v27, 0.0  ;;  %v7356_v6 = vpack.i.bf16 %v2214_v25, %v2213_v40  ;;  %v2229_v25 = vld [vmem:[#allocation2 + $0x4a] sm:$0xff] }
 0x286   : > { %v2202_v38 = vld [vmem:[#allocation2 + $0x81] sm:$0xff] }
 0x287   : > { %2137 = vst.msk [vmem:[#allocation2 + $0x91] sm:$0xff] %vm1587_vm1, %v2059_v24  ;;  %v7348_v5 = vpack.i.bf16 %v2202_v38, %v2201_v46  ;;  %v5135_v38 = vpack.i.bf16 %v2224_v17, %v2223_v47  ;;  %v2244_v47 = vld [vmem:[#allocation2 + $0xfa] sm:$0xff] }
 0x288   : > { %v2026_v23 = vpop.f32.mrf.mxu2 }
 0x289   : > { %v2027_v61 = vadd.f32 %v7226_v55, %v2026_v23  ;;  %5091 = vrot.lane.b32.xlu1 %v7348_v5, %s5727_s27 }
 0x28a   : > { %v1996_v0 = vpop.f32.mrf.mxu0 }
 0x28b   : > { %v2072_v63 = vmax.f32 %v2027_v61, 0.0  ;;  %v1997_v9 = vadd.f32 %v7226_v55, %v1996_v0  ;;  %v2225_v0 = vld [vmem:[#allocation2 + $0x1a] sm:$0xff] }
 0x28c   : > { %v2215_v7 = vld [vmem:[#allocation2 + $0x121] sm:$0xff] }
 0x28d   : > { %2150 = vst.msk [vmem:[#allocation2 + $0x129] sm:$0xff] %vm1587_vm1, %v2072_v63  ;;  %v2060_v48 = vmax.f32 %v1997_v9, 0.0  ;;  %v2226_v63 = vld [vmem:[#allocation2 + $0x22] sm:$0xff] }
 0x28e   : > { %v2203_v31 = vld [vmem:[#allocation2 + $0x91] sm:$0xff]  ;;  %v7405_v40 = vpack.i.bf16 %v2226_v63, %v2225_v0 }
 0x28f   : > { %2138 = vst.msk [vmem:[#allocation2 + $0x99] sm:$0xff] %vm1587_vm1, %v2060_v48  ;;  %v2230_v48 = vld [vmem:[#allocation2 + $0x52] sm:$0xff] }
 0x290   : > { %v2029_v28 = vpop.f32.mrf.mxu2 }
 0x291   : > { %v2030_v14 = vadd.f32 %v7226_v55, %v2029_v28  ;;  %5111 = vrot.lane.b32.xlu1 %v7356_v6, %s5727_s27  ;;  %v7409_v28 = vpack.i.bf16 %v2230_v48, %v2229_v25 }
 0x292   : > { %v1999_v59 = vpop.f32.mrf.mxu0 }
 0x293   : > { %v2073_v53 = vmax.f32 %v2030_v14, 0.0  ;;  %v2000_v36 = vadd.f32 %v7226_v55, %v1999_v59  ;;  %8872 = vst [vmem:[#allocation12_spill] sm:$0xff] %v7409_v28 }
 0x294   : > { %v2216_v62 = vld [vmem:[#allocation2 + $0x129] sm:$0xff] }
 0x295   : > { %2151 = vst.msk [vmem:[#allocation2 + $0x139] sm:$0xff] %vm1587_vm1, %v2073_v53  ;;  %v2061_v12 = vmax.f32 %v2000_v36, 0.0  ;;  %v7380_v54 = vpack.i.bf16 %v2216_v62, %v2215_v7  ;;  %v2242_v62 = vld [vmem:[#allocation2 + $0xe2] sm:$0xff] }
 0x296   : > { %v2204_v45 = vld [vmem:[#allocation2 + $0x99] sm:$0xff] }
 0x297   : > { %2139 = vst.msk [vmem:[#allocation2 + $0xa9] sm:$0xff] %vm1587_vm1, %v2061_v12  ;;  %v7364_v15 = vpack.i.bf16 %v2204_v45, %v2203_v31  ;;  %v2235_v12 = vld [vmem:[#allocation2 + $0x92] sm:$0xff]  ;;  %v2236_v31 = vld [vmem:[#allocation2 + $0x9a] sm:$0xff] }
 0x298   : > { %v2031_v32 = vpop.f32.mrf.mxu2 }
 0x299   : > { %v2032_v16 = vadd.f32 %v7226_v55, %v2031_v32  ;;  %5096 = vrot.lane.b32.xlu2 %v7364_v15, %s5727_s27 }
 0x29a   : > { %v2001_v37 = vpop.f32.mrf.mxu0 }
 0x29b   : > { %v2074_v52 = vmax.f32 %v2032_v16, 0.0  ;;  %v2002_v51 = vadd.f32 %v7226_v55, %v2001_v37 }
 0x29c   : > { %v2217_v33 = vld [vmem:[#allocation2 + $0x139] sm:$0xff] }
 0x29d   : > { %2152 = vst.msk [vmem:[#allocation2 + $0x141] sm:$0xff] %vm1587_vm1, %v2074_v52  ;;  %v2062_v50 = vmax.f32 %v2002_v51, 0.0  ;;  %v7423_v51 = vpack.i.bf16 %v2236_v31, %v2235_v12  ;;  %v7479_v31 = vld [vmem:[#allocation2 + $0x18] sm:$0xff] }
 0x29e   : > { %v2205_v21 = vld [vmem:[#allocation2 + $0xa9] sm:$0xff] }
 0x29f   : > { %2140 = vst.msk [vmem:[#allocation2 + $0xb1] sm:$0xff] %vm1587_vm1, %v2062_v50 }
 0x2a0   : > { %v2034_v10 = vpop.f32.mrf.mxu2  ;;  %8873 = vst [vmem:[#allocation13_spill] sm:$0xff] %v7423_v51 }
 0x2a1   : > { %v2035_v3 = vadd.f32 %v7226_v55, %v2034_v10  ;;  %5101 = vrot.lane.b32.xlu2 %v7372_v57, %s5727_s27  ;;  %v2228_v10 = vld [vmem:[#allocation2 + $0x3a] sm:$0xff] }
 0x2a2   : > { %v2004_v30 = vpop.f32.mrf.mxu0 }
 0x2a3   : > { %v2075_v41 = vmax.f32 %v2035_v3, 0.0  ;;  %v2005_v19 = vadd.f32 %v7226_v55, %v2004_v30  ;;  %v2231_v3 = vld [vmem:[#allocation2 + $0x62] sm:$0xff]  ;;  %v2232_v30 = vld [vmem:[#allocation2 + $0x6a] sm:$0xff] }
 0x2a4   : > { %v2218_v35 = vld [vmem:[#allocation2 + $0x141] sm:$0xff]  ;;  %v7431_v7 = vpack.i.bf16 %v2232_v30, %v2231_v3  ;;  %v7499_v3 = vpop.permute.xlu2 %5066  ;;  %v7501_v30 = vld [vmem:[#allocation2 + $0x30] sm:$0xff] }
 0x2a5   : > { %2153 = vst.msk [vmem:[#allocation2 + $0x151] sm:$0xff] %vm1587_vm1, %v2075_v41  ;;  %v2063_v44 = vmax.f32 %v2005_v19, 0.0  ;;  %v7392_v22 = vpack.i.bf16 %v2218_v35, %v2217_v33  ;;  %v2241_v19 = vld [vmem:[#allocation2 + $0xda] sm:$0xff]  ;;  %v2243_v33 = vld [vmem:[#allocation2 + $0xf2] sm:$0xff]  ;;  %v2250_v63 = vld [vmem:[#allocation2 + $0x142] sm:$0xff] }
 0x2a6   : > { %v2206_v42 = vld [vmem:[#allocation2 + $0xb1] sm:$0xff]  ;;  %v2249_v0 = vld [vmem:[#allocation2 + $0x13a] sm:$0xff] }
 0x2a7   : > { %2141 = vst.msk [vmem:[#allocation2 + $0xc1] sm:$0xff] %vm1587_vm1, %v2063_v44  ;;  %v7382_v43 = vpack.i.bf16 %v2206_v42, %v2205_v21  ;;  %v7429_v44 = vpack.i.bf16 %v2228_v10, %v2227_v56  ;;  %v2233_v21 = vld [vmem:[#allocation2 + $0x7a] sm:$0xff]  ;;  %v2234_v42 = vld [vmem:[#allocation2 + $0x82] sm:$0xff]  ;;  %v7466_v48 = vpack.i.bf16 %v2250_v63, %v2249_v0  ;;  %v7553_v63 = vld [vmem:[#allocation2 + $0xf0] sm:$0xff] }
 0x2a8   : > { %v2036_v58 = vpop.f32.mrf.mxu2  ;;  %v7495_v56 = vld [vmem:[#allocation2 + $0x38] sm:$0xff]  ;;  %v7497_v10 = vld [vmem:[#allocation2 + $0x68] sm:$0xff]  ;;  %8885 = vst [vmem:[#allocation72_spill] sm:$0xff] %v7553_v63 }
 0x2a9   : > { %v2037_v13 = vadd.f32 %v7226_v55, %v2036_v58  ;;  %5116 = vrot.lane.b32.xlu2 %v7380_v54, %s5727_s27  ;;  %5121 = vrot.lane.b32.xlu0 %v7382_v43, %s5727_s27  ;;  %v2237_v58 = vld [vmem:[#allocation2 + $0xaa] sm:$0xff]  ;;  %8880 = vst [vmem:[#allocation9_spill] sm:$0xff] %v7466_v48 }
 0x2aa   : > { %v2006_v20 = vpop.f32.mrf.mxu0 }
 0x2ab   : > { %v2076_v2 = vmax.f32 %v2037_v13, 0.0  ;;  %v2007_v39 = vadd.f32 %v7226_v55, %v2006_v20  ;;  %v2238_v13 = vld [vmem:[#allocation2 + $0xb2] sm:$0xff]  ;;  %v2247_v20 = vld [vmem:[#allocation2 + $0x122] sm:$0xff] }
 0x2ac   : > { %v2219_v27 = vld [vmem:[#allocation2 + $0x151] sm:$0xff]  ;;  %v7443_v35 = vpack.i.bf16 %v2238_v13, %v2237_v58  ;;  %v7521_v13 = vld [vmem:[#allocation2 + $0x80] sm:$0xff] }
 0x2ad   : > { %2154 = vst.msk [vmem:[#allocation2 + $0x159] sm:$0xff] %vm1587_vm1, %v2076_v2  ;;  %v2064_v11 = vmax.f32 %v2007_v39, 0.0  ;;  %v2248_v2 = vld [vmem:[#allocation2 + $0x12a] sm:$0xff]  ;;  %v7441_v39 = vpack.i.bf16 %v2234_v42, %v2233_v21  ;;  %v7513_v42 = vld [vmem:[#allocation2 + $0xd8] sm:$0xff] }
 0x2ae   : > { %v2207_v16 = vld [vmem:[#allocation2 + $0xc1] sm:$0xff] }
 0x2af   : > { %2142 = vst.msk [vmem:[#allocation2 + $0xc9] sm:$0xff] %vm1587_vm1, %v2064_v11  ;;  %v7449_v11 = vpack.i.bf16 %v2248_v2, %v2247_v20  ;;  %v7523_v20 = vld [vmem:[#allocation2 + $0xb0] sm:$0xff]  ;;  %v7525_v2 = vld [vmem:[#allocation2 + $0x78] sm:$0xff] }
 0x2b0   : > { %v2039_v8 = vpop.f32.mrf.mxu2  ;;  %8875 = vst [vmem:[#allocation8_spill] sm:$0xff] %v7441_v39 }
 0x2b1   : > { %v2040_v18 = vadd.f32 %v7226_v55, %v2039_v8  ;;  %5126 = vrot.lane.b32.xlu0 %v7392_v22, %s5727_s27  ;;  %8876 = vst [vmem:[#allocation5_spill] sm:$0xff] %v7449_v11 }
 0x2b3   : > { %v2077_v4 = vmax.f32 %v2040_v18, 0.0 }
 0x2b4   : > { %v2220_v24 = vld [vmem:[#allocation2 + $0x159] sm:$0xff] }
 0x2b5   : > { %2155 = vst.msk [vmem:[#allocation2 + $0x169] sm:$0xff] %vm1587_vm1, %v2077_v4  ;;  %v7398_v46 = vpack.i.bf16 %v2220_v24, %v2219_v27  ;;  %v7455_v24 = vpack.i.bf16 %v2244_v47, %v2243_v33  ;;  %v2252_v12 = vld [vmem:[#allocation2 + $0x15a] sm:$0xff]  ;;  %v7527_v33 = vld [vmem:[#allocation2 + $0xa8] sm:$0xff]  ;;  %v5245_v47 = vpack.i.bf16 %v7521_v13, %v7525_v2 }
 0x2b6   : > { %v2208_v53 = vld [vmem:[#allocation2 + $0xc9] sm:$0xff] }
 0x2b7   : > { %5131 = vrot.lane.b32.xlu1 %v7398_v46, %s5727_s27  ;;  %v7417_v52 = vpack.i.bf16 %v2208_v53, %v2207_v16  ;;  %v2239_v8 = vld [vmem:[#allocation2 + $0xc2] sm:$0xff]  ;;  %v2240_v18 = vld [vmem:[#allocation2 + $0xca] sm:$0xff]  ;;  %8878 = vst [vmem:[#allocation3_spill] sm:$0xff] %v7455_v24 }
 0x2b8   : > { %v2041_v23 = vpop.f32.mrf.mxu2  ;;  %v7453_v27 = vpack.i.bf16 %v2240_v18, %v2239_v8  ;;  %v7477_v53 = vld [vmem:[#allocation2 + $0x20] sm:$0xff]  ;;  %v7529_v8 = vld [vmem:[#allocation2 + $0x128] sm:$0xff] }
 0x2b9   : > { %v2042_v61 = vadd.f32 %v7226_v55, %v2041_v23  ;;  %5136 = vrot.lane.b32.xlu0 %v5135_v38, %s5728_s28  ;;  %v2245_v23 = vld [vmem:[#allocation2 + $0x10a] sm:$0xff]  ;;  %v5225_v16 = vpack.i.bf16 %v7477_v53, %v7479_v31 }
 0x2ba   : > { %8877 = vst [vmem:[#allocation6_spill] sm:$0xff] %v7453_v27  ;;  %v7551_v0 = vld [vmem:[#allocation2 + $0xc8] sm:$0xff] }
 0x2bb   : > { %v2078_v9 = vmax.f32 %v2042_v61, 0.0  ;;  %v2246_v61 = vld [vmem:[#allocation2 + $0x112] sm:$0xff] }
 0x2bc   : > { %v2221_v45 = vld [vmem:[#allocation2 + $0x169] sm:$0xff]  ;;  %v7464_v25 = vpack.i.bf16 %v2246_v61, %v2245_v23  ;;  %v7545_v23 = vpop.permute.xlu0 %5071  ;;  %v7549_v61 = vld [vmem:[#allocation2 + $0xf8] sm:$0xff] }
 0x2bd   : > { %2156 = vst.msk [vmem:[#allocation2 + $0x171] sm:$0xff] %vm1587_vm1, %v2078_v9  ;;  %v7462_v9 = vld [vmem:[#allocation2 + $0x50] sm:$0xff] }
 0x2be   : > { %8879 = vst [vmem:[#allocation4_spill] sm:$0xff] %v7464_v25 }
 0x2bf   : > { %5141 = vrot.lane.b32.xlu1 %v7405_v40, %s5728_s28  ;;  %8884 = vst [vmem:[#allocation63_spill] sm:$0xff] %v7549_v61 }
 0x2c0   : > { %v2044_v14 = vpop.f32.mrf.mxu2 }
 0x2c1   : > { %v2045_v59 = vadd.f32 %v7226_v55, %v2044_v14  ;;  %5156 = vrot.lane.b32.xlu0 %v7409_v28, %s5728_s28  ;;  %v7468_v14 = vld [vmem:[#allocation2 + $0x48] sm:$0xff]  ;;  %v5074_v28 = vunpack.i.h.bf16 %v7545_v23 }
 0x2c3   : > { %v2079_v36 = vmax.f32 %v2045_v59, 0.0  ;;  %v5235_v59 = vpack.i.bf16 %v7462_v9, %v7468_v14  ;;  %v7531_v18 = vpop.permute.xlu2 %5081 }
 0x2c4   : > { %v2222_v32 = vld [vmem:[#allocation2 + $0x171] sm:$0xff] }
 0x2c5   : > { %2157 = vst.msk [vmem:[#allocation2 + $0x181] sm:$0xff] %vm1587_vm1, %v2079_v36  ;;  %v7415_v37 = vpack.i.bf16 %v2222_v32, %v2221_v45  ;;  %v2253_v17 = vld [vmem:[#allocation2 + $0x16a] sm:$0xff]  ;;  %v2254_v4 = vld [vmem:[#allocation2 + $0x172] sm:$0xff] }
 0x2c6   : > { %v5220_v38 = vpack.i.bf16 %v2254_v4, %v2253_v17  ;;  %v2251_v36 = vld [vmem:[#allocation2 + $0x152] sm:$0xff]  ;;  %v5255_v17 = vpack.i.bf16 %v7523_v20, %v7527_v33  ;;  %v7537_v4 = vld [vmem:[#allocation2 + $0x120] sm:$0xff] }
 0x2c7   : > { %5146 = vrot.lane.b32.xlu2 %v7415_v37, %s5727_s27  ;;  %5161 = vrot.lane.b32.xlu1 %v7417_v52, %s5727_s27  ;;  %v7481_v45 = vld [vmem:[#allocation2 + $0x98] sm:$0xff]  ;;  %v7483_v32 = vpack.i.bf16 %v2252_v12, %v2251_v36  ;;  %v7557_v36 = vld [vmem:[#allocation2 + $0x170] sm:$0xff] }
 0x2c8   : > { %v2046_v26 = vpop.f32.mrf.mxu2  ;;  %8886 = vst [vmem:[#allocation66_spill] sm:$0xff] %v7557_v36 }
 0x2c9   : > { %v2047_v50 = vadd.f32 %v7226_v55, %v2046_v26  ;;  %5176 = vrot.lane.b32.xlu0 %v7423_v51, %s5728_s28  ;;  %v7437_v55 = vpack.i.bf16 %v2242_v62, %v2241_v19  ;;  %8881 = vst [vmem:[#allocation10_spill] sm:$0xff] %v7483_v32  ;;  %v7487_v26 = vld [vmem:[#allocation2 + $0x90] sm:$0xff]  ;;  %v7505_v19 = vld [vmem:[#allocation2 + $0xe0] sm:$0xff]  ;;  %v7509_v62 = vpack.i.bf16 %v7495_v56, %v7501_v30 }
 0x2ca   : > { %v5265_v58 = vpack.i.bf16 %v7505_v19, %v7513_v42 }
 0x2cb   : > { %v2080_v41 = vmax.f32 %v2047_v50, 0.0  ;;  %8874 = vst [vmem:[#allocation7_spill] sm:$0xff] %v7437_v55  ;;  %v5250_v50 = vpack.i.bf16 %v7481_v45, %v7487_v26 }
 0x2cc   : > { %8882 = vst [vmem:[#allocation51_spill] sm:$0xff] %v7509_v62 }
 0x2cd   : > { %2158 = vst.msk [vmem:[#allocation2 + $0x189] sm:$0xff] %vm1587_vm1, %v2080_v41  ;;  %v7503_v41 = vld [vmem:[#allocation2 + $0x60] sm:$0xff] }
 0x2ce   : > { %v5240_v21 = vpack.i.bf16 %v7497_v10, %v7503_v41 }
 0x2cf   : > { %5151 = vrot.lane.b32.xlu2 %v7429_v44, %s5728_s28  ;;  %5166 = vrot.lane.b32.xlu1 %v7431_v7, %s5728_s28 }
 0x2d1   : > { %5191 = vrot.lane.b32.xlu0 %v7437_v55, %s5728_s28 }
 0x2d4   : > { %v2286_v55 = vld [vmem:[#allocation2 + $0x188] sm:$0xff] }
 0x2d7   : > { %5171 = vrot.lane.b32.xlu2 %v7441_v39, %s5728_s28  ;;  %5181 = vrot.lane.b32.xlu1 %v7443_v35, %s5728_s28 }
 0x2d9   : > { %5206 = vrot.lane.b32.xlu0 %v7449_v11, %s5728_s28  ;;  %v5077_v11 = vpop.permute.xlu1 %5076 }
 0x2df   : > { %5186 = vrot.lane.b32.xlu2 %v7453_v27, %s5728_s28  ;;  %5196 = vrot.lane.b32.xlu1 %v7455_v24, %s5728_s28  ;;  %v7605_v27 = vld [vmem:[#allocation2 + $0x150] sm:$0xff] }
 0x2e1   : > { %5221 = vrot.lane.b32.xlu0 %v5220_v38, %s5728_s28  ;;  %v7543_v38 = vpack.i.bf16 %v7529_v8, %v7537_v4 }
 0x2e3   : > { %8883 = vst [vmem:[#allocation61_spill] sm:$0xff] %v7543_v38 }
 0x2e7   : > { %5201 = vrot.lane.b32.xlu2 %v7464_v25, %s5728_s28  ;;  %5211 = vrot.lane.b32.xlu1 %v7466_v48, %s5728_s28 }
 0x2e9   : > { %5236 = vrot.lane.b32.xlu0 %v5235_v59, %s5729_s29  ;;  %v7555_v59 = vld [vmem:[#allocation2 + $0xc0] sm:$0xff] }
 0x2ef   : > { %5216 = vrot.lane.b32.xlu2 %v7483_v32, %s5728_s28  ;;  %5226 = vrot.lane.b32.xlu1 %v5225_v16, %s5729_s29  ;;  %v5260_v16 = vpack.i.bf16 %v7551_v0, %v7555_v59  ;;  %v7583_v32 = vld [vmem:[#allocation2 + $0x138] sm:$0xff] }
 0x2f0   : > { %8890 = vst [vmem:[#allocation64_spill] sm:$0xff] %v7583_v32 }
 0x2f1   : > { %5251 = vrot.lane.b32.xlu0 %v5250_v50, %s5729_s29  ;;  %v7565_v50 = vpack.i.bf16 %v7549_v61, %v7553_v63  ;;  %v2159_v63 = vld [vmem:[#allocation2] sm:$0xff] }
 0x2f3   : > { %v7559_v12 = vpop.permute.xlu2 %5096  ;;  %8887 = vst [vmem:[#allocation31_spill] sm:$0xff] %v7565_v50 }
 0x2f7   : > { %5231 = vrot.lane.b32.xlu2 %v7509_v62, %s5729_s29  ;;  %5241 = vrot.lane.b32.xlu1 %v5240_v21, %s5729_s29  ;;  %v7567_v21 = vld [vmem:[#allocation2 + $0x168] sm:$0xff] }
 0x2f8   : > { %8888 = vst [vmem:[#allocation35_spill] sm:$0xff] %v7567_v21  ;;  %v7581_v62 = vld [vmem:[#allocation2 + $0x108] sm:$0xff] }
 0x2f9   : > { %5266 = vrot.lane.b32.xlu0 %v5265_v58, %s5729_s29  ;;  %v5295_v58 = vpack.i.bf16 %v7557_v36, %v7567_v21  ;;  %v5078_v21 = vunpack.i.l.bf16 %v5077_v11 }
 0x2fb   : > { %v7593_v25 = vpop.permute.xlu2 %5101 }
 0x2ff   : > { %5246 = vrot.lane.b32.xlu2 %v5245_v47, %s5729_s29  ;;  %5256 = vrot.lane.b32.xlu1 %v5255_v17, %s5729_s29  ;;  %v7574_v47 = vpop.permute.xlu0 %5086  ;;  %v7577_v17 = vld [vmem:[#allocation2 + $0x110] sm:$0xff] }
 0x301   : > { %5281 = vrot.lane.b32.xlu0 %v7543_v38, %s5729_s29  ;;  %v7579_v38 = vld [vmem:[#allocation2 + $0x140] sm:$0xff] }
 0x302   : > { %8889 = vst [vmem:[#allocation54_spill] sm:$0xff] %v7579_v38 }
 0x307   : > { %5261 = vrot.lane.b32.xlu2 %v5260_v16, %s5729_s29  ;;  %5271 = vrot.lane.b32.xlu1 %v7565_v50, %s5729_s29  ;;  %v7587_v16 = vpack.i.bf16 %v7577_v17, %v7581_v62  ;;  %v7591_v50 = vpack.i.bf16 %v7579_v38, %v7583_v32  ;;  %v7603_v48 = vpop.permute.xlu0 %5106  ;;  %v2285_v32 = vld [vmem:[#allocation2 + $0x180] sm:$0xff] }
 0x308   : > { %8893 = vst [vmem:[#allocation27_spill] sm:$0xff] %v7603_v48  ;;  %v5300_v51 = vpack.i.bf16 %v2286_v55, %v2285_v32 }
 0x309   : > { %5296 = vrot.lane.b32.xlu0 %v5295_v58, %s5729_s29  ;;  %8891 = vst [vmem:[#allocation69_spill] sm:$0xff] %v7587_v16  ;;  %v7601_v58 = vld [vmem:[#allocation2 + $0x158] sm:$0xff] }
 0x30a   : > { %8892 = vst [vmem:[#allocation26_spill] sm:$0xff] %v7591_v50  ;;  %v7609_v38 = vpack.i.bf16 %v7601_v58, %v7605_v27 }
 0x30c   : > { %8894 = vst [vmem:[#allocation33_spill] sm:$0xff] %v7609_v38 }
 0x30f   : > { %5276 = vrot.lane.b32.xlu2 %v7587_v16, %s5729_s29  ;;  %5286 = vrot.lane.b32.xlu1 %v7591_v50, %s5729_s29  ;;  %v5092_v16 = vpop.permute.xlu1 %5091 }
 0x310   : > { %v5093_v48 = vunpack.i.l.bf16 %v5092_v16 }
 0x311   : > { %5311 = vrot.lane.b32.xlu0 %v7308_v49, %s5730_s30  ;;  %v7614_v49 = vpop.permute.xlu2 %5116 }
 0x317   : > { %5291 = vrot.lane.b32.xlu2 %v7609_v38, %s5729_s29  ;;  %5301 = vrot.lane.b32.xlu1 %v5300_v51, %s5729_s29  ;;  %v7624_v55 = vpop.permute.xlu1 %5111  ;;  %v5079_v38 = vunpack.i.h.bf16 %v5077_v11  ;;  %v2160_v11 = vld [vmem:[#allocation2 + $0x8] sm:$0xff] }
 0x319   : > { %5326 = vrot.lane.b32.xlu0 %v7348_v5, %s5730_s30 }
 0x31b   : > { %v7618_v50 = vpop.permute.xlu0 %5121 }
 0x31f   : > { %5306 = vrot.lane.b32.xlu2 %v7298_v29, %s5730_s30  ;;  %5316 = vrot.lane.b32.xlu1 %v7320_v60, %s5730_s30  ;;  %v5069_v60 = vunpack.i.h.bf16 %v7499_v3 }
 0x321   : > { %v7626_v32 = vpop.permute.xlu2 %5146  ;;  %5341 = vrot.lane.b32.xlu0 %v7417_v52, %s5730_s30  ;;  %v5068_v52 = vunpack.i.l.bf16 %v7499_v3  ;;  %v3473_v3 = vsel %vm1587_vm1, %v2160_v11, %v5069_v60 }
 0x322   : > { %8895 = vst [vmem:[#allocation37_spill] sm:$0xff] %v7626_v32 }
 0x323   : > { %v7630_v51 = vpop.permute.xlu0 %5126 }
 0x324   : > { %8896 = vst [vmem:[#allocation57_spill] sm:$0xff] %v7630_v51 }
 0x327   : > { %5321 = vrot.lane.b32.xlu2 %v7332_v34, %s5730_s30  ;;  %5331 = vrot.lane.b32.xlu1 %v7364_v15, %s5730_s30  ;;  %v3476_v34 = vsel %vm1587_vm1, %v7501_v30, %v5078_v21  ;;  %v3477_v15 = vsel %vm1587_vm1, %v7495_v56, %v5079_v38  ;;  %v5073_v30 = vunpack.i.l.bf16 %v7545_v23  ;;  %v5094_v21 = vunpack.i.h.bf16 %v5092_v16 }
 0x329   : > { %v5152_v29 = vpop.permute.xlu2 %5151  ;;  %v7636_v5 = vpop.permute.xlu1 %5131  ;;  %5356 = vrot.lane.b32.xlu0 %v7356_v6, %s5730_s30  ;;  %v3474_v60 = vsel %vm1587_vm1, %v7479_v31, %v5073_v30 }
 0x32a   : > { %v5154_v36 = vunpack.i.h.bf16 %v5152_v29  ;;  %v5153_v51 = vunpack.i.l.bf16 %v5152_v29  ;;  %v3472_v29 = vsel %vm1587_vm1, %v2159_v63, %v5068_v52  ;;  %v5083_v63 = vunpack.i.l.bf16 %v7531_v18 }
 0x32b   : > { %v5137_v61 = vpop.permute.xlu0 %5136 }
 0x32c   : > { %v7647_v24 = vsel %vm1620_vm2, %v3476_v34, %v5153_v51  ;;  %v7650_v6 = vsel %vm1620_vm2, %v3477_v15, %v5154_v36  ;;  %v5139_v32 = vunpack.i.h.bf16 %v5137_v61  ;;  %v5138_v39 = vunpack.i.l.bf16 %v5137_v61 }
 0x32d   : > { %v5084_v61 = vunpack.i.h.bf16 %v7531_v18  ;;  %v3482_v18 = vsel %vm1587_vm1, %v7525_v2, %v5093_v48 }
 0x32e   : > { %v7657_v56 = vsel %vm1620_vm2, %v3473_v3, %v5139_v32  ;;  %v7660_v38 = vsel %vm1620_vm2, %v3472_v29, %v5138_v39  ;;  %v5099_v3 = vunpack.i.h.bf16 %v7559_v12  ;;  %v5098_v29 = vunpack.i.l.bf16 %v7559_v12 }
 0x32f   : > { %5336 = vrot.lane.b32.xlu2 %v7382_v43, %s5730_s30  ;;  %5346 = vrot.lane.b32.xlu1 %v7372_v57, %s5730_s30  ;;  %v3475_v43 = vsel %vm1587_vm1, %v7477_v53, %v5074_v28  ;;  %v3483_v57 = vsel %vm1587_vm1, %v7521_v13, %v5094_v21  ;;  %v3478_v13 = vsel %vm1587_vm1, %v7468_v14, %v5083_v63 }
 0x330   : > { %v3479_v48 = vsel %vm1587_vm1, %v7462_v9, %v5084_v61  ;;  %v3485_v12 = vsel %vm1587_vm1, %v7481_v45, %v5099_v3  ;;  %v5114_v45 = vunpack.i.h.bf16 %v7624_v55 }
 0x331   : > { %v5172_v36 = vpop.permute.xlu2 %5171  ;;  %v5142_v23 = vpop.permute.xlu1 %5141  ;;  %5371 = vrot.lane.b32.xlu0 %v7398_v46, %s5730_s30 }
 0x332   : > { %v5174_v16 = vunpack.i.h.bf16 %v5172_v36  ;;  %v5173_v32 = vunpack.i.l.bf16 %v5172_v36  ;;  %v5144_v51 = vunpack.i.h.bf16 %v5142_v23  ;;  %v5143_v39 = vunpack.i.l.bf16 %v5142_v23 }
 0x333   : > { %v5157_v52 = vpop.permute.xlu0 %5156 }
 0x334   : > { %v7679_v11 = vsel %vm1620_vm2, %v3482_v18, %v5173_v32  ;;  %v7682_v46 = vsel %vm1620_vm2, %v3483_v57, %v5174_v16  ;;  %v7685_v34 = vsel %vm1620_vm2, %v3474_v60, %v5143_v39  ;;  %v7688_v31 = vsel %vm1620_vm2, %v3475_v43, %v5144_v51 }
 0x335   : > { %v5159_v28 = vunpack.i.h.bf16 %v5157_v52  ;;  %v5158_v53 = vunpack.i.l.bf16 %v5157_v52  ;;  %v3484_v32 = vsel %vm1587_vm1, %v7487_v26, %v5098_v29  ;;  %v5088_v60 = vunpack.i.l.bf16 %v7574_v47 }
 0x336   : > { %v5113_v26 = vunpack.i.l.bf16 %v7624_v55  ;;  %v5104_v43 = vunpack.i.h.bf16 %v7593_v25  ;;  %v5103_v57 = vunpack.i.l.bf16 %v7593_v25  ;;  %v2318_v55 = vld [vmem:[#allocation2 + $0x189] sm:$0xff] }
 0x337   : > { %v7695_v2 = vsel %vm1620_vm2, %v3479_v48, %v5159_v28  ;;  %v7698_v15 = vsel %vm1620_vm2, %v3478_v13, %v5158_v53  ;;  %5351 = vrot.lane.b32.xlu2 %v7340_v1, %s5730_s30  ;;  %5361 = vrot.lane.b32.xlu1 %v7380_v54, %s5730_s30  ;;  %v3495_v48 = vsel %vm1587_vm1, %v7577_v17, %v5114_v45 }
 0x338   : > { %v3494_v25 = vsel %vm1587_vm1, %v7581_v62, %v5113_v26  ;;  %v3491_v62 = vsel %vm1587_vm1, %v7505_v19, %v5104_v43  ;;  %v5119_v19 = vunpack.i.h.bf16 %v7614_v49 }
 0x339   : > { %v5187_v14 = vpop.permute.xlu2 %5186  ;;  %v5162_v30 = vpop.permute.xlu1 %5161  ;;  %5386 = vrot.lane.b32.xlu0 %v7405_v40, %s5731_s7 }
 0x33a   : > { %v5189_v9 = vunpack.i.h.bf16 %v5187_v14  ;;  %v5188_v21 = vunpack.i.l.bf16 %v5187_v14  ;;  %v5164_v61 = vunpack.i.h.bf16 %v5162_v30  ;;  %v5163_v63 = vunpack.i.l.bf16 %v5162_v30 }
 0x33b   : > { %v5177_v36 = vpop.permute.xlu0 %5176 }
 0x33c   : > { %v3489_v1 = vsel %vm1587_vm1, %v7551_v0, %v5164_v61  ;;  %v3488_v54 = vsel %vm1587_vm1, %v7555_v59, %v5163_v63  ;;  %v5179_v23 = vunpack.i.h.bf16 %v5177_v36  ;;  %v5178_v16 = vunpack.i.l.bf16 %v5177_v36 }
 0x33d   : > { %v7717_v40 = vsel %vm1620_vm2, %v3488_v54, %v5188_v21  ;;  %v7720_v51 = vsel %vm1620_vm2, %v3489_v1, %v5189_v9  ;;  %v5089_v59 = vunpack.i.h.bf16 %v7574_v47  ;;  %v3490_v21 = vsel %vm1587_vm1, %v7513_v42, %v5103_v57 }
 0x33e   : > { %v7723_v39 = vsel %vm1620_vm2, %v3485_v12, %v5179_v23  ;;  %v7726_v0 = vsel %vm1620_vm2, %v3484_v32, %v5178_v16  ;;  %v5124_v61 = vunpack.i.h.bf16 %v7618_v50  ;;  %v5123_v63 = vunpack.i.l.bf16 %v7618_v50 }
 0x33f   : > { %5366 = vrot.lane.b32.xlu2 %v7392_v22, %s5730_s30  ;;  %5376 = vrot.lane.b32.xlu1 %v7415_v37, %s5730_s30  ;;  %v3481_v22 = vsel %vm1587_vm1, %v7497_v10, %v5089_v59  ;;  %v3480_v37 = vsel %vm1587_vm1, %v7503_v41, %v5088_v60  ;;  %v2317_v41 = vld [vmem:[#allocation2 + $0x181] sm:$0xff]  ;;  %v5134_v36 = vunpack.i.h.bf16 %v7636_v5  ;;  %v5133_v1 = vunpack.i.l.bf16 %v7636_v5 }
 0x340   : > { %v7760_v17 = vpack.i.bf16 %v2318_v55, %v2317_v41  ;;  %v5118_v42 = vunpack.i.l.bf16 %v7614_v49  ;;  %v3487_v60 = vsel %vm1587_vm1, %v7523_v20, %v5124_v61  ;;  %v3486_v45 = vsel %vm1587_vm1, %v7527_v33, %v5123_v63  ;;  %v8901_v41 = vld [vmem:[#allocation3_spill] sm:$0xff] }
 0x341   : > { %v5202_v18 = vpop.permute.xlu2 %5201  ;;  %v5167_v52 = vpop.permute.xlu1 %5166  ;;  %5401 = vrot.lane.b32.xlu0 %v7431_v7, %s5731_s7  ;;  %v3501_v26 = vsel %vm1587_vm1, %v7601_v58, %v5134_v36  ;;  %v3500_v49 = vsel %vm1587_vm1, %v7605_v27, %v5133_v1  ;;  %v3497_v58 = vsel %vm1587_vm1, %v7529_v8, %v5119_v19  ;;  %v8900_v8 = vld [vmem:[#allocation37_spill] sm:$0xff]  ;;  %v8902_v61 = vld [vmem:[#allocation63_spill] sm:$0xff]  ;;  %v8903_v36 = vld [vmem:[#allocation72_spill] sm:$0xff] }
 0x342   : > { %v5204_v47 = vunpack.i.h.bf16 %v5202_v18  ;;  %v5203_v28 = vunpack.i.l.bf16 %v5202_v18  ;;  %v5169_v53 = vunpack.i.h.bf16 %v5167_v52  ;;  %v5168_v13 = vunpack.i.l.bf16 %v5167_v52 }
 0x343   : > { %v5192_v3 = vpop.permute.xlu0 %5191  ;;  %v3496_v27 = vsel %vm1587_vm1, %v7537_v4, %v5118_v42  ;;  %v5148_v4 = vunpack.i.l.bf16 %v8900_v8 }
 0x344   : > { %v7749_v7 = vsel %vm1620_vm2, %v3494_v25, %v5203_v28  ;;  %v7752_v29 = vsel %vm1620_vm2, %v3495_v48, %v5204_v47  ;;  %v7755_v14 = vsel %vm1620_vm2, %v3480_v37, %v5168_v13  ;;  %v7758_v10 = vsel %vm1620_vm2, %v3481_v22, %v5169_v53  ;;  %v8897_v47 = vld [vmem:[#allocation27_spill] sm:$0xff]  ;;  %v8898_v22 = vld [vmem:[#allocation12_spill] sm:$0xff] }
 0x345   : > { %v5194_v30 = vunpack.i.h.bf16 %v5192_v3  ;;  %v5193_v9 = vunpack.i.l.bf16 %v5192_v3  ;;  %v5109_v28 = vunpack.i.h.bf16 %v8897_v47  ;;  %v5108_v53 = vunpack.i.l.bf16 %v8897_v47  ;;  %v8899_v37 = vld [vmem:[#allocation8_spill] sm:$0xff] }
 0x346   : > { %v5149_v48 = vunpack.i.h.bf16 %v8900_v8 }
 0x347   : > { %v7771_v54 = vsel %vm1620_vm2, %v3491_v62, %v5194_v30  ;;  %v7774_v23 = vsel %vm1620_vm2, %v3490_v21, %v5193_v9  ;;  %5381 = vrot.lane.b32.xlu2 %v7760_v17, %s5730_s30  ;;  %5391 = vrot.lane.b32.xlu1 %v7429_v44, %s5731_s7  ;;  %v3493_v63 = vsel %vm1587_vm1, %v8902_v61, %v5109_v28  ;;  %v8909_v28 = vld [vmem:[#allocation9_spill] sm:$0xff] }
 0x348   : > { %v3492_v1 = vsel %vm1587_vm1, %v8903_v36, %v5108_v53 }
 0x349   : > { %v5217_v50 = vpop.permute.xlu2 %5216  ;;  %v5182_v16 = vpop.permute.xlu1 %5181  ;;  %5416 = vrot.lane.b32.xlu0 %v7443_v35, %s5731_s7 }
 0x34a   : > { %v5219_v5 = vunpack.i.h.bf16 %v5217_v50  ;;  %v5218_v12 = vunpack.i.l.bf16 %v5217_v50  ;;  %v5184_v32 = vunpack.i.h.bf16 %v5182_v16  ;;  %v5183_v59 = vunpack.i.l.bf16 %v5182_v16 }
 0x34b   : > { %v5207_v43 = vpop.permute.xlu0 %5206 }
 0x34c   : > { %v7793_v57 = vsel %vm1620_vm2, %v3500_v49, %v5218_v12  ;;  %v7796_v35 = vsel %vm1620_vm2, %v3501_v26, %v5219_v5  ;;  %v7799_v18 = vsel %vm1620_vm2, %v3486_v45, %v5183_v59  ;;  %v7802_v20 = vsel %vm1620_vm2, %v3487_v60, %v5184_v32  ;;  %v8904_v59 = vld [vmem:[#allocation66_spill] sm:$0xff]  ;;  %v8905_v45 = vld [vmem:[#allocation35_spill] sm:$0xff] }
 0x34d   : > { %v5209_v33 = vunpack.i.h.bf16 %v5207_v43  ;;  %v5208_v52 = vunpack.i.l.bf16 %v5207_v43  ;;  %v3503_v60 = vsel %vm1587_vm1, %v8904_v59, %v5149_v48  ;;  %v3502_v26 = vsel %vm1587_vm1, %v8905_v45, %v5148_v4  ;;  %v8910_v48 = vld [vmem:[#allocation54_spill] sm:$0xff] }
 0x34f   : > { %v7811_v13 = vsel %vm1620_vm2, %v3497_v58, %v5209_v33  ;;  %v7814_v55 = vsel %vm1620_vm2, %v3496_v27, %v5208_v52  ;;  %5396 = vrot.lane.b32.xlu2 %v8898_v22, %s5731_s7  ;;  %5406 = vrot.lane.b32.xlu1 %v8899_v37, %s5731_s7  ;;  %v8907_v52 = vld [vmem:[#allocation13_spill] sm:$0xff]  ;;  %v8908_v58 = vld [vmem:[#allocation6_spill] sm:$0xff] }
 0x351   : > { %v5232_v25 = vpop.permute.xlu2 %5231  ;;  %v5197_v3 = vpop.permute.xlu1 %5196  ;;  %5431 = vrot.lane.b32.xlu0 %v8901_v41, %s5731_s7 }
 0x352   : > { %v5234_v30 = vunpack.i.h.bf16 %v5232_v25  ;;  %v5233_v9 = vunpack.i.l.bf16 %v5232_v25  ;;  %v5199_v62 = vunpack.i.h.bf16 %v5197_v3  ;;  %v5198_v21 = vunpack.i.l.bf16 %v5197_v3  ;;  %v8911_v25 = vld [vmem:[#allocation64_spill] sm:$0xff] }
 0x353   : > { %v5222_v19 = vpop.permute.xlu0 %5221 }
 0x354   : > { %v7830_v42 = vsel %vm1653_vm3, %v7685_v34, %v5233_v9  ;;  %v7834_v50 = vsel %vm1653_vm3, %v7688_v31, %v5234_v30  ;;  %v7837_v16 = vsel %vm1620_vm2, %v3492_v1, %v5198_v21  ;;  %v7840_v5 = vsel %vm1620_vm2, %v3493_v63, %v5199_v62  ;;  %v8906_v34 = vld [vmem:[#allocation57_spill] sm:$0xff] }
 0x355   : > { %v5224_v12 = vunpack.i.h.bf16 %v5222_v19  ;;  %v5223_v32 = vunpack.i.l.bf16 %v5222_v19  ;;  %v5129_v49 = vunpack.i.h.bf16 %v8906_v34  ;;  %v5128_v43 = vunpack.i.l.bf16 %v8906_v34  ;;  %v2401_v63 = vld [vmem:[#allocation2 + $0xf9] sm:$0xff]  ;;  %v2400_v19 = vld [vmem:[#allocation2 + $0xf1] sm:$0xff] }
 0x356   : > { %v5460_v59 = vpack.i.bf16 %v2401_v63, %v2400_v19  ;;  %v2403_v19 = vld [vmem:[#allocation2 + $0x111] sm:$0xff] }
 0x357   : > { %v7849_v31 = vsel %vm1620_vm2, %v3503_v60, %v5224_v12  ;;  %v7852_v33 = vsel %vm1620_vm2, %v3502_v26, %v5223_v32  ;;  %5411 = vrot.lane.b32.xlu2 %v8907_v52, %s5731_s7  ;;  %5421 = vrot.lane.b32.xlu1 %v8908_v58, %s5731_s7  ;;  %v3499_v4 = vsel %vm1587_vm1, %v8910_v48, %v5129_v49  ;;  %v8912_v32 = vld [vmem:[#allocation7_spill] sm:$0xff] }
 0x358   : > { %v3498_v3 = vsel %vm1587_vm1, %v8911_v25, %v5128_v43 }
 0x359   : > { %v5247_v27 = vpop.permute.xlu2 %5246  ;;  %v5212_v47 = vpop.permute.xlu1 %5211  ;;  %5446 = vrot.lane.b32.xlu0 %v8909_v28, %s5731_s7 }
 0x35a   : > { %v5249_v53 = vunpack.i.h.bf16 %v5247_v27  ;;  %v5248_v22 = vunpack.i.l.bf16 %v5247_v27  ;;  %v5214_v37 = vunpack.i.h.bf16 %v5212_v47  ;;  %v5213_v8 = vunpack.i.l.bf16 %v5212_v47  ;;  %v2385_v47 = vld [vmem:[#allocation2 + $0x39] sm:$0xff] }
 0x35b   : > { %v5237_v30 = vpop.permute.xlu0 %5236 }
 0x35c   : > { %v7866_v9 = vsel %vm1653_vm3, %v7755_v14, %v5248_v22  ;;  %v7870_v62 = vsel %vm1653_vm3, %v7758_v10, %v5249_v53  ;;  %v3530_v21 = vsel %vm1620_vm2, %v3498_v3, %v5213_v8  ;;  %v3531_v61 = vsel %vm1620_vm2, %v3499_v4, %v5214_v37  ;;  %v8913_v10 = vld [vmem:[#allocation4_spill] sm:$0xff] }
 0x35d   : > { %v5239_v36 = vunpack.i.h.bf16 %v5237_v30  ;;  %v5238_v1 = vunpack.i.l.bf16 %v5237_v30  ;;  %v2384_v22 = vld [vmem:[#allocation2 + $0x31] sm:$0xff] }
 0x35e   : > { %v5475_v8 = vpack.i.bf16 %v2385_v47, %v2384_v22 }
 0x35f   : > { %v7876_v12 = vsel %vm1653_vm3, %v7650_v6, %v5239_v36  ;;  %v7880_v14 = vsel %vm1653_vm3, %v7647_v24, %v5238_v1  ;;  %5426 = vrot.lane.b32.xlu2 %v8912_v32, %s5731_s7  ;;  %5436 = vrot.lane.b32.xlu1 %v8913_v10, %s5731_s7 }
 0x361   : > { %v5262_v60 = vpop.permute.xlu2 %5261  ;;  %v5227_v45 = vpop.permute.xlu1 %5226  ;;  %5461 = vrot.lane.b32.xlu0 %v5460_v59, %s5733_s9 }
 0x362   : > { %v5264_v26 = vunpack.i.h.bf16 %v5262_v60  ;;  %v5263_v34 = vunpack.i.l.bf16 %v5262_v60  ;;  %v5229_v49 = vunpack.i.h.bf16 %v5227_v45  ;;  %v5228_v6 = vunpack.i.l.bf16 %v5227_v45  ;;  %v2402_v60 = vld [vmem:[#allocation2 + $0x109] sm:$0xff] }
 0x363   : > { %v5252_v43 = vpop.permute.xlu0 %5251  ;;  %v8916_v45 = vld [vmem:[#allocation31_spill] sm:$0xff] }
 0x364   : > { %v7889_v24 = vsel %vm1653_vm3, %v7799_v18, %v5263_v34  ;;  %v7893_v52 = vsel %vm1653_vm3, %v7802_v20, %v5264_v26  ;;  %v3536_v58 = vsel %vm1653_vm3, %v7660_v38, %v5228_v6  ;;  %v3537_v27 = vsel %vm1653_vm3, %v7657_v56, %v5229_v49  ;;  %v8914_v20 = vld [vmem:[#allocation5_spill] sm:$0xff]  ;;  %v8915_v38 = vld [vmem:[#allocation10_spill] sm:$0xff] }
 0x365   : > { %v5254_v28 = vunpack.i.h.bf16 %v5252_v43  ;;  %v5253_v53 = vunpack.i.l.bf16 %v5252_v43 }
 0x367   : > { %v7901_v37 = vsel %vm1653_vm3, %v7682_v46, %v5254_v28  ;;  %v7905_v18 = vsel %vm1653_vm3, %v7679_v11, %v5253_v53  ;;  %5441 = vrot.lane.b32.xlu2 %v8914_v20, %s5731_s7  ;;  %5451 = vrot.lane.b32.xlu1 %v8915_v38, %s5731_s7  ;;  %v2387_v53 = vld [vmem:[#allocation2 + $0x51] sm:$0xff]  ;;  %v2386_v38 = vld [vmem:[#allocation2 + $0x49] sm:$0xff] }
 0x369   : > { %v5277_v56 = vpop.permute.xlu2 %5276  ;;  %v5242_v48 = vpop.permute.xlu1 %5241  ;;  %5476 = vrot.lane.b32.xlu0 %v5475_v8, %s5733_s9 }
 0x36a   : > { %v5279_v4 = vunpack.i.h.bf16 %v5277_v56  ;;  %v5278_v25 = vunpack.i.l.bf16 %v5277_v56  ;;  %v5244_v3 = vunpack.i.h.bf16 %v5242_v48  ;;  %v5243_v46 = vunpack.i.l.bf16 %v5242_v48 }
 0x36b   : > { %v5267_v30 = vpop.permute.xlu0 %5266 }
 0x36c   : > { %v7914_v11 = vsel %vm1653_vm3, %v7837_v16, %v5278_v25  ;;  %v7918_v63 = vsel %vm1653_vm3, %v7840_v5, %v5279_v4  ;;  %v7922_v36 = vsel %vm1653_vm3, %v7698_v15, %v5243_v46  ;;  %v7926_v1 = vsel %vm1653_vm3, %v7695_v2, %v5244_v3 }
 0x36d   : > { %v5269_v32 = vunpack.i.h.bf16 %v5267_v30  ;;  %v5268_v59 = vunpack.i.l.bf16 %v5267_v30  ;;  %v5490_v2 = vpack.i.bf16 %v2403_v19, %v2402_v60  ;;  %v2405_v19 = vld [vmem:[#allocation2 + $0x129] sm:$0xff]  ;;  %v2404_v60 = vld [vmem:[#allocation2 + $0x121] sm:$0xff] }
 0x36f   : > { %v7930_v16 = vsel %vm1653_vm3, %v7720_v51, %v5269_v32  ;;  %v7934_v5 = vsel %vm1653_vm3, %v7717_v40, %v5268_v59  ;;  %5456 = vrot.lane.b32.xlu2 %v8916_v45, %s5732_s8  ;;  %5466 = vrot.lane.b32.xlu1 %v8901_v41, %s5734_s10 }
 0x371   : > { %v5292_v15 = vpop.permute.xlu2 %5291  ;;  %v5257_v26 = vpop.permute.xlu1 %5256  ;;  %5491 = vrot.lane.b32.xlu0 %v5490_v2, %s5733_s9 }
 0x372   : > { %v5294_v34 = vunpack.i.h.bf16 %v5292_v15  ;;  %v5293_v49 = vunpack.i.l.bf16 %v5292_v15  ;;  %v5259_v6 = vunpack.i.h.bf16 %v5257_v26  ;;  %v5258_v51 = vunpack.i.l.bf16 %v5257_v26 }
 0x373   : > { %v5282_v43 = vpop.permute.xlu0 %5281 }
 0x374   : > { %v7942_v47 = vsel %vm1653_vm3, %v3530_v21, %v5293_v49  ;;  %v7945_v40 = vsel %vm1653_vm3, %v3531_v61, %v5294_v34  ;;  %v7949_v28 = vsel %vm1653_vm3, %v7726_v0, %v5258_v51  ;;  %v7953_v41 = vsel %vm1653_vm3, %v7723_v39, %v5259_v6  ;;  %v8917_v61 = vld [vmem:[#allocation51_spill] sm:$0xff] }
 0x375   : > { %v5284_v22 = vunpack.i.h.bf16 %v5282_v43  ;;  %v5283_v20 = vunpack.i.l.bf16 %v5282_v43  ;;  %v5505_v39 = vpack.i.bf16 %v2387_v53, %v2386_v38  ;;  %v2355_v49 = vld [vmem:[#allocation2 + $0x50] sm:$0xff] }
 0x376   : > { %v2418_v6 = vld [vmem:[#allocation2 + $0x4a] sm:$0xff]  ;;  %v2419_v51 = vld [vmem:[#allocation2 + $0x52] sm:$0xff] }
 0x377   : > { %v7957_v8 = vsel %vm1653_vm3, %v7752_v29, %v5284_v22  ;;  %v7961_v21 = vsel %vm1653_vm3, %v7749_v7, %v5283_v20  ;;  %5471 = vrot.lane.b32.xlu2 %v8917_v61, %s5732_s8  ;;  %5481 = vrot.lane.b32.xlu1 %v7429_v44, %s5734_s10  ;;  %v2354_v20 = vld [vmem:[#allocation2 + $0x48] sm:$0xff] }
 0x378   : > { %v2389_v38 = vld [vmem:[#allocation2 + $0x69] sm:$0xff] }
 0x379   : > { %v5307_v0 = vpop.permute.xlu2 %5306  ;;  %v5272_v56 = vpop.permute.xlu1 %5271  ;;  %5506 = vrot.lane.b32.xlu0 %v5505_v39, %s5733_s9 }
 0x37a   : > { %v5309_v48 = vunpack.i.h.bf16 %v5307_v0  ;;  %v5308_v4 = vunpack.i.l.bf16 %v5307_v0  ;;  %v5274_v25 = vunpack.i.h.bf16 %v5272_v56  ;;  %v5273_v29 = vunpack.i.l.bf16 %v5272_v56 }
 0x37b   : > { %v5297_v3 = vpop.permute.xlu0 %5296  ;;  %v5500_v0 = vpack.i.bf16 %v2355_v49, %v2354_v20  ;;  %v5510_v56 = vpack.i.bf16 %v2419_v51, %v2418_v6 }
 0x37c   : > { %v7969_v46 = vsel %vm1686_vm4, %v3536_v58, %v5308_v4  ;;  %v7972_v7 = vsel %vm1686_vm4, %v3537_v27, %v5309_v48  ;;  %v7976_v30 = vsel %vm1653_vm3, %v7774_v23, %v5273_v29  ;;  %v7980_v44 = vsel %vm1653_vm3, %v7771_v54, %v5274_v25  ;;  %v8918_v27 = vld [vmem:[#allocation69_spill] sm:$0xff] }
 0x37d   : > { %v5299_v32 = vunpack.i.h.bf16 %v5297_v3  ;;  %v5298_v59 = vunpack.i.l.bf16 %v5297_v3  ;;  %v5520_v54 = vpack.i.bf16 %v2405_v19, %v2404_v60 }
 0x37f   : > { %v7984_v45 = vsel %vm1653_vm3, %v7796_v35, %v5299_v32  ;;  %v7988_v58 = vsel %vm1653_vm3, %v7793_v57, %v5298_v59  ;;  %5486 = vrot.lane.b32.xlu2 %v8918_v27, %s5732_s8  ;;  %5496 = vrot.lane.b32.xlu1 %v8913_v10, %s5734_s10  ;;  %v2436_v32 = vld [vmem:[#allocation2 + $0x122] sm:$0xff] }
 0x381   : > { %v5322_v23 = vpop.permute.xlu2 %5321  ;;  %v5287_v2 = vpop.permute.xlu1 %5286  ;;  %5521 = vrot.lane.b32.xlu0 %v5520_v54, %s5733_s9 }
 0x382   : > { %v5324_v15 = vunpack.i.h.bf16 %v5322_v23  ;;  %v5323_v26 = vunpack.i.l.bf16 %v5322_v23  ;;  %v5289_v34 = vunpack.i.h.bf16 %v5287_v2  ;;  %v5288_v35 = vunpack.i.l.bf16 %v5287_v2  ;;  %v2407_v23 = vld [vmem:[#allocation2 + $0x141] sm:$0xff] }
 0x383   : > { %v5312_v57 = vpop.permute.xlu0 %5311 }
 0x384   : > { %v7997_v43 = vsel %vm1686_vm4, %v7922_v36, %v5323_v26  ;;  %v8001_v10 = vsel %vm1686_vm4, %v7926_v1, %v5324_v15  ;;  %v8005_v53 = vsel %vm1653_vm3, %v7814_v55, %v5288_v35  ;;  %v8009_v22 = vsel %vm1653_vm3, %v7811_v13, %v5289_v34  ;;  %v2388_v36 = vld [vmem:[#allocation2 + $0x61] sm:$0xff]  ;;  %v2406_v34 = vld [vmem:[#allocation2 + $0x139] sm:$0xff] }
 0x385   : > { %v5314_v61 = vunpack.i.h.bf16 %v5312_v57  ;;  %v5313_v39 = vunpack.i.l.bf16 %v5312_v57  ;;  %v5535_v13 = vpack.i.bf16 %v2389_v38, %v2388_v36  ;;  %v2420_v38 = vld [vmem:[#allocation2 + $0x62] sm:$0xff] }
 0x387   : > { %v8013_v48 = vsel %vm1686_vm4, %v7830_v42, %v5313_v39  ;;  %v8017_v1 = vsel %vm1686_vm4, %v7834_v50, %v5314_v61  ;;  %5501 = vrot.lane.b32.xlu2 %v5500_v0, %s5732_s8  ;;  %5511 = vrot.lane.b32.xlu1 %v5510_v56, %s5734_s10  ;;  %v2437_v42 = vld [vmem:[#allocation2 + $0x12a] sm:$0xff] }
 0x388   : > { %v5525_v26 = vpack.i.bf16 %v2437_v42, %v2436_v32  ;;  %v2421_v61 = vld [vmem:[#allocation2 + $0x6a] sm:$0xff] }
 0x389   : > { %v5337_v55 = vpop.permute.xlu2 %5336  ;;  %v5302_v4 = vpop.permute.xlu1 %5301  ;;  %5536 = vrot.lane.b32.xlu0 %v5535_v13, %s5733_s9  ;;  %v2356_v13 = vld [vmem:[#allocation2 + $0x60] sm:$0xff] }
 0x38a   : > { %v5339_v25 = vunpack.i.h.bf16 %v5337_v55  ;;  %v5338_v29 = vunpack.i.l.bf16 %v5337_v55  ;;  %v5304_v3 = vunpack.i.h.bf16 %v5302_v4  ;;  %v5303_v19 = vunpack.i.l.bf16 %v5302_v4  ;;  %v2391_v55 = vld [vmem:[#allocation2 + $0x81] sm:$0xff] }
 0x38b   : > { %v5327_v59 = vpop.permute.xlu0 %5326 }
 0x38c   : > { %v8024_v50 = vsel %vm1686_vm4, %v7949_v28, %v5338_v29  ;;  %v8028_v60 = vsel %vm1686_vm4, %v7953_v41, %v5339_v25  ;;  %v8032_v27 = vsel %vm1653_vm3, %v7852_v33, %v5303_v19  ;;  %v8036_v54 = vsel %vm1653_vm3, %v7849_v31, %v5304_v3  ;;  %v8919_v33 = vld [vmem:[#allocation61_spill] sm:$0xff] }
 0x38d   : > { %v5329_v2 = vunpack.i.h.bf16 %v5327_v59  ;;  %v5328_v15 = vunpack.i.l.bf16 %v5327_v59  ;;  %v5550_v31 = vpack.i.bf16 %v2407_v23, %v2406_v34  ;;  %v5540_v3 = vpack.i.bf16 %v2421_v61, %v2420_v38 }
 0x38f   : > { %v8040_v28 = vsel %vm1686_vm4, %v7866_v9, %v5328_v15  ;;  %v8044_v41 = vsel %vm1686_vm4, %v7870_v62, %v5329_v2  ;;  %5516 = vrot.lane.b32.xlu2 %v8919_v33, %s5732_s8  ;;  %5526 = vrot.lane.b32.xlu1 %v5525_v26, %s5734_s10  ;;  %v2357_v9 = vld [vmem:[#allocation2 + $0x68] sm:$0xff]  ;;  %v2438_v15 = vld [vmem:[#allocation2 + $0x13a] sm:$0xff] }
 0x390   : > { %v5530_v29 = vpack.i.bf16 %v2357_v9, %v2356_v13  ;;  %v2423_v13 = vld [vmem:[#allocation2 + $0x82] sm:$0xff] }
 0x391   : > { %v5352_v35 = vpop.permute.xlu2 %5351  ;;  %v5317_v49 = vpop.permute.xlu1 %5316  ;;  %5551 = vrot.lane.b32.xlu0 %v5550_v31, %s5733_s9 }
 0x392   : > { %v5354_v6 = vunpack.i.h.bf16 %v5352_v35  ;;  %v5353_v51 = vunpack.i.l.bf16 %v5352_v35  ;;  %v5319_v57 = vunpack.i.h.bf16 %v5317_v49  ;;  %v5318_v20 = vunpack.i.l.bf16 %v5317_v49  ;;  %v2409_v35 = vld [vmem:[#allocation2 + $0x159] sm:$0xff] }
 0x393   : > { %v5342_v39 = vpop.permute.xlu0 %5341 }
 0x394   : > { %v8052_v62 = vsel %vm1686_vm4, %v7976_v30, %v5353_v51  ;;  %v8056_v0 = vsel %vm1686_vm4, %v7980_v44, %v5354_v6  ;;  %v8060_v56 = vsel %vm1686_vm4, %v7880_v14, %v5318_v20  ;;  %v8064_v36 = vsel %vm1686_vm4, %v7876_v12, %v5319_v57  ;;  %v2390_v30 = vld [vmem:[#allocation2 + $0x79] sm:$0xff]  ;;  %v2408_v57 = vld [vmem:[#allocation2 + $0x151] sm:$0xff] }
 0x395   : > { %v5344_v4 = vunpack.i.h.bf16 %v5342_v39  ;;  %v5343_v25 = vunpack.i.l.bf16 %v5342_v39  ;;  %v5565_v12 = vpack.i.bf16 %v2391_v55, %v2390_v30  ;;  %v2359_v39 = vld [vmem:[#allocation2 + $0x80] sm:$0xff] }
 0x397   : > { %v8068_v19 = vsel %vm1686_vm4, %v7889_v24, %v5343_v25  ;;  %v8072_v44 = vsel %vm1686_vm4, %v7893_v52, %v5344_v4  ;;  %5531 = vrot.lane.b32.xlu2 %v5530_v29, %s5732_s8  ;;  %5541 = vrot.lane.b32.xlu1 %v5540_v3, %s5734_s10  ;;  %v2439_v24 = vld [vmem:[#allocation2 + $0x142] sm:$0xff]  ;;  %v2358_v25 = vld [vmem:[#allocation2 + $0x78] sm:$0xff] }
 0x398   : > { %v5555_v51 = vpack.i.bf16 %v2439_v24, %v2438_v15  ;;  %v2393_v29 = vld [vmem:[#allocation2 + $0x99] sm:$0xff] }
 0x399   : > { %v5367_v14 = vpop.permute.xlu2 %5366  ;;  %v5332_v32 = vpop.permute.xlu1 %5331  ;;  %5566 = vrot.lane.b32.xlu0 %v5565_v12, %s5733_s9  ;;  %v5560_v12 = vpack.i.bf16 %v2359_v39, %v2358_v25  ;;  %v2424_v25 = vld [vmem:[#allocation2 + $0x92] sm:$0xff] }
 0x39a   : > { %v5369_v42 = vunpack.i.h.bf16 %v5367_v14  ;;  %v5368_v59 = vunpack.i.l.bf16 %v5367_v14  ;;  %v5334_v23 = vunpack.i.h.bf16 %v5332_v32  ;;  %v5333_v2 = vunpack.i.l.bf16 %v5332_v32  ;;  %v2392_v32 = vld [vmem:[#allocation2 + $0x91] sm:$0xff] }
 0x39b   : > { %v5357_v26 = vpop.permute.xlu0 %5356 }
 0x39c   : > { %v8079_v52 = vsel %vm1686_vm4, %v8005_v53, %v5368_v59  ;;  %v8083_v34 = vsel %vm1686_vm4, %v8009_v22, %v5369_v42  ;;  %v8087_v33 = vsel %vm1686_vm4, %v7905_v18, %v5333_v2  ;;  %v8091_v31 = vsel %vm1686_vm4, %v7901_v37, %v5334_v23  ;;  %v8920_v18 = vld [vmem:[#allocation26_spill] sm:$0xff] }
 0x39d   : > { %v5359_v49 = vunpack.i.h.bf16 %v5357_v26  ;;  %v5358_v6 = vunpack.i.l.bf16 %v5357_v26  ;;  %v5580_v37 = vpack.i.bf16 %v2409_v35, %v2408_v57  ;;  %v2440_v35 = vld [vmem:[#allocation2 + $0x152] sm:$0xff] }
 0x39f   : > { %v8095_v53 = vsel %vm1686_vm4, %v7914_v11, %v5358_v6  ;;  %v8099_v22 = vsel %vm1686_vm4, %v7918_v63, %v5359_v49  ;;  %5546 = vrot.lane.b32.xlu2 %v8920_v18, %s5732_s8  ;;  %5556 = vrot.lane.b32.xlu1 %v5555_v51, %s5734_s10  ;;  %v2422_v11 = vld [vmem:[#allocation2 + $0x7a] sm:$0xff]  ;;  %v2411_v18 = vld [vmem:[#allocation2 + $0x171] sm:$0xff] }
 0x3a0   : > { %v5570_v14 = vpack.i.bf16 %v2423_v13, %v2422_v11 }
 0x3a1   : > { %v5382_v20 = vpop.permute.xlu2 %5381  ;;  %v8104_v9 = vpop.permute.xlu1 %5346  ;;  %5581 = vrot.lane.b32.xlu0 %v5580_v37, %s5733_s9 }
 0x3a2   : > { %v5384_v38 = vunpack.i.h.bf16 %v5382_v20  ;;  %v5383_v61 = vunpack.i.l.bf16 %v5382_v20  ;;  %v2410_v20 = vld [vmem:[#allocation2 + $0x169] sm:$0xff] }
 0x3a3   : > { %v5372_v55 = vpop.permute.xlu0 %5371 }
 0x3a4   : > { %v8109_v63 = vsel %vm1686_vm4, %v8032_v27, %v5383_v61  ;;  %v8113_v4 = vsel %vm1686_vm4, %v8036_v54, %v5384_v38  ;;  %v5374_v3 = vunpack.i.h.bf16 %v5372_v55  ;;  %v5373_v30 = vunpack.i.l.bf16 %v5372_v55  ;;  %v8921_v38 = vld [vmem:[#allocation33_spill] sm:$0xff]  ;;  %v2361_v61 = vld [vmem:[#allocation2 + $0x98] sm:$0xff] }
 0x3a5   : > { %v5595_v27 = vpack.i.bf16 %v2393_v29, %v2392_v32  ;;  %v2425_v29 = vld [vmem:[#allocation2 + $0x9a] sm:$0xff] }
 0x3a6   : > { %v8117_v42 = vsel %vm1686_vm4, %v7942_v47, %v5373_v30  ;;  %v8121_v59 = vsel %vm1686_vm4, %v7945_v40, %v5374_v3  ;;  %v2441_v47 = vld [vmem:[#allocation2 + $0x15a] sm:$0xff] }
 0x3a7   : > { %5561 = vrot.lane.b32.xlu2 %v5560_v12, %s5732_s8  ;;  %5571 = vrot.lane.b32.xlu1 %v5570_v14, %s5734_s10  ;;  %v5585_v37 = vpack.i.bf16 %v2441_v47, %v2440_v35  ;;  %v3752_v3 = vld [vmem:[%s8621_s2 + $0x20] sm:$0xf]  ;;  %v2394_v47 = vld [vmem:[#allocation2 + $0xa9] sm:$0xff] }
 0x3a8   : > { %v3774_v14 = vunpack.c.l.b16 %v3752_v3 }
 0x3a9   : > { %v5397_v54 = vpop.permute.xlu2 %5396  ;;  %v5362_v23 = vpop.permute.xlu1 %5361  ;;  %5596 = vrot.lane.b32.xlu0 %v5595_v27, %s5733_s9 }
 0x3aa   : > { %v5399_v2 = vunpack.i.h.bf16 %v5397_v54  ;;  %v5398_v15 = vunpack.i.l.bf16 %v5397_v54  ;;  %v5364_v24 = vunpack.i.h.bf16 %v5362_v23  ;;  %v5363_v26 = vunpack.i.l.bf16 %v5362_v23 }
 0x3ab   : > { %v8126_v49 = vpop.permute.xlu0 %5386  ;;  %v3779_v35 = vpack.c.b16 %v3774_v14, %v3774_v14 }
 0x3ac   : > { %v8130_v40 = vsel %vm1719_vm5, %v8060_v56, %v5398_v15  ;;  %v8134_v6 = vsel %vm1719_vm5, %v8064_v36, %v5399_v2  ;;  %v8138_v51 = vsel %vm1686_vm4, %v7961_v21, %v5363_v26  ;;  %v8142_v57 = vsel %vm1686_vm4, %v7957_v8, %v5364_v24  ;;  %v2360_v21 = vld [vmem:[#allocation2 + $0x90] sm:$0xff] }
 0x3ad   : > { %v5610_v56 = vpack.i.bf16 %v2411_v18, %v2410_v20  ;;  %v5590_v12 = vpack.i.bf16 %v2361_v61, %v2360_v21  ;;  %v2395_v2 = vld [vmem:[#allocation2 + $0xb1] sm:$0xff]  ;;  %v5600_v26 = vpack.i.bf16 %v2425_v29, %v2424_v25  ;;  %v2378_v61 = vld [vmem:[#allocation2 + $0x168] sm:$0xff] }
 0x3ae   : > { %v4396_v18 = vld [vmem:[%s8621_s2 + $0x18] sm:$0xff]  ;;  %v2442_v20 = vld [vmem:[#allocation2 + $0x16a] sm:$0xff] }
 0x3af   : > { %5576 = vrot.lane.b32.xlu2 %v8921_v38, %s5732_s8  ;;  %5586 = vrot.lane.b32.xlu1 %v5585_v37, %s5734_s10  ;;  %v2443_v38 = vld [vmem:[#allocation2 + $0x172] sm:$0xff] }
 0x3b1   : > { %v5412_v36 = vpop.permute.xlu2 %5411  ;;  %v5377_v39 = vpop.permute.xlu1 %5376  ;;  %5611 = vrot.lane.b32.xlu0 %v5610_v56, %s5733_s9 }
 0x3b2   : > { %v5414_v11 = vunpack.i.h.bf16 %v5412_v36  ;;  %v5413_v13 = vunpack.i.l.bf16 %v5412_v36  ;;  %v5379_v55 = vunpack.i.h.bf16 %v5377_v39  ;;  %v5378_v8 = vunpack.i.l.bf16 %v5377_v39  ;;  %v2381_v36 = vld [vmem:[#allocation2 + $0x188] sm:$0xff] }
 0x3b3   : > { %v5402_v30 = vpop.permute.xlu0 %5401 }
 0x3b4   : > { %v8153_v32 = vsel %vm1719_vm5, %v8087_v33, %v5413_v13  ;;  %v8157_v27 = vsel %vm1719_vm5, %v8091_v31, %v5414_v11  ;;  %v8161_v54 = vsel %vm1686_vm4, %v7988_v58, %v5378_v8  ;;  %v8165_v23 = vsel %vm1686_vm4, %v7984_v45, %v5379_v55  ;;  %v2380_v55 = vld [vmem:[#allocation2 + $0x180] sm:$0xff]  ;;  %v4395_v8 = vld [vmem:[%s8621_s2 + $0x10] sm:$0xff] }
 0x3b5   : > { %v5404_v15 = vunpack.i.h.bf16 %v5402_v30  ;;  %v5403_v24 = vunpack.i.l.bf16 %v5402_v30  ;;  %v5625_v45 = vpack.i.bf16 %v2395_v2, %v2394_v47  ;;  %v3833_v58 = vsel %vm1956_vm0, %v3779_v35, 0  ;;  %v4394_v30 = vld [vmem:[%s8621_s2 + $0x8] sm:$0xff] }
 0x3b6   : > { %4402 = vmatpush.bf16.msra.mxu3 %v3833_v58  ;;  %3838 = vmatpush.bf16.msra.mxu1 %v3833_v58  ;;  %v5615_v13 = vpack.i.bf16 %v2443_v38, %v2442_v20  ;;  %v5640_v3 = vpack.i.bf16 %v2381_v36, %v2380_v55  ;;  %v2365_v58 = vld [vmem:[#allocation2 + $0xc8] sm:$0xff]  ;;  %v2364_v20 = vld [vmem:[#allocation2 + $0xc0] sm:$0xff] }
 0x3b7   : > { %v8169_v33 = vsel %vm1719_vm5, %v7997_v43, %v5403_v24  ;;  %v8173_v31 = vsel %vm1719_vm5, %v8001_v10, %v5404_v15  ;;  %5591 = vrot.lane.b32.xlu2 %v5590_v12, %s5732_s8  ;;  %5601 = vrot.lane.b32.xlu1 %v5600_v26, %s5734_s10  ;;  %v2379_v10 = vld [vmem:[#allocation2 + $0x170] sm:$0xff]  ;;  %v4393_v38 = vld [vmem:[%s8621_s2] sm:$0xff] }
 0x3b8   : > { %v5605_v11 = vpack.i.bf16 %v2379_v10, %v2378_v61  ;;  %v2426_v15 = vld [vmem:[#allocation2 + $0xaa] sm:$0xff]  ;;  %v2427_v24 = vld [vmem:[#allocation2 + $0xb2] sm:$0xff]  ;;  %v2349_v55 = vld [vmem:[#allocation2 + $0x182] sm:$0xff] }
 0x3b9   : > { %v8181_v37 = vpop.permute.xlu2 %5426  ;;  %v8183_v43 = vpop.permute.xlu1 %5391  ;;  %5626 = vrot.lane.b32.xlu0 %v5625_v45, %s5733_s9  ;;  %v2362_v45 = vld [vmem:[#allocation2 + $0xa8] sm:$0xff]  ;;  %v5630_v10 = vpack.i.bf16 %v2427_v24, %v2426_v15  ;;  %v2446_v15 = vld [vmem:[#allocation2 + $0x19a] sm:$0xff] }
 0x3ba   : > { %4403 = vmatpush.bf16.msra.mxu3 %v4396_v18  ;;  %3839 = vmatpush.bf16.msra.mxu1 %v4396_v18 }
 0x3bb   : > { %v5417_v56 = vpop.permute.xlu0 %5416 }
 0x3bc   : > { %v5419_v39 = vunpack.i.h.bf16 %v5417_v56  ;;  %v5418_v21 = vunpack.i.l.bf16 %v5417_v56 }
 0x3be   : > { %v8191_v25 = vsel %vm1719_vm5, %v8024_v50, %v5418_v21  ;;  %v8195_v29 = vsel %vm1719_vm5, %v8028_v60, %v5419_v39  ;;  %4404 = vmatpush.bf16.msra.mxu3 %v4395_v8  ;;  %3840 = vmatpush.bf16.msra.mxu1 %v4395_v8  ;;  %v2363_v60 = vld [vmem:[#allocation2 + $0xb0] sm:$0xff] }
 0x3bf   : > { %5606 = vrot.lane.b32.xlu2 %v5605_v11, %s5732_s8  ;;  %5616 = vrot.lane.b32.xlu1 %v5615_v13, %s5734_s10  ;;  %v5620_v18 = vpack.i.bf16 %v2363_v60, %v2362_v45  ;;  %v2350_v8 = vld [vmem:[#allocation2 + $0x18a] sm:$0xff]  ;;  %v2396_v45 = vld [vmem:[#allocation2 + $0xc1] sm:$0xff] }
 0x3c0   : > { %v2397_v60 = vld [vmem:[#allocation2 + $0xc9] sm:$0xff] }
 0x3c1   : > { %v8202_v12 = vpop.permute.xlu2 %5441  ;;  %v5407_v14 = vpop.permute.xlu1 %5406  ;;  %5641 = vrot.lane.b32.xlu0 %v5640_v3, %s5732_s8 }
 0x3c2   : > { %v5409_v50 = vunpack.i.h.bf16 %v5407_v14  ;;  %v5408_v2 = vunpack.i.l.bf16 %v5407_v14  ;;  %4405 = vmatpush.bf16.msra.mxu3 %v4394_v30  ;;  %3841 = vmatpush.bf16.msra.mxu1 %v4394_v30 }
 0x3c3   : > { %v8205_v26 = vpop.permute.xlu0 %5431 }
 0x3c4   : > { %v8209_v35 = vsel %vm1719_vm5, %v8040_v28, %v5408_v2  ;;  %v8213_v47 = vsel %vm1719_vm5, %v8044_v41, %v5409_v50  ;;  %v5655_v28 = vpack.i.bf16 %v2365_v58, %v2364_v20  ;;  %v5660_v58 = vpack.i.bf16 %v2397_v60, %v2396_v45 }
 0x3c6   : > { %4406 = vmatpush.bf16.msra.mxu3 %v4393_v38  ;;  %3842 = vmatpush.bf16.msra.mxu1 %v4393_v38 }
 0x3c7   : > { %5621 = vrot.lane.b32.xlu2 %v5620_v18, %s5732_s8  ;;  %5631 = vrot.lane.b32.xlu1 %v5630_v10, %s5734_s10 }
 0x3c9   : > { %v8220_v56 = vpop.permute.xlu2 %5456  ;;  %v5422_v41 = vpop.permute.xlu1 %5421  ;;  %5656 = vrot.lane.b32.xlu0 %v5655_v28, %s5732_s8  ;;  %v2428_v28 = vld [vmem:[#allocation2 + $0xc2] sm:$0xff] }
 0x3ca   : > { %v5424_v61 = vunpack.i.h.bf16 %v5422_v41  ;;  %v5423_v36 = vunpack.i.l.bf16 %v5422_v41  ;;  %v2429_v41 = vld [vmem:[#allocation2 + $0xca] sm:$0xff]  ;;  %v5459_v45 = vunpack.i.h.bf16 %v8220_v56 }
 0x3cb   : > { %v5447_v39 = vpop.permute.xlu0 %5446  ;;  %v5665_v60 = vpack.i.bf16 %v2429_v41, %v2428_v28 }
 0x3cc   : > { %v8225_v21 = vsel %vm1719_vm5, %v8068_v19, %v5423_v36  ;;  %v8229_v11 = vsel %vm1719_vm5, %v8072_v44, %v5424_v61  ;;  %v5449_v3 = vunpack.i.h.bf16 %v5447_v39  ;;  %v5448_v30 = vunpack.i.l.bf16 %v5447_v39 }
 0x3cd   : > { %v5670_v19 = vpack.i.bf16 %v2350_v8, %v2349_v55  ;;  %v2430_v8 = vld [vmem:[#allocation2 + $0xda] sm:$0xff] }
 0x3ce   : > { %v8233_v14 = vsel %vm1719_vm5, %v8079_v52, %v5448_v30  ;;  %v8237_v50 = vsel %vm1719_vm5, %v8083_v34, %v5449_v3  ;;  %v2447_v52 = vld [vmem:[#allocation2 + $0x1a2] sm:$0xff]  ;;  %v5349_v30 = vunpack.i.h.bf16 %v8104_v9 }
 0x3cf   : > { %5636 = vrot.lane.b32.xlu2 %v5615_v13, %s5731_s7  ;;  %5646 = vrot.lane.b32.xlu1 %v7760_v17, %s5733_s9  ;;  %v5685_v34 = vpack.i.bf16 %v2447_v52, %v2446_v15  ;;  %v2382_v13 = vld [vmem:[#allocation2 + $0x198] sm:$0xff]  ;;  %v2383_v17 = vld [vmem:[#allocation2 + $0x1a0] sm:$0xff]  ;;  %v5429_v15 = vunpack.i.h.bf16 %v8181_v37  ;;  %v5428_v52 = vunpack.i.l.bf16 %v8181_v37 }
 0x3d0   : > { %v5675_v36 = vpack.i.bf16 %v2383_v17, %v2382_v13  ;;  %v2431_v3 = vld [vmem:[#allocation2 + $0xe2] sm:$0xff]  ;;  %v2414_v13 = vld [vmem:[#allocation2 + $0x199] sm:$0xff] }
 0x3d1   : > { %v8242_v44 = vpop.permute.xlu2 %5471  ;;  %v8244_v2 = vpop.permute.xlu1 %5436  ;;  %5671 = vrot.lane.b32.xlu0 %v5670_v19, %s5731_s7  ;;  %v2415_v17 = vld [vmem:[#allocation2 + $0x1a1] sm:$0xff]  ;;  %s4387_s7 = sshll.u32 %s8923_s22, 8 }
 0x3d2   : > { %s8490_s18 = scalar_lea.vmem %s8625_s6, %s4387_s7 }
 0x3d3   : > { %v5462_v24 = vpop.permute.xlu0 %5461 }
 0x3d7   : > { %5651 = vrot.lane.b32.xlu2 %v5670_v19, %s5734_s10  ;;  %5661 = vrot.lane.b32.xlu1 %v5660_v58, %s5733_s9  ;;  %v5348_v19 = vunpack.i.l.bf16 %v8104_v9  ;;  %v5464_v58 = vunpack.i.h.bf16 %v5462_v24 }
 0x3d9   : > { %v8249_v18 = vpop.permute.xlu2 %5486  ;;  %v5452_v10 = vpop.permute.xlu1 %5451  ;;  %5686 = vrot.lane.b32.xlu0 %v5685_v34, %s5734_s10  ;;  %v5463_v34 = vunpack.i.l.bf16 %v5462_v24  ;;  %v3584_v9 = vsel %vm1686_vm4, %v7934_v5, %v5348_v19  ;;  %v2367_v24 = vld [vmem:[#allocation2 + $0xe0] sm:$0xff]  ;;  %v2366_v19 = vld [vmem:[#allocation2 + $0xd8] sm:$0xff] }
 0x3da   : > { %v5454_v20 = vunpack.i.h.bf16 %v5452_v10  ;;  %v5453_v38 = vunpack.i.l.bf16 %v5452_v10  ;;  %v3585_v10 = vsel %vm1686_vm4, %v7930_v16, %v5349_v30 }
 0x3db   : > { %v8252_v61 = vpop.permute.xlu0 %5476 }
 0x3dc   : > { %v8256_v39 = vsel %vm1719_vm5, %v8117_v42, %v5453_v38  ;;  %v8260_v55 = vsel %vm1719_vm5, %v8121_v59, %v5454_v20  ;;  %v5458_v42 = vunpack.i.l.bf16 %v8220_v56  ;;  %v5700_v59 = vpack.i.bf16 %v2431_v3, %v2430_v8 }
 0x3dd   : > { %v3616_v56 = vsel %vm1719_vm5, %v3584_v9, %v5428_v52  ;;  %v3617_v38 = vsel %vm1719_vm5, %v3585_v10, %v5429_v15  ;;  %v5680_v3 = vpack.i.bf16 %v2415_v17, %v2414_v13  ;;  %v5389_v15 = vunpack.i.h.bf16 %v8126_v49 }
 0x3de   : > { %v3649_v8 = vsel %vm1752_vm6, %v3617_v38, %v5459_v45  ;;  %v5388_v9 = vunpack.i.l.bf16 %v8126_v49  ;;  %v5473_v45 = vunpack.i.l.bf16 %v8242_v44  ;;  %v2399_v38 = vld [vmem:[#allocation2 + $0xe1] sm:$0xff] }
 0x3df   : > { %5666 = vrot.lane.b32.xlu2 %v5665_v60, %s5734_s10  ;;  %5676 = vrot.lane.b32.xlu1 %v5675_v36, %s5732_s8  ;;  %v3648_v36 = vsel %vm1752_vm6, %v3616_v56, %v5458_v42  ;;  %v3681_v30 = vsel %vm1785_vm7, %v3649_v8, %v5464_v58  ;;  %v5690_v60 = vpack.i.bf16 %v2367_v24, %v2366_v19  ;;  %v5474_v42 = vunpack.i.h.bf16 %v8242_v44  ;;  %v2398_v8 = vld [vmem:[#allocation2 + $0xd9] sm:$0xff] }
 0x3e0   : > { %v3680_v16 = vsel %vm1785_vm7, %v3648_v36, %v5463_v34  ;;  %v5479_v58 = vunpack.i.h.bf16 %v8252_v61  ;;  %v5478_v34 = vunpack.i.l.bf16 %v8252_v61  ;;  %v3600_v49 = vsel %vm1719_vm5, %v7969_v46, %v5388_v9 }
 0x3e1   : > { %v8274_v37 = vpop.permute.xlu2 %5501  ;;  %v5467_v20 = vpop.permute.xlu1 %5466  ;;  %5701 = vrot.lane.b32.xlu0 %v5700_v59, %s5734_s10  ;;  %s8476_s10 = scalar_lea.vmem %s8624_s5, %s4387_s7 }
 0x3e2   : > { %v5469_v28 = vunpack.i.h.bf16 %v5467_v20  ;;  %v5468_v41 = vunpack.i.l.bf16 %v5467_v20  ;;  %v3601_v20 = vsel %vm1719_vm5, %v7972_v7, %v5389_v15  ;;  %v5434_v7 = vunpack.i.h.bf16 %v8205_v26 }
 0x3e3   : > { %v5492_v5 = vpop.permute.xlu0 %5491 }
 0x3e4   : > { %v3712_v59 = vsel %vm1818_vm8, %v3680_v16, %v5468_v41  ;;  %v3713_v52 = vsel %vm1818_vm8, %v3681_v30, %v5469_v28  ;;  %v3632_v28 = vsel %vm1752_vm6, %v3600_v49, %v5473_v45  ;;  %v3633_v41 = vsel %vm1752_vm6, %v3601_v20, %v5474_v42 }
 0x3e5   : > { %v3736_v10 = vpack.c.bf16 %v3713_v52, %v3712_v59  ;;  %v3664_v61 = vsel %vm1785_vm7, %v3632_v28, %v5478_v34  ;;  %v3665_v36 = vsel %vm1785_vm7, %v3633_v41, %v5479_v58  ;;  %v5433_v30 = vunpack.i.l.bf16 %v8205_v26 }
 0x3e6   : > { %v5488_v59 = vunpack.i.l.bf16 %v8249_v18  ;;  %v5494_v52 = vunpack.i.h.bf16 %v5492_v5  ;;  %v5493_v15 = vunpack.i.l.bf16 %v5492_v5  ;;  %v3619_v26 = vsel %vm1719_vm5, %v8056_v0, %v5434_v7 }
 0x3e7   : > { %5681 = vrot.lane.b32.xlu2 %v5680_v3, %s5733_s9  ;;  %5691 = vrot.lane.b32.xlu1 %v5690_v60, %s5732_s8  ;;  %v5695_v3 = vpack.i.bf16 %v2399_v38, %v2398_v8  ;;  %v5489_v60 = vunpack.i.h.bf16 %v8249_v18  ;;  %v3618_v42 = vsel %vm1719_vm5, %v8052_v62, %v5433_v30  ;;  %v5394_v62 = vunpack.i.h.bf16 %v8183_v43 }
 0x3e8   : > { %4377 = vmatmul.msk.bf16.vlgmr.msra.gmra.mxu3 %vm1907_vm9, %v3736_v10  ;;  %v3650_v34 = vsel %vm1752_vm6, %v3618_v42, %v5488_v59  ;;  %v5504_v38 = vunpack.i.h.bf16 %v8274_v37  ;;  %v5503_v28 = vunpack.i.l.bf16 %v8274_v37 }
 0x3e9   : > { %v8294_v13 = vpop.permute.xlu2 %5516  ;;  %v5482_v17 = vpop.permute.xlu1 %5481  ;;  %v3651_v18 = vsel %vm1752_vm6, %v3619_v26, %v5489_v60  ;;  %v3682_v5 = vsel %vm1785_vm7, %v3650_v34, %v5493_v15 }
 0x3ea   : > { %v5484_v44 = vunpack.i.h.bf16 %v5482_v17  ;;  %v5483_v56 = vunpack.i.l.bf16 %v5482_v17  ;;  %v3683_v49 = vsel %vm1785_vm7, %v3651_v18, %v5494_v52  ;;  %v5438_v52 = vunpack.i.l.bf16 %v8244_v2 }
 0x3eb   : > { %v5507_v24 = vpop.permute.xlu0 %5506  ;;  %v5519_v15 = vunpack.i.h.bf16 %v8294_v13 }
 0x3ec   : > { %v3696_v16 = vsel %vm1818_vm8, %v3664_v61, %v5483_v56  ;;  %v3697_v46 = vsel %vm1818_vm8, %v3665_v36, %v5484_v44  ;;  %v5393_v56 = vunpack.i.l.bf16 %v8183_v43  ;;  %v5509_v41 = vunpack.i.h.bf16 %v5507_v24 }
 0x3ed   : > { %v3728_v19 = vpack.c.bf16 %v3697_v46, %v3696_v16  ;;  %v5508_v61 = vunpack.i.l.bf16 %v5507_v24  ;;  %v3603_v16 = vsel %vm1719_vm5, %v8017_v1, %v5394_v62  ;;  %v3620_v34 = vsel %vm1719_vm5, %v8095_v53, %v5438_v52 }
 0x3ee   : > { %v3635_v30 = vsel %vm1752_vm6, %v3603_v16, %v5504_v38 }
 0x3ef   : > { %5696 = vrot.lane.b32.xlu2 %v5695_v3, %s5733_s9  ;;  %4369 = vmatmul.msk.bf16.vlgmr.msra.gmra.mxu1 %vm1907_vm9, %v3728_v19  ;;  %v3602_v3 = vsel %vm1719_vm5, %v8013_v48, %v5393_v56  ;;  %v3667_v19 = vsel %vm1785_vm7, %v3635_v30, %v5509_v41  ;;  %v5439_v48 = vunpack.i.h.bf16 %v8244_v2 }
 0x3f0   : > { %v3634_v7 = vsel %vm1752_vm6, %v3602_v3, %v5503_v28 }
 0x3f1   : > { %v8312_v9 = vpop.permute.xlu2 %5531  ;;  %v5497_v10 = vpop.permute.xlu1 %5496  ;;  %v3666_v24 = vsel %vm1785_vm7, %v3634_v7, %v5508_v61  ;;  %v3621_v18 = vsel %vm1719_vm5, %v8099_v22, %v5439_v48 }
 0x3f2   : > { %v5499_v45 = vunpack.i.h.bf16 %v5497_v10  ;;  %v5498_v58 = vunpack.i.l.bf16 %v5497_v10  ;;  %v5518_v10 = vunpack.i.l.bf16 %v8294_v13  ;;  %v5534_v53 = vunpack.i.h.bf16 %v8312_v9 }
 0x3f3   : > { %v5522_v17 = vpop.permute.xlu0 %5521  ;;  %v5533_v22 = vunpack.i.l.bf16 %v8312_v9 }
 0x3f4   : > { %v3714_v20 = vsel %vm1818_vm8, %v3682_v5, %v5498_v58  ;;  %v3715_v44 = vsel %vm1818_vm8, %v3683_v49, %v5499_v45  ;;  %v5524_v42 = vunpack.i.h.bf16 %v5522_v17  ;;  %v5523_v26 = vunpack.i.l.bf16 %v5522_v17 }
 0x3f5   : > { %v3737_v0 = vpack.c.bf16 %v3715_v44, %v3714_v20  ;;  %v3652_v49 = vsel %vm1752_vm6, %v3620_v34, %v5518_v10  ;;  %v3653_v20 = vsel %vm1752_vm6, %v3621_v18, %v5519_v15  ;;  %v3636_v16 = vsel %vm1752_vm6, %v8130_v40, %v5533_v22 }
 0x3f6   : > { %v3684_v17 = vsel %vm1785_vm7, %v3652_v49, %v5523_v26  ;;  %v3685_v44 = vsel %vm1785_vm7, %v3653_v20, %v5524_v42 }
 0x3f8   : > { %4378 = vmatmul.msk.bf16.gmra.mxu3 %vm1907_vm9, %v3737_v0 }
 0x3f9   : > { %v8329_v36 = vpop.permute.xlu2 %5546  ;;  %v5512_v8 = vpop.permute.xlu1 %5511 }
 0x3fa   : > { %v5514_v46 = vunpack.i.h.bf16 %v5512_v8  ;;  %v5513_v43 = vunpack.i.l.bf16 %v5512_v8  ;;  %v5548_v40 = vunpack.i.l.bf16 %v8329_v36 }
 0x3fb   : > { %v5537_v37 = vpop.permute.xlu0 %5536 }
 0x3fc   : > { %v3698_v60 = vsel %vm1818_vm8, %v3666_v24, %v5513_v43  ;;  %v3699_v59 = vsel %vm1818_vm8, %v3667_v19, %v5514_v46  ;;  %v5539_v38 = vunpack.i.h.bf16 %v5537_v37  ;;  %v5538_v28 = vunpack.i.l.bf16 %v5537_v37 }
 0x3fd   : > { %v3729_v1 = vpack.c.bf16 %v3699_v59, %v3698_v60  ;;  %v3637_v46 = vsel %vm1752_vm6, %v8134_v6, %v5534_v53  ;;  %v5444_v24 = vunpack.i.h.bf16 %v8202_v12  ;;  %v5443_v19 = vunpack.i.l.bf16 %v8202_v12 }
 0x3fe   : > { %v3668_v7 = vsel %vm1785_vm7, %v3636_v16, %v5538_v28  ;;  %v3669_v30 = vsel %vm1785_vm7, %v3637_v46, %v5539_v38  ;;  %v5549_v59 = vunpack.i.h.bf16 %v8329_v36 }
 0x3ff   : > { %4370 = vmatmul.msk.bf16.gmra.mxu1 %vm1907_vm9, %v3729_v1  ;;  %v3622_v1 = vsel %vm1719_vm5, %v8138_v51, %v5443_v19  ;;  %v3623_v15 = vsel %vm1719_vm5, %v8142_v57, %v5444_v24 }
 0x400   : > { %v3654_v12 = vsel %vm1752_vm6, %v3622_v1, %v5548_v40 }
 0x401   : > { %v8346_v45 = vpop.permute.xlu2 %5561  ;;  %v5527_v58 = vpop.permute.xlu1 %5526 }
 0x402   : > { %v5529_v5 = vunpack.i.h.bf16 %v5527_v58  ;;  %v5528_v2 = vunpack.i.l.bf16 %v5527_v58  ;;  %v3655_v58 = vsel %vm1752_vm6, %v3623_v15, %v5549_v59  ;;  %v5564_v49 = vunpack.i.h.bf16 %v8346_v45 }
 0x403   : > { %v5552_v13 = vpop.permute.xlu0 %5551  ;;  %v5563_v57 = vunpack.i.l.bf16 %v8346_v45 }
 0x404   : > { %v3716_v62 = vsel %vm1818_vm8, %v3684_v17, %v5528_v2  ;;  %v3717_v56 = vsel %vm1818_vm8, %v3685_v44, %v5529_v5  ;;  %v5554_v48 = vunpack.i.h.bf16 %v5552_v13  ;;  %v5553_v6 = vunpack.i.l.bf16 %v5552_v13 }
 0x405   : > { %v3738_v0 = vpack.c.bf16 %v3717_v56, %v3716_v62  ;;  %v3638_v56 = vsel %vm1752_vm6, %v8169_v33, %v5563_v57 }
 0x406   : > { %v3686_v36 = vsel %vm1785_vm7, %v3654_v12, %v5553_v6  ;;  %v3687_v18 = vsel %vm1785_vm7, %v3655_v58, %v5554_v48 }
 0x408   : > { %4379 = vmatmul.msk.bf16.gmra.mxu3 %vm1907_vm9, %v3738_v0  ;;  %v3639_v0 = vsel %vm1752_vm6, %v8173_v31, %v5564_v49 }
 0x409   : > { %v5577_v41 = vpop.permute.xlu2 %5576  ;;  %v5542_v61 = vpop.permute.xlu1 %5541 }
 0x40a   : > { %v5544_v8 = vunpack.i.h.bf16 %v5542_v61  ;;  %v5543_v3 = vunpack.i.l.bf16 %v5542_v61  ;;  %v5578_v16 = vunpack.i.l.bf16 %v5577_v41 }
 0x40b   : > { %v5567_v43 = vpop.permute.xlu0 %5566 }
 0x40c   : > { %v3700_v9 = vsel %vm1818_vm8, %v3668_v7, %v5543_v3  ;;  %v3701_v37 = vsel %vm1818_vm8, %v3669_v30, %v5544_v8  ;;  %v5569_v20 = vunpack.i.h.bf16 %v5567_v43  ;;  %v5568_v13 = vunpack.i.l.bf16 %v5567_v43 }
 0x40d   : > { %v3730_v60 = vpack.c.bf16 %v3701_v37, %v3700_v9  ;;  %v5579_v3 = vunpack.i.h.bf16 %v5577_v41  ;;  %v3656_v30 = vsel %vm1752_vm6, %v8233_v14, %v5578_v16 }
 0x40e   : > { %v3670_v22 = vsel %vm1785_vm7, %v3638_v56, %v5568_v13  ;;  %v3671_v38 = vsel %vm1785_vm7, %v3639_v0, %v5569_v20 }
 0x40f   : > { %4371 = vmatmul.msk.bf16.gmra.mxu1 %vm1907_vm9, %v3730_v60  ;;  %v3657_v9 = vsel %vm1752_vm6, %v8237_v50, %v5579_v3 }
 0x411   : > { %v5557_v52 = vpop.permute.xlu1 %5556  ;;  %v5592_v10 = vpop.permute.xlu2 %5591 }
 0x412   : > { %v5559_v42 = vunpack.i.h.bf16 %v5557_v52  ;;  %v5558_v26 = vunpack.i.l.bf16 %v5557_v52  ;;  %v5594_v48 = vunpack.i.h.bf16 %v5592_v10  ;;  %v5593_v6 = vunpack.i.l.bf16 %v5592_v10 }
 0x413   : > { %v5582_v34 = vpop.permute.xlu0 %5581 }
 0x414   : > { %v3718_v5 = vsel %vm1818_vm8, %v3686_v36, %v5558_v26  ;;  %v3719_v2 = vsel %vm1818_vm8, %v3687_v18, %v5559_v42  ;;  %v5584_v46 = vunpack.i.h.bf16 %v5582_v34  ;;  %v5583_v43 = vunpack.i.l.bf16 %v5582_v34 }
 0x415   : > { %v3739_v51 = vpack.c.bf16 %v3719_v2, %v3718_v5  ;;  %v3640_v42 = vsel %vm1752_vm6, %v8209_v35, %v5593_v6  ;;  %v3641_v26 = vsel %vm1752_vm6, %v8213_v47, %v5594_v48 }
 0x416   : > { %v3688_v24 = vsel %vm1785_vm7, %v3656_v30, %v5583_v43  ;;  %v3689_v19 = vsel %vm1785_vm7, %v3657_v9, %v5584_v46 }
 0x418   : > { %4380 = vmatmul.msk.bf16.gmra.mxu3 %vm1907_vm9, %v3739_v51 }
 0x419   : > { %v5572_v17 = vpop.permute.xlu1 %5571  ;;  %v5607_v28 = vpop.permute.xlu2 %5606 }
 0x41a   : > { %v5574_v44 = vunpack.i.h.bf16 %v5572_v17  ;;  %v5573_v62 = vunpack.i.l.bf16 %v5572_v17  ;;  %v5609_v18 = vunpack.i.h.bf16 %v5607_v28  ;;  %v5608_v5 = vunpack.i.l.bf16 %v5607_v28 }
 0x41b   : > { %v5597_v53 = vpop.permute.xlu0 %5596 }
 0x41c   : > { %v3702_v45 = vsel %vm1818_vm8, %v3670_v22, %v5573_v62  ;;  %v3703_v61 = vsel %vm1818_vm8, %v3671_v38, %v5574_v44  ;;  %v5599_v52 = vunpack.i.h.bf16 %v5597_v53  ;;  %v5598_v1 = vunpack.i.l.bf16 %v5597_v53 }
 0x41d   : > { %v3731_v8 = vpack.c.bf16 %v3703_v61, %v3702_v45  ;;  %v3658_v47 = vsel %vm1752_vm6, %v8256_v39, %v5608_v5  ;;  %v3659_v20 = vsel %vm1752_vm6, %v8260_v55, %v5609_v18 }
 0x41e   : > { %v3672_v58 = vsel %vm1785_vm7, %v3640_v42, %v5598_v1  ;;  %v3673_v34 = vsel %vm1785_vm7, %v3641_v26, %v5599_v52 }
 0x41f   : > { %4372 = vmatmul.msk.bf16.gmra.mxu1 %vm1907_vm9, %v3731_v8 }
 0x421   : > { %v5587_v33 = vpop.permute.xlu1 %5586  ;;  %v5622_v59 = vpop.permute.xlu2 %5621 }
 0x422   : > { %v5589_v7 = vunpack.i.h.bf16 %v5587_v33  ;;  %v5588_v31 = vunpack.i.l.bf16 %v5587_v33  ;;  %v5624_v38 = vunpack.i.h.bf16 %v5622_v59  ;;  %v5623_v28 = vunpack.i.l.bf16 %v5622_v59 }
 0x423   : > { %v5612_v37 = vpop.permute.xlu0 %5611 }
 0x424   : > { %v3720_v41 = vsel %vm1818_vm8, %v3688_v24, %v5588_v31  ;;  %v3721_v60 = vsel %vm1818_vm8, %v3689_v19, %v5589_v7  ;;  %v5614_v51 = vunpack.i.h.bf16 %v5612_v37  ;;  %v5613_v49 = vunpack.i.l.bf16 %v5612_v37 }
 0x425   : > { %v3740_v40 = vpack.c.bf16 %v3721_v60, %v3720_v41  ;;  %v3642_v55 = vsel %vm1752_vm6, %v8153_v32, %v5623_v28  ;;  %v3643_v8 = vsel %vm1752_vm6, %v8157_v27, %v5624_v38 }
 0x426   : > { %v3690_v44 = vsel %vm1785_vm7, %v3658_v47, %v5613_v49  ;;  %v3691_v62 = vsel %vm1785_vm7, %v3659_v20, %v5614_v51 }
 0x428   : > { %4381 = vmatmul.msk.bf16.gmra.mxu3 %vm1907_vm9, %v3740_v40 }
 0x429   : > { %v5602_v14 = vpop.permute.xlu1 %5601  ;;  %v5637_v57 = vpop.permute.xlu2 %5636 }
 0x42a   : > { %v5604_v15 = vunpack.i.h.bf16 %v5602_v14  ;;  %v5603_v50 = vunpack.i.l.bf16 %v5602_v14  ;;  %v5639_v37 = vunpack.i.h.bf16 %v5637_v57  ;;  %v5638_v24 = vunpack.i.l.bf16 %v5637_v57 }
 0x42b   : > { %v5627_v12 = vpop.permute.xlu0 %5626 }
 0x42c   : > { %v3704_v10 = vsel %vm1818_vm8, %v3672_v58, %v5603_v50  ;;  %v3705_v36 = vsel %vm1818_vm8, %v3673_v34, %v5604_v15  ;;  %v5629_v45 = vunpack.i.h.bf16 %v5627_v12  ;;  %v5628_v61 = vunpack.i.l.bf16 %v5627_v12 }
 0x42d   : > { %v3732_v2 = vpack.c.bf16 %v3705_v36, %v3704_v10  ;;  %v3628_v41 = vsel %vm1719_vm5, %v8161_v54, %v5638_v24  ;;  %v3629_v60 = vsel %vm1719_vm5, %v8165_v23, %v5639_v37 }
 0x42e   : > { %v3674_v43 = vsel %vm1785_vm7, %v3642_v55, %v5628_v61  ;;  %v3675_v33 = vsel %vm1785_vm7, %v3643_v8, %v5629_v45 }
 0x42f   : > { %4373 = vmatmul.msk.bf16.gmra.mxu1 %vm1907_vm9, %v3732_v2 }
 0x431   : > { %v5617_v35 = vpop.permute.xlu1 %5616  ;;  %v5652_v3 = vpop.permute.xlu2 %5651 }
 0x432   : > { %v5619_v13 = vunpack.i.h.bf16 %v5617_v35  ;;  %v5618_v17 = vunpack.i.l.bf16 %v5617_v35  ;;  %v5654_v48 = vunpack.i.h.bf16 %v5652_v3  ;;  %v5653_v6 = vunpack.i.l.bf16 %v5652_v3 }
 0x433   : > { %v5642_v56 = vpop.permute.xlu0 %5641 }
 0x434   : > { %v3722_v0 = vsel %vm1818_vm8, %v3690_v44, %v5618_v17  ;;  %v3723_v53 = vsel %vm1818_vm8, %v3691_v62, %v5619_v13  ;;  %v5644_v19 = vunpack.i.h.bf16 %v5642_v56  ;;  %v5643_v32 = vunpack.i.l.bf16 %v5642_v56 }
 0x435   : > { %v3741_v22 = vpack.c.bf16 %v3723_v53, %v3722_v0 }
 0x436   : > { %v3660_v52 = vsel %vm1752_vm6, %v3628_v41, %v5643_v32  ;;  %v3661_v1 = vsel %vm1752_vm6, %v3629_v60, %v5644_v19 }
 0x438   : > { %4382 = vmatmul.msk.bf16.gmra.mxu3 %vm1907_vm9, %v3741_v22 }
 0x439   : > { %v5632_v39 = vpop.permute.xlu1 %5631  ;;  %v5667_v14 = vpop.permute.xlu2 %5666 }
 0x43a   : > { %v5634_v16 = vunpack.i.h.bf16 %v5632_v39  ;;  %v5633_v46 = vunpack.i.l.bf16 %v5632_v39  ;;  %v5669_v18 = vunpack.i.h.bf16 %v5667_v14  ;;  %v5668_v5 = vunpack.i.l.bf16 %v5667_v14 }
 0x43b   : > { %v5657_v7 = vpop.permute.xlu0 %5656 }
 0x43c   : > { %v3706_v31 = vsel %vm1818_vm8, %v3674_v43, %v5633_v46  ;;  %v3707_v30 = vsel %vm1818_vm8, %v3675_v33, %v5634_v16  ;;  %v5659_v23 = vunpack.i.h.bf16 %v5657_v7  ;;  %v5658_v58 = vunpack.i.l.bf16 %v5657_v7 }
 0x43d   : > { %v3733_v9 = vpack.c.bf16 %v3707_v30, %v3706_v31 }
 0x43e   : > { %v3644_v2 = vsel %vm1752_vm6, %v8191_v25, %v5658_v58  ;;  %v3645_v51 = vsel %vm1752_vm6, %v8195_v29, %v5659_v23  ;;  %v3925_v58 = vld [vmem:[%s8476_s10 + $0x8] sm:$0xff] }
 0x43f   : > { %4374 = vmatmul.msk.bf16.gmra.mxu1 %vm1907_vm9, %v3733_v9 }
 0x441   : > { %v5647_v27 = vpop.permute.xlu1 %5646  ;;  %v5682_v20 = vpop.permute.xlu2 %5681 }
 0x442   : > { %v5649_v59 = vunpack.i.h.bf16 %v5647_v27  ;;  %v5648_v40 = vunpack.i.l.bf16 %v5647_v27  ;;  %v5684_v56 = vunpack.i.h.bf16 %v5682_v20  ;;  %v5683_v25 = vunpack.i.l.bf16 %v5682_v20 }
 0x443   : > { %v5672_v42 = vpop.permute.xlu0 %5671 }
 0x444   : > { %v3692_v15 = vsel %vm1785_vm7, %v3660_v52, %v5648_v40  ;;  %v3693_v50 = vsel %vm1785_vm7, %v3661_v1, %v5649_v59  ;;  %v5674_v17 = vunpack.i.h.bf16 %v5672_v42  ;;  %v5673_v44 = vunpack.i.l.bf16 %v5672_v42  ;;  %v3940_v40 = vld [vmem:[%s8476_s10 + $0x80] sm:$0xff] }
 0x445   : > { %v3724_v26 = vsel %vm1818_vm8, %v3692_v15, %v5653_v6  ;;  %v3725_v54 = vsel %vm1818_vm8, %v3693_v50, %v5654_v48  ;;  %v3924_v52 = vld [vmem:[%s8476_s10] sm:$0xff] }
 0x446   : > { %v3742_v12 = vpack.c.bf16 %v3725_v54, %v3724_v26  ;;  %v3630_v28 = vsel %vm1719_vm5, %v8109_v63, %v5673_v44  ;;  %v3631_v45 = vsel %vm1719_vm5, %v8113_v4, %v5674_v17  ;;  %v3941_v54 = vld [vmem:[%s8476_s10 + $0x88] sm:$0xff] }
 0x448   : > { %4383 = vmatmul.msk.bf16.gmra.mxu3 %vm1907_vm9, %v3742_v12 }
 0x449   : > { %v5662_v34 = vpop.permute.xlu1 %5661  ;;  %v5697_v43 = vpop.permute.xlu2 %5696 }
 0x44a   : > { %v5664_v10 = vunpack.i.h.bf16 %v5662_v34  ;;  %v5663_v36 = vunpack.i.l.bf16 %v5662_v34  ;;  %v5699_v31 = vunpack.i.h.bf16 %v5697_v43  ;;  %v5698_v30 = vunpack.i.l.bf16 %v5697_v43 }
 0x44b   : > { %v5687_v62 = vpop.permute.xlu0 %5686 }
 0x44c   : > { %v3676_v49 = vsel %vm1785_vm7, %v3644_v2, %v5663_v36  ;;  %v3677_v57 = vsel %vm1785_vm7, %v3645_v51, %v5664_v10  ;;  %v5689_v53 = vunpack.i.h.bf16 %v5687_v62  ;;  %v5688_v29 = vunpack.i.l.bf16 %v5687_v62  ;;  %v3942_v51 = vld [vmem:[%s8476_s10 + $0x90] sm:$0xff] }
 0x44d   : > { %v3708_v35 = vsel %vm1818_vm8, %v3676_v49, %v5668_v5  ;;  %v3709_v47 = vsel %vm1818_vm8, %v3677_v57, %v5669_v18 }
 0x44e   : > { %v3734_v13 = vpack.c.bf16 %v3709_v47, %v3708_v35  ;;  %v3926_v35 = vld [vmem:[%s8476_s10 + $0x10] sm:$0xff] }
 0x450   : > { %4375 = vmatmul.msk.bf16.gmra.mxu1 %vm1907_vm9, %v3734_v13 }
 0x451   : > { %v5677_v0 = vpop.permute.xlu1 %5676 }
 0x452   : > { %v5679_v22 = vunpack.i.h.bf16 %v5677_v0  ;;  %v5678_v38 = vunpack.i.l.bf16 %v5677_v0 }
 0x453   : > { %v5702_v33 = vpop.permute.xlu0 %5701 }
 0x454   : > { %v3662_v61 = vsel %vm1752_vm6, %v3630_v28, %v5678_v38  ;;  %v3663_v39 = vsel %vm1752_vm6, %v3631_v45, %v5679_v22  ;;  %v5704_v9 = vunpack.i.h.bf16 %v5702_v33  ;;  %v5703_v37 = vunpack.i.l.bf16 %v5702_v33 }
 0x455   : > { %v3694_v55 = vsel %vm1785_vm7, %v3662_v61, %v5683_v25  ;;  %v3695_v8 = vsel %vm1785_vm7, %v3663_v39, %v5684_v56  ;;  %v3943_v56 = vld [vmem:[%s8476_s10 + $0x98] sm:$0xff]  ;;  %v3944_v39 = vld [vmem:[%s8476_s10 + $0xa0] sm:$0xff] }
 0x456   : > { %v3726_v3 = vsel %vm1818_vm8, %v3694_v55, %v5688_v29  ;;  %v3727_v16 = vsel %vm1818_vm8, %v3695_v8, %v5689_v53  ;;  %v3927_v53 = vld [vmem:[%s8476_s10 + $0x18] sm:$0xff] }
 0x457   : > { %v3743_v46 = vpack.c.bf16 %v3727_v16, %v3726_v3  ;;  %v3928_v3 = vld [vmem:[%s8476_s10 + $0x20] sm:$0xff] }
 0x459   : > { %v5692_v7 = vpop.permute.xlu1 %5691  ;;  %4384 = vmatmul.msk.bf16.gmra.mxu3 %vm1907_vm9, %v3743_v46 }
 0x45a   : > { %v5694_v63 = vunpack.i.h.bf16 %v5692_v7  ;;  %v5693_v4 = vunpack.i.l.bf16 %v5692_v7 }
 0x45c   : > { %v3646_v24 = vsel %vm1752_vm6, %v8225_v21, %v5693_v4  ;;  %v3647_v19 = vsel %vm1752_vm6, %v8229_v11, %v5694_v63  ;;  %v8481_v21 = vld [vmem:[%s8623_s4] ss:$0 sm:$0xff]  ;;  %v3945_v4 = vld [vmem:[%s8476_s10 + $0xa8] sm:$0xff] }
 0x45d   : > { %v3678_v32 = vsel %vm1785_vm7, %v3646_v24, %v5698_v30  ;;  %v3679_v27 = vsel %vm1785_vm7, %v3647_v19, %v5699_v31 }
 0x45e   : > { %v3710_v41 = vsel %vm1818_vm8, %v3678_v32, %v5703_v37  ;;  %v3711_v60 = vsel %vm1818_vm8, %v3679_v27, %v5704_v9  ;;  %v3929_v9 = vld [vmem:[%s8476_s10 + $0x28] sm:$0xff] }
 0x45f   : > { %v3735_v59 = vpack.c.bf16 %v3711_v60, %v3710_v41  ;;  %v3946_v60 = vld [vmem:[%s8476_s10 + $0xb0] sm:$0xff] }
 0x461   : > { %4376 = vmatmul.msk.bf16.gmra.mxu1 %vm1907_vm9, %v3735_v59 }
 0x46b   : > { %v3884_v11 = vpop.f32.mrf.mxu3 }
 0x46c   : > { %v3885_v48 = vadd.f32 %v8481_v21, %v3884_v11  ;;  %v3844_v6 = vpop.f32.mrf.mxu1 }
 0x46d   : > { %v3845_v14 = vadd.f32 %v8481_v21, %v3844_v6 }
 0x46e   : > { %v3972_v1 = vadd.f32 %v3940_v40, %v3885_v48  ;;  %v3930_v40 = vld [vmem:[%s8476_s10 + $0x30] sm:$0xff] }
 0x46f   : > { %v3956_v50 = vadd.f32 %v3924_v52, %v3845_v14 }
 0x470   : > { %v4004_v15 = vmax.f32 %v3972_v1, 0.0 }
 0x471   : > { %v3988_v42 = vmax.f32 %v3956_v50, 0.0  ;;  %v3947_v50 = vld [vmem:[%s8476_s10 + $0xb8] sm:$0xff] }
 0x472   : > { %4036 = vst.msk [vmem:[%s8490_s18 + $0x80] sm:$0xff] %vm1587_vm1, %v4004_v15 }
 0x473   : > { %v3886_v26 = vpop.f32.mrf.mxu3  ;;  %4020 = vst.msk [vmem:[%s8490_s18] sm:$0xff] %vm1587_vm1, %v3988_v42 }
 0x474   : > { %v3887_v12 = vadd.f32 %v8481_v21, %v3886_v26  ;;  %v3846_v23 = vpop.f32.mrf.mxu1 }
 0x475   : > { %v3847_v10 = vadd.f32 %v8481_v21, %v3846_v23 }
 0x476   : > { %v3973_v34 = vadd.f32 %v3941_v54, %v3887_v12  ;;  %v3931_v54 = vld [vmem:[%s8476_s10 + $0x38] sm:$0xff] }
 0x477   : > { %v3957_v18 = vadd.f32 %v3925_v58, %v3847_v10 }
 0x478   : > { %v4005_v36 = vmax.f32 %v3973_v34, 0.0 }
 0x479   : > { %v3989_v5 = vmax.f32 %v3957_v18, 0.0  ;;  %v3948_v18 = vld [vmem:[%s8476_s10 + $0xc0] sm:$0xff] }
 0x47a   : > { %4037 = vst.msk [vmem:[%s8490_s18 + $0x88] sm:$0xff] %vm1587_vm1, %v4005_v36 }
 0x47b   : > { %v3889_v2 = vpop.f32.mrf.mxu3  ;;  %4021 = vst.msk [vmem:[%s8490_s18 + $0x8] sm:$0xff] %vm1587_vm1, %v3989_v5 }
 0x47c   : > { %v3890_v49 = vadd.f32 %v8481_v21, %v3889_v2  ;;  %v3849_v57 = vpop.f32.mrf.mxu1 }
 0x47d   : > { %v3850_v20 = vadd.f32 %v8481_v21, %v3849_v57 }
 0x47e   : > { %v3974_v47 = vadd.f32 %v3942_v51, %v3890_v49  ;;  %v3932_v51 = vld [vmem:[%s8476_s10 + $0x40] sm:$0xff] }
 0x47f   : > { %v3958_v17 = vadd.f32 %v3926_v35, %v3850_v20 }
 0x480   : > { %v4006_v13 = vmax.f32 %v3974_v47, 0.0 }
 0x481   : > { %v3990_v44 = vmax.f32 %v3958_v17, 0.0  ;;  %v3949_v17 = vld [vmem:[%s8476_s10 + $0xc8] sm:$0xff] }
 0x482   : > { %4038 = vst.msk [vmem:[%s8490_s18 + $0x90] sm:$0xff] %vm1587_vm1, %v4006_v13 }
 0x483   : > { %v3891_v62 = vpop.f32.mrf.mxu3  ;;  %4022 = vst.msk [vmem:[%s8490_s18 + $0x10] sm:$0xff] %vm1587_vm1, %v3990_v44 }
 0x484   : > { %v3892_v25 = vadd.f32 %v8481_v21, %v3891_v62  ;;  %v3851_v0 = vpop.f32.mrf.mxu1 }
 0x485   : > { %v3852_v22 = vadd.f32 %v8481_v21, %v3851_v0 }
 0x486   : > { %v3975_v29 = vadd.f32 %v3943_v56, %v3892_v25  ;;  %v3933_v56 = vld [vmem:[%s8476_s10 + $0x48] sm:$0xff] }
 0x487   : > { %v3959_v28 = vadd.f32 %v3927_v53, %v3852_v22 }
 0x488   : > { %v4007_v38 = vmax.f32 %v3975_v29, 0.0 }
 0x489   : > { %v3991_v45 = vmax.f32 %v3959_v28, 0.0  ;;  %v3950_v28 = vld [vmem:[%s8476_s10 + $0xd0] sm:$0xff] }
 0x48a   : > { %4039 = vst.msk [vmem:[%s8490_s18 + $0x98] sm:$0xff] %vm1587_vm1, %v4007_v38 }
 0x48b   : > { %v3894_v61 = vpop.f32.mrf.mxu3  ;;  %4023 = vst.msk [vmem:[%s8490_s18 + $0x18] sm:$0xff] %vm1587_vm1, %v3991_v45 }
 0x48c   : > { %v3895_v55 = vadd.f32 %v8481_v21, %v3894_v61  ;;  %v3854_v8 = vpop.f32.mrf.mxu1 }
 0x48d   : > { %v3855_v46 = vadd.f32 %v8481_v21, %v3854_v8 }
 0x48e   : > { %v3976_v16 = vadd.f32 %v3944_v39, %v3895_v55  ;;  %v3934_v39 = vld [vmem:[%s8476_s10 + $0x50] sm:$0xff] }
 0x48f   : > { %v3960_v33 = vadd.f32 %v3928_v3, %v3855_v46 }
 0x490   : > { %v4008_v43 = vmax.f32 %v3976_v16, 0.0 }
 0x491   : > { %v3992_v7 = vmax.f32 %v3960_v33, 0.0  ;;  %v3951_v33 = vld [vmem:[%s8476_s10 + $0xd8] sm:$0xff] }
 0x492   : > { %4040 = vst.msk [vmem:[%s8490_s18 + $0xa0] sm:$0xff] %vm1587_vm1, %v4008_v43 }
 0x493   : > { %v3896_v63 = vpop.f32.mrf.mxu3  ;;  %4024 = vst.msk [vmem:[%s8490_s18 + $0x20] sm:$0xff] %vm1587_vm1, %v3992_v7 }
 0x494   : > { %v3897_v31 = vadd.f32 %v8481_v21, %v3896_v63  ;;  %v3856_v30 = vpop.f32.mrf.mxu1 }
 0x495   : > { %v3857_v24 = vadd.f32 %v8481_v21, %v3856_v30 }
 0x496   : > { %v3977_v37 = vadd.f32 %v3945_v4, %v3897_v31  ;;  %v3935_v4 = vld [vmem:[%s8476_s10 + $0x58] sm:$0xff] }
 0x497   : > { %v3961_v32 = vadd.f32 %v3929_v9, %v3857_v24 }
 0x498   : > { %v4009_v19 = vmax.f32 %v3977_v37, 0.0 }
 0x499   : > { %v3993_v27 = vmax.f32 %v3961_v32, 0.0  ;;  %v3952_v32 = vld [vmem:[%s8476_s10 + $0xe0] sm:$0xff] }
 0x49a   : > { %4041 = vst.msk [vmem:[%s8490_s18 + $0xa8] sm:$0xff] %vm1587_vm1, %v4009_v19 }
 0x49b   : > { %v3899_v41 = vpop.f32.mrf.mxu3  ;;  %4025 = vst.msk [vmem:[%s8490_s18 + $0x28] sm:$0xff] %vm1587_vm1, %v3993_v27 }
 0x49c   : > { %v3900_v59 = vadd.f32 %v8481_v21, %v3899_v41  ;;  %v3859_v11 = vpop.f32.mrf.mxu1 }
 0x49d   : > { %v3860_v6 = vadd.f32 %v8481_v21, %v3859_v11 }
 0x49e   : > { %v3978_v48 = vadd.f32 %v3946_v60, %v3900_v59  ;;  %v3936_v60 = vld [vmem:[%s8476_s10 + $0x60] sm:$0xff] }
 0x49f   : > { %v3962_v1 = vadd.f32 %v3930_v40, %v3860_v6 }
 0x4a0   : > { %v4010_v52 = vmax.f32 %v3978_v48, 0.0 }
 0x4a1   : > { %v3994_v14 = vmax.f32 %v3962_v1, 0.0  ;;  %v3953_v1 = vld [vmem:[%s8476_s10 + $0xe8] sm:$0xff] }
 0x4a2   : > { %4042 = vst.msk [vmem:[%s8490_s18 + $0xb0] sm:$0xff] %vm1587_vm1, %v4010_v52 }
 0x4a3   : > { %v3901_v15 = vpop.f32.mrf.mxu3  ;;  %4026 = vst.msk [vmem:[%s8490_s18 + $0x30] sm:$0xff] %vm1587_vm1, %v3994_v14 }
 0x4a4   : > { %v3902_v42 = vadd.f32 %v8481_v21, %v3901_v15  ;;  %v3861_v26 = vpop.f32.mrf.mxu1 }
 0x4a5   : > { %v3862_v23 = vadd.f32 %v8481_v21, %v3861_v26 }
 0x4a6   : > { %v3979_v12 = vadd.f32 %v3947_v50, %v3902_v42  ;;  %v3937_v50 = vld [vmem:[%s8476_s10 + $0x68] sm:$0xff] }
 0x4a7   : > { %v3963_v34 = vadd.f32 %v3931_v54, %v3862_v23 }
 0x4a8   : > { %v4011_v58 = vmax.f32 %v3979_v12, 0.0 }
 0x4a9   : > { %v3995_v10 = vmax.f32 %v3963_v34, 0.0  ;;  %v3954_v34 = vld [vmem:[%s8476_s10 + $0xf0] sm:$0xff] }
 0x4aa   : > { %4043 = vst.msk [vmem:[%s8490_s18 + $0xb8] sm:$0xff] %vm1587_vm1, %v4011_v58 }
 0x4ab   : > { %v3904_v36 = vpop.f32.mrf.mxu3  ;;  %4027 = vst.msk [vmem:[%s8490_s18 + $0x38] sm:$0xff] %vm1587_vm1, %v3995_v10 }
 0x4ac   : > { %v3905_v5 = vadd.f32 %v8481_v21, %v3904_v36  ;;  %v3864_v2 = vpop.f32.mrf.mxu1 }
 0x4ad   : > { %v3865_v57 = vadd.f32 %v8481_v21, %v3864_v2 }
 0x4ae   : > { %v3980_v49 = vadd.f32 %v3948_v18, %v3905_v5  ;;  %v3938_v18 = vld [vmem:[%s8476_s10 + $0x70] sm:$0xff] }
 0x4af   : > { %v3964_v47 = vadd.f32 %v3932_v51, %v3865_v57 }
 0x4b0   : > { %v4012_v35 = vmax.f32 %v3980_v49, 0.0 }
 0x4b1   : > { %v3996_v20 = vmax.f32 %v3964_v47, 0.0  ;;  %v3955_v47 = vld [vmem:[%s8476_s10 + $0xf8] sm:$0xff] }
 0x4b2   : > { %4044 = vst.msk [vmem:[%s8490_s18 + $0xc0] sm:$0xff] %vm1587_vm1, %v4012_v35 }
 0x4b3   : > { %v3906_v13 = vpop.f32.mrf.mxu3  ;;  %4028 = vst.msk [vmem:[%s8490_s18 + $0x40] sm:$0xff] %vm1587_vm1, %v3996_v20 }
 0x4b4   : > { %v3907_v44 = vadd.f32 %v8481_v21, %v3906_v13  ;;  %v3866_v62 = vpop.f32.mrf.mxu1 }
 0x4b5   : > { %v3867_v0 = vadd.f32 %v8481_v21, %v3866_v62 }
 0x4b6   : > { %v3981_v25 = vadd.f32 %v3949_v17, %v3907_v44  ;;  %v3939_v17 = vld [vmem:[%s8476_s10 + $0x78] sm:$0xff] }
 0x4b7   : > { %v3965_v29 = vadd.f32 %v3933_v56, %v3867_v0 }
 0x4b8   : > { %v4013_v53 = vmax.f32 %v3981_v25, 0.0 }
 0x4b9   : > { %v3997_v22 = vmax.f32 %v3965_v29, 0.0 }
 0x4ba   : > { %4045 = vst.msk [vmem:[%s8490_s18 + $0xc8] sm:$0xff] %vm1587_vm1, %v4013_v53 }
 0x4bb   : > { %v3909_v38 = vpop.f32.mrf.mxu3  ;;  %4029 = vst.msk [vmem:[%s8490_s18 + $0x48] sm:$0xff] %vm1587_vm1, %v3997_v22 }
 0x4bc   : > { %v3910_v45 = vadd.f32 %v8481_v21, %v3909_v38  ;;  %v3869_v61 = vpop.f32.mrf.mxu1 }
 0x4bd   : > { %v3870_v8 = vadd.f32 %v8481_v21, %v3869_v61 }
 0x4be   : > { %v3982_v55 = vadd.f32 %v3950_v28, %v3910_v45 }
 0x4bf   : > { %v3966_v16 = vadd.f32 %v3934_v39, %v3870_v8 }
 0x4c0   : > { %v4014_v3 = vmax.f32 %v3982_v55, 0.0 }
 0x4c1   : > { %v3998_v46 = vmax.f32 %v3966_v16, 0.0 }
 0x4c2   : > { %4046 = vst.msk [vmem:[%s8490_s18 + $0xd0] sm:$0xff] %vm1587_vm1, %v4014_v3 }
 0x4c3   : > { %v3911_v43 = vpop.f32.mrf.mxu3  ;;  %4030 = vst.msk [vmem:[%s8490_s18 + $0x50] sm:$0xff] %vm1587_vm1, %v3998_v46 }
 0x4c4   : > { %v3912_v7 = vadd.f32 %v8481_v21, %v3911_v43  ;;  %v3871_v63 = vpop.f32.mrf.mxu1 }
 0x4c5   : > { %v3872_v30 = vadd.f32 %v8481_v21, %v3871_v63 }
 0x4c6   : > { %v3983_v31 = vadd.f32 %v3951_v33, %v3912_v7 }
 0x4c7   : > { %v3967_v37 = vadd.f32 %v3935_v4, %v3872_v30 }
 0x4c8   : > { %v4015_v9 = vmax.f32 %v3983_v31, 0.0 }
 0x4c9   : > { %v3999_v24 = vmax.f32 %v3967_v37, 0.0 }
 0x4ca   : > { %4047 = vst.msk [vmem:[%s8490_s18 + $0xd8] sm:$0xff] %vm1587_vm1, %v4015_v9 }
 0x4cb   : > { %v3914_v19 = vpop.f32.mrf.mxu3  ;;  %4031 = vst.msk [vmem:[%s8490_s18 + $0x58] sm:$0xff] %vm1587_vm1, %v3999_v24 }
 0x4cc   : > { %v3915_v27 = vadd.f32 %v8481_v21, %v3914_v19 }
 0x4cd   : > { %v3874_v41 = vpop.f32.mrf.mxu1 }
 0x4ce   : > { %v3984_v59 = vadd.f32 %v3952_v32, %v3915_v27  ;;  %v3875_v11 = vadd.f32 %v8481_v21, %v3874_v41 }
 0x4d0   : > { %v4016_v40 = vmax.f32 %v3984_v59, 0.0  ;;  %v3968_v48 = vadd.f32 %v3936_v60, %v3875_v11 }
 0x4d2   : > { %4048 = vst.msk [vmem:[%s8490_s18 + $0xe0] sm:$0xff] %vm1587_vm1, %v4016_v40  ;;  %v4000_v6 = vmax.f32 %v3968_v48, 0.0 }
 0x4d3   : > { %v3916_v52 = vpop.f32.mrf.mxu3 }
 0x4d4   : > { %4032 = vst.msk [vmem:[%s8490_s18 + $0x60] sm:$0xff] %vm1587_vm1, %v4000_v6  ;;  %v3917_v14 = vadd.f32 %v8481_v21, %v3916_v52 }
 0x4d5   : > { %v3876_v15 = vpop.f32.mrf.mxu1 }
 0x4d6   : > { %v3985_v42 = vadd.f32 %v3953_v1, %v3917_v14  ;;  %v3877_v26 = vadd.f32 %v8481_v21, %v3876_v15 }
 0x4d8   : > { %v4017_v54 = vmax.f32 %v3985_v42, 0.0  ;;  %v3969_v12 = vadd.f32 %v3937_v50, %v3877_v26 }
 0x4da   : > { %4049 = vst.msk [vmem:[%s8490_s18 + $0xe8] sm:$0xff] %vm1587_vm1, %v4017_v54  ;;  %v4001_v23 = vmax.f32 %v3969_v12, 0.0 }
 0x4dc   : > { %4033 = vst.msk [vmem:[%s8490_s18 + $0x68] sm:$0xff] %vm1587_vm1, %v4001_v23  ;;  %v3919_v58 = vpop.f32.mrf.mxu3 }
 0x4dd   : > { %v3920_v10 = vadd.f32 %v8481_v21, %v3919_v58 }
 0x4de   : > { %v3879_v36 = vpop.f32.mrf.mxu1 }
 0x4df   : > { %v3986_v5 = vadd.f32 %v3954_v34, %v3920_v10  ;;  %v3880_v2 = vadd.f32 %v8481_v21, %v3879_v36 }
 0x4e1   : > { %v4018_v51 = vmax.f32 %v3986_v5, 0.0  ;;  %v3970_v49 = vadd.f32 %v3938_v18, %v3880_v2 }
 0x4e3   : > { %4050 = vst.msk [vmem:[%s8490_s18 + $0xf0] sm:$0xff] %vm1587_vm1, %v4018_v51  ;;  %v4002_v57 = vmax.f32 %v3970_v49, 0.0 }
 0x4e4   : > { %v3921_v35 = vpop.f32.mrf.mxu3 }
 0x4e5   : > { %4034 = vst.msk [vmem:[%s8490_s18 + $0x70] sm:$0xff] %vm1587_vm1, %v4002_v57  ;;  %v3922_v20 = vadd.f32 %v8481_v21, %v3921_v35 }
 0x4e6   : > { %v3881_v13 = vpop.f32.mrf.mxu1 }
 0x4e7   : > { %v3987_v44 = vadd.f32 %v3955_v47, %v3922_v20  ;;  %v3882_v62 = vadd.f32 %v8481_v21, %v3881_v13 }
 0x4e9   : > { %v4019_v56 = vmax.f32 %v3987_v44, 0.0  ;;  %v3971_v25 = vadd.f32 %v3939_v17, %v3882_v62 }
 0x4eb   : > { %4051 = vst.msk [vmem:[%s8490_s18 + $0xf8] sm:$0xff] %vm1587_vm1, %v4019_v56  ;;  %v4003_v0 = vmax.f32 %v3971_v25, 0.0 }
 0x4ed   : > { %4035 = vst.msk [vmem:[%s8490_s18 + $0x78] sm:$0xff] %vm1587_vm1, %v4003_v0 }
 0x4ee PF: > { %s16_s21 = sadd.s32 1, %s5725_s21  }
 0x4ef   : > { %p13_p4 = scmp.ge.s32.totalorder %s16_s21, 4  }
 0x4f1   :  { %15 = sbr.rel (!%p13_p4) target bundleno = 1 (0x1), region = 82 }

</bundles_post_ra>
